<compile_context>
chip_gen: v7x
topology: tpu7x:2x2x1
jax: 0.10.0
libtpu: 0.0.40
codegen_flags: <defaults>
</compile_context>

<pallas_src>
import math
import functools

import jax
import jax.numpy as jnp
from jax.experimental import pallas as pl
from jax.experimental.pallas import tpu as pltpu


# ----------------------------- in-kernel helpers -----------------------------

def _layernorm(x, gamma, beta, eps):
    mean = jnp.mean(x, axis=-1, keepdims=True)
    var = jnp.mean((x - mean) ** 2, axis=-1, keepdims=True)
    return (x - mean) * jax.lax.rsqrt(var + eps) * gamma + beta


# ------------------------------ fused Pallas kernel ---------------------------

def fused_encoder_kernel(emb_ref, bias_ref,
                         wqkv_ref, wo_ref, w1_ref, w2_ref,
                         params_ref, outp_ref,
                         out_ref,
                         h_scr,
                         *, num_heads, eps, mxu_dtype):
    l = pl.program_id(1)
    n_layers = pl.num_programs(1)

    Bt, S, D = emb_ref.shape          # batch-tile block
    F = w1_ref.shape[2]
    M = Bt * S                        # MXU M-dimension for all dense matmuls
    dh = D // num_heads
    scale = 1.0 / math.sqrt(dh)

    # Layer 0: initialize the resident activation from the (already scaled and
    # PE-added) embeddings.  Reshape (Bt,S,D)->(Bt*S,D) only merges leading
    # axes (S multiple of 8) -- free.
    @pl.when(l == 0)
    def _():
        h_scr[...] = emb_ref[...].reshape(M, D)

    h = h_scr[...]                    # (M, D) f32, resident across layers
    bias = bias_ref[...]              # (Bt, 1, S) additive mask bias (f32)

    # Packed per-layer vectors: rows are
    #   0: bqkv(3D)  1: bo(D)  2: b1(F)  3: b2(D)
    #   4: ln1_g(D)  5: ln1_b(D)  6: ln2_g(D)  7: ln2_b(D)
    params = params_ref[0]            # (8, P) f32
    bqkv = params[0:1, :3 * D]
    bo = params[1:2, :D]
    b1 = params[2:3, :F]
    b2 = params[3:4, :D]
    ln1_g = params[4:5, :D]
    ln1_b = params[5:6, :D]
    ln2_g = params[6:7, :D]
    ln2_b = params[7:8, :D]

    # ---------------- multi-head attention ----------------
    # Fused QKV projection: one (M, D) @ (D, 3D) MXU matmul, M = Bt*S rows.
    qkv = jnp.dot(h.astype(mxu_dtype), wqkv_ref[0],
                  preferred_element_type=jnp.float32) + bqkv          # (M, 3D)

    # Per-head loop is short (num_heads); the scores/softmax/context matmuls
    # are batched over the Bt sequences in the tile.  Contexts are kept in
    # registers and concatenated lane-dense (no scratch partial stores).
    ctx_parts = []
    for hd in range(num_heads):
        qh = qkv[:, hd * dh:(hd + 1) * dh].reshape(Bt, S, dh)
        kh = qkv[:, D + hd * dh:D + (hd + 1) * dh].reshape(Bt, S, dh)
        vh = qkv[:, 2 * D + hd * dh:2 * D + (hd + 1) * dh].reshape(Bt, S, dh)
        scores = jnp.einsum('bqd,bkd->bqk',
                            qh.astype(mxu_dtype), kh.astype(mxu_dtype),
                            preferred_element_type=jnp.float32) * scale + bias
        m = jnp.max(scores, axis=-1, keepdims=True)
        p = jnp.exp(scores - m)                                       # f32
        p = p * pl.reciprocal(jnp.sum(p, axis=-1, keepdims=True), approx=True)
        ctx_parts.append(jnp.einsum('bqk,bkd->bqd',
                                    p.astype(mxu_dtype), vh.astype(mxu_dtype),
                                    preferred_element_type=jnp.float32))
    ctx = jnp.concatenate(ctx_parts, axis=-1).reshape(M, D)           # (M, D)

    attn = jnp.dot(ctx.astype(mxu_dtype), wo_ref[0],
                   preferred_element_type=jnp.float32) + bo

    # post-norm residual block 1 (MHA)
    h1 = _layernorm(h + attn, ln1_g, ln1_b, eps)

    # ---------------- feed-forward ----------------
    ff = jnp.maximum(jnp.dot(h1.astype(mxu_dtype), w1_ref[0],
                             preferred_element_type=jnp.float32) + b1, 0.0)
    ff = jnp.dot(ff.astype(mxu_dtype), w2_ref[0],
                 preferred_element_type=jnp.float32) + b2

    # post-norm residual block 2 (FFN)
    h2 = _layernorm(h1 + ff, ln2_g, ln2_b, eps)

    # Skip the dead scratch writeback on the last layer.
    @pl.when(l < n_layers - 1)
    def _():
        h_scr[...] = h2

    # Last layer: apply the encoder's final LayerNorm and emit the output block.
    @pl.when(l == n_layers - 1)
    def _():
        out_g = outp_ref[0:1, :]
        out_b = outp_ref[1:2, :]
        out_ref[...] = _layernorm(h2, out_g, out_b, eps).reshape(Bt, S, D)


# ------------------------------- host wrapper --------------------------------

def _pick_batch_tile(batch, seq, target_rows=256):
    """Largest divisor Bt of batch with Bt*seq <= target_rows; prefer an even
    number of parallel grid steps (v7x has 2 TensorCores) while keeping the
    MXU M-dimension >= 128."""
    best = 1
    for bt in range(1, batch + 1):
        if batch % bt == 0 and bt * seq <= max(target_rows, seq):
            best = bt
    if (batch // best) % 2 == 1:
        for bt in range(best - 1, 0, -1):
            if batch % bt == 0 and (batch // bt) % 2 == 0 and bt * seq >= 128:
                return bt
    return best


class EncoderPallas:
    def __init__(self, dict_size, seq_length, base_feq, emb_scale, emb_dim,
                 num_layers, num_heads, ff_mid_dim, epsilon=1e-6, seed=0,
                 mxu_dtype=jnp.bfloat16):
        assert emb_dim % num_heads == 0
        assert num_layers >= 1
        self.dict_size = dict_size
        self.seq_length = seq_length
        self.emb_scale = float(emb_scale)
        self.emb_dim = emb_dim
        self.num_layers = num_layers
        self.num_heads = num_heads
        self.ff_mid_dim = ff_mid_dim
        self.eps = float(epsilon)
        self.mxu_dtype = mxu_dtype

        key = jax.random.PRNGKey(seed)
        keys = jax.random.split(key, 1 + num_layers)

        def nrm(k, shape, s=0.02):
            return jax.random.normal(k, shape, jnp.float32) * s

        self.emb_table = nrm(keys[0], (dict_size, emb_dim), 1.0)

        # sinusoidal positional-encoding table (seq_length, emb_dim)
        pos = jnp.arange(seq_length, dtype=jnp.float32)[:, None]
        div = jnp.exp(jnp.arange(0, emb_dim, 2, dtype=jnp.float32)
                      * (-math.log(base_feq) / emb_dim))
        pe = jnp.zeros((seq_length, emb_dim), jnp.float32)
        pe = pe.at[:, 0::2].set(jnp.sin(pos * div))
        pe = pe.at[:, 1::2].set(jnp.cos(pos * div))
        self.pe = pe

        D, F, L = emb_dim, ff_mid_dim, num_layers
        wqkv, wo, w1, w2 = [], [], [], []
        for li in range(num_layers):
            lk = jax.random.split(keys[1 + li], 6)
            wqkv.append(jnp.concatenate(
                [nrm(lk[0], (D, D)), nrm(lk[1], (D, D)), nrm(lk[2], (D, D))], axis=1))
            wo.append(nrm(lk[3], (D, D)))
            w1.append(nrm(lk[4], (D, F)))
            w2.append(nrm(lk[5], (F, D)))

        # Large matmul weights in the MXU input dtype (bf16 by default);
        # vectors/LN params stay f32; accumulation is always f32.
        self.wqkv = jnp.stack(wqkv).astype(mxu_dtype)          # (L, D, 3D)
        self.wo = jnp.stack(wo).astype(mxu_dtype)              # (L, D, D)
        self.w1 = jnp.stack(w1).astype(mxu_dtype)              # (L, D, F)
        self.w2 = jnp.stack(w2).astype(mxu_dtype)              # (L, F, D)

        # Unpacked f32 vectors (used by the pure-JAX reference).
        self.bqkv = jnp.zeros((L, 1, 3 * D), jnp.float32)
        self.bo = jnp.zeros((L, 1, D), jnp.float32)
        self.b1 = jnp.zeros((L, 1, F), jnp.float32)
        self.b2 = jnp.zeros((L, 1, D), jnp.float32)
        self.ln1_g = jnp.ones((L, 1, D), jnp.float32)
        self.ln1_b = jnp.zeros((L, 1, D), jnp.float32)
        self.ln2_g = jnp.ones((L, 1, D), jnp.float32)
        self.ln2_b = jnp.zeros((L, 1, D), jnp.float32)
        self.out_g = jnp.ones((1, D), jnp.float32)
        self.out_b = jnp.zeros((1, D), jnp.float32)

        # Packed per-layer vector block (L, 8, P) for a single kernel operand.
        P = max(3 * D, F)
        self.packed_width = P

        def pad_row(v):
            v = v.reshape(-1)
            return jnp.zeros((P,), jnp.float32).at[:v.shape[0]].set(v)

        packed = []
        for li in range(L):
            packed.append(jnp.stack([
                pad_row(self.bqkv[li]), pad_row(self.bo[li]),
                pad_row(self.b1[li]), pad_row(self.b2[li]),
                pad_row(self.ln1_g[li]), pad_row(self.ln1_b[li]),
                pad_row(self.ln2_g[li]), pad_row(self.ln2_b[li])]))
        self.packed = jnp.stack(packed)                               # (L, 8, P)
        self.out_pack = jnp.concatenate([self.out_g, self.out_b], 0)  # (2, D)

    def __call__(self, src_indexed_sentence, src_mask):
        B, S = src_indexed_sentence.shape
        assert S == self.seq_length
        D, F, L, H = self.emb_dim, self.ff_mid_dim, self.num_layers, self.num_heads
        P = self.packed_width

        # Embedding lookup as an XLA gather; PE scale+add folded here (one fused
        # XLA elementwise), so the kernel never streams the PE table.
        emb = (jnp.take(self.emb_table, src_indexed_sentence, axis=0)
               * self.emb_scale + self.pe[None]).astype(jnp.float32)   # (B,S,D)
        bias = ((src_mask.astype(jnp.float32) - 1.0) * 1e9).reshape(B, 1, S)

        Bt = _pick_batch_tile(B, S)
        grid = (B // Bt, L)

        kernel = functools.partial(
            fused_encoder_kernel, num_heads=H, eps=self.eps,
            mxu_dtype=self.mxu_dtype)

        act_map = lambda b, l: (b, 0, 0)     # per-batch-tile activation blocks
        w_map = lambda b, l: (l, 0, 0)       # per-layer (stacked) weights
        const_map = lambda b, l: (0, 0)      # shared constants

        in_specs = [
            pl.BlockSpec((Bt, S, D), act_map),          # emb (scaled + PE)
            pl.BlockSpec((Bt, 1, S), act_map),          # mask bias
            pl.BlockSpec((1, D, 3 * D), w_map),         # wqkv
            pl.BlockSpec((1, D, D), w_map),             # wo
            pl.BlockSpec((1, D, F), w_map),             # w1
            pl.BlockSpec((1, F, D), w_map),             # w2
            pl.BlockSpec((1, 8, P), w_map),             # packed per-layer vectors
            pl.BlockSpec((2, D), const_map),            # packed out-norm gamma/beta
        ]

        # Explicit VMEM budget (double-buffered blocks + scratch + intermediates),
        # capped at 40 MiB to stay safe on v7x's 64 MiB per-TC VMEM.
        def _bytes(shape, dtype):
            n = 1
            for d in shape:
                n *= int(d)
            return n * jnp.dtype(dtype).itemsize

        mdt = self.mxu_dtype
        blocks = [((Bt, S, D), jnp.float32), ((Bt, 1, S), jnp.float32),
                  ((1, D, 3 * D), mdt), ((1, D, D), mdt),
                  ((1, D, F), mdt), ((1, F, D), mdt),
                  ((1, 8, P), jnp.float32), ((2, D), jnp.float32),
                  ((Bt, S, D), jnp.float32)]           # last entry = output block
        per_step = sum(_bytes(s, d) for s, d in blocks)
        M = Bt * S
        interm = (M * 3 * D + H * Bt * S * S + 3 * M * D + M * F) * 4
        vmem_limit = int(min(40 << 20,
                             max(16 << 20,
                                 2 * per_step + M * D * 4 + interm + (4 << 20))))

        steps = (B // Bt) * L
        flops_step = (2 * M * D * 3 * D      # QKV
                      + 4 * Bt * S * S * D   # scores + context (all heads)
                      + 2 * M * D * D        # output projection
                      + 4 * M * D * F)       # FFN
        wbytes = jnp.dtype(mdt).itemsize
        weight_bytes_layer = (D * 3 * D + D * D + 2 * D * F) * wbytes + 8 * P * 4
        cost = pl.CostEstimate(
            flops=int(steps * flops_step),
            transcendentals=int(steps * (H * Bt * S * S + 3 * M)),
            bytes_accessed=int(2 * B * S * D * 4 + B * S * 4
                               + steps * weight_bytes_layer + 2 * D * 4))

        out = pl.pallas_call(
            kernel,
            out_shape=jax.ShapeDtypeStruct((B, S, D), jnp.float32),
            grid=grid,
            in_specs=in_specs,
            out_specs=pl.BlockSpec((Bt, S, D), act_map),
            scratch_shapes=[pltpu.VMEM((Bt * S, D), jnp.float32)],  # resident h
            compiler_params=pltpu.CompilerParams(
                dimension_semantics=("parallel", "arbitrary"),
                vmem_limit_bytes=vmem_limit),
            cost_estimate=cost,
        )(emb, bias, self.wqkv, self.wo, self.w1, self.w2,
          self.packed, self.out_pack)
        return out


# ------------------------- pure-JAX reference (f32) ---------------------------

def _reference_forward(enc, src_idx, src_mask):
    B, S = src_idx.shape
    D, H, eps = enc.emb_dim, enc.num_heads, enc.eps
    dh = D // H

    def ln(x, g, b):
        m = jnp.mean(x, -1, keepdims=True)
        v = jnp.mean((x - m) ** 2, -1, keepdims=True)
        return (x - m) / jnp.sqrt(v + eps) * g + b

    h = jnp.take(enc.emb_table, src_idx, axis=0) * enc.emb_scale + enc.pe[None]
    bias = ((src_mask.astype(jnp.float32) - 1.0) * 1e9).reshape(B, 1, S)
    for li in range(enc.num_layers):
        qkv = h @ enc.wqkv[li].astype(jnp.float32) + enc.bqkv[li]
        ctx = []
        for hd in range(H):
            qh = qkv[..., hd * dh:(hd + 1) * dh]
            kh = qkv[..., D + hd * dh:D + (hd + 1) * dh]
            vh = qkv[..., 2 * D + hd * dh:2 * D + (hd + 1) * dh]
            sc = jnp.einsum('bqd,bkd->bqk', qh, kh) / math.sqrt(dh) + bias
            p = jax.nn.softmax(sc, axis=-1)
            ctx.append(jnp.einsum('bqk,bkd->bqd', p, vh))
        attn = jnp.concatenate(ctx, axis=-1) @ enc.wo[li].astype(jnp.float32) + enc.bo[li]
        h1 = ln(h + attn, enc.ln1_g[li], enc.ln1_b[li])
        ff = jnp.maximum(h1 @ enc.w1[li].astype(jnp.float32) + enc.b1[li], 0.0)
        ff = ff @ enc.w2[li].astype(jnp.float32) + enc.b2[li]
        h = ln(h1 + ff, enc.ln2_g[li], enc.ln2_b[li])
    return ln(h, enc.out_g, enc.out_b)


# ----------------------------------- main -------------------------------------

if __name__ == "__main__":
    DICT_SIZE = 64
    SEQ_LEN = 16          # multiple of 8 (sublane)
    EMB_DIM = 256         # lane-dense; dh = 128 -> lane-aligned head slices
    NUM_LAYERS = 2
    NUM_HEADS = 2
    FF_MID = 256          # multiple of 128
    BATCH = 16            # batch tile Bt=8 -> MXU M = 128, 2 parallel grid steps

    enc = EncoderPallas(
        dict_size=DICT_SIZE, seq_length=SEQ_LEN, base_feq=10000.0,
        emb_scale=math.sqrt(EMB_DIM), emb_dim=EMB_DIM,
        num_layers=NUM_LAYERS, num_heads=NUM_HEADS, ff_mid_dim=FF_MID,
        epsilon=1e-6, seed=0,
    )

    key = jax.random.PRNGKey(0)
    k_idx, _ = jax.random.split(key)
    src_idx = jax.random.randint(k_idx, (BATCH, SEQ_LEN), 0, DICT_SIZE, dtype=jnp.int32)
    src_mask = jnp.ones((BATCH, 1, SEQ_LEN), jnp.float32)
    src_mask = src_mask.at[0, 0, SEQ_LEN - 1].set(0.0)       # mask one key position
    src_mask = src_mask.at[3, 0, SEQ_LEN - 2:].set(0.0)      # mask two key positions

    out = jax.block_until_ready(enc(src_idx, src_mask))
    assert out.shape == (BATCH, SEQ_LEN, EMB_DIM)
    assert bool(jnp.all(jnp.isfinite(out)))

    # Loose sanity check against a pure-JAX f32 reference (bf16 MXU inputs and
    # the approximate softmax reciprocal introduce small, bounded differences).
    ref = _reference_forward(enc, src_idx, src_mask)
    max_err = float(jnp.max(jnp.abs(out - ref)))
    assert max_err < 0.2, f"mismatch vs reference: {max_err}"

    # TODO(synk): dropout layers (all rates 0.0 here) are identity and omitted.
    print("KERNEL_OK")
</pallas_src>

<mosaic_0001>
module attributes {stable_mosaic.version = 11 : i64} {
  func.func @fused_encoder_kernel(%arg0: i32, %arg1: i32, %arg2: memref<8x16x256xf32, #tpu.memory_space<vmem>>, %arg3: memref<8x1x16xf32, #tpu.memory_space<vmem>>, %arg4: memref<1x256x768xbf16, #tpu.memory_space<vmem>>, %arg5: memref<1x256x256xbf16, #tpu.memory_space<vmem>>, %arg6: memref<1x256x256xbf16, #tpu.memory_space<vmem>>, %arg7: memref<1x256x256xbf16, #tpu.memory_space<vmem>>, %arg8: memref<1x8x768xf32, #tpu.memory_space<vmem>>, %arg9: memref<2x256xf32, #tpu.memory_space<vmem>>, %arg10: memref<8x16x256xf32, #tpu.memory_space<vmem>>, %arg11: memref<128x256xf32, #tpu.memory_space<vmem>>) attributes {dimension_semantics = [#tpu.dimension_semantics<parallel>, #tpu.dimension_semantics<arbitrary>], iteration_bounds = array<i64: 2, 2>, scalar_prefetch = 0 : i64, scratch_operands = 1 : i64, tpu.core_type = #tpu.core_type<tc>, window_params = [{transform_indices = @transform_0, window_bounds = array<i64: 8, 16, 256>}, {transform_indices = @transform_1, window_bounds = array<i64: 8, 1, 16>}, {transform_indices = @transform_2, window_bounds = array<i64: 1, 256, 768>}, {transform_indices = @transform_3, window_bounds = array<i64: 1, 256, 256>}, {transform_indices = @transform_4, window_bounds = array<i64: 1, 256, 256>}, {transform_indices = @transform_5, window_bounds = array<i64: 1, 256, 256>}, {transform_indices = @transform_6, window_bounds = array<i64: 1, 8, 768>}, {pipeline_mode = #tpu.pipeline_mode<synchronous>, transform_indices = @transform_7, window_bounds = array<i64: 2, 256>}, {transform_indices = @transform_8, window_bounds = array<i64: 8, 16, 256>}]} {
    %c0_i32 = arith.constant 0 : i32
    %0 = arith.cmpi eq, %arg1, %c0_i32 : i32
    %1 = arith.extui %0 : i1 to i32
    %c0_i32_0 = arith.constant 0 : i32
    %2 = arith.cmpi ne, %1, %c0_i32_0 : i32
    scf.if %2 {
      %c0_47 = arith.constant 0 : index
      %c0_48 = arith.constant 0 : index
      %c0_49 = arith.constant 0 : index
      %147 = vector.load %arg2[%c0_47, %c0_48, %c0_49] : memref<8x16x256xf32, #tpu.memory_space<vmem>>, vector<8x16x256xf32>
      %148 = vector.shape_cast %147 : vector<8x16x256xf32> to vector<128x256xf32>
      %c0_50 = arith.constant 0 : index
      %c0_51 = arith.constant 0 : index
      %149 = vector.load %arg11[%c0_50, %c0_51] : memref<128x256xf32, #tpu.memory_space<vmem>>, vector<128x256xf32>
      tpu.vector_store %arg11[%c0_50, %c0_51], %148 {strides = array<i32>} : memref<128x256xf32, #tpu.memory_space<vmem>>, vector<128x256xf32>,
    } else {
    }
    %c0 = arith.constant 0 : index
    %c0_1 = arith.constant 0 : index
    %3 = vector.load %arg11[%c0, %c0_1] : memref<128x256xf32, #tpu.memory_space<vmem>>, vector<128x256xf32>
    %c0_2 = arith.constant 0 : index
    %c0_3 = arith.constant 0 : index
    %c0_4 = arith.constant 0 : index
    %4 = vector.load %arg3[%c0_2, %c0_3, %c0_4] : memref<8x1x16xf32, #tpu.memory_space<vmem>>, vector<8x1x16xf32>
    %c0_5 = arith.constant 0 : index
    %c0_6 = arith.constant 0 : index
    %c0_7 = arith.constant 0 : index
    %5 = vector.load %arg8[%c0_5, %c0_6, %c0_7] : memref<1x8x768xf32, #tpu.memory_space<vmem>>, vector<1x8x768xf32>
    %6 = vector.shape_cast %5 : vector<1x8x768xf32> to vector<8x768xf32>
    %7 = vector.extract_strided_slice %6 {offsets = [0, 0], sizes = [1, 768], strides = [1, 1]} : vector<8x768xf32> to vector<1x768xf32>
    %8 = vector.extract_strided_slice %6 {offsets = [1, 0], sizes = [1, 256], strides = [1, 1]} : vector<8x768xf32> to vector<1x256xf32>
    %9 = vector.extract_strided_slice %6 {offsets = [2, 0], sizes = [1, 256], strides = [1, 1]} : vector<8x768xf32> to vector<1x256xf32>
    %10 = vector.extract_strided_slice %6 {offsets = [3, 0], sizes = [1, 256], strides = [1, 1]} : vector<8x768xf32> to vector<1x256xf32>
    %11 = vector.extract_strided_slice %6 {offsets = [4, 0], sizes = [1, 256], strides = [1, 1]} : vector<8x768xf32> to vector<1x256xf32>
    %12 = vector.extract_strided_slice %6 {offsets = [5, 0], sizes = [1, 256], strides = [1, 1]} : vector<8x768xf32> to vector<1x256xf32>
    %13 = vector.extract_strided_slice %6 {offsets = [6, 0], sizes = [1, 256], strides = [1, 1]} : vector<8x768xf32> to vector<1x256xf32>
    %14 = vector.extract_strided_slice %6 {offsets = [7, 0], sizes = [1, 256], strides = [1, 1]} : vector<8x768xf32> to vector<1x256xf32>
    %15 = arith.truncf %3 : vector<128x256xf32> to vector<128x256xbf16>
    %c0_8 = arith.constant 0 : index
    %c0_9 = arith.constant 0 : index
    %c0_10 = arith.constant 0 : index
    %16 = vector.load %arg4[%c0_8, %c0_9, %c0_10] : memref<1x256x768xbf16, #tpu.memory_space<vmem>>, vector<1x256x768xbf16>
    %17 = vector.shape_cast %16 : vector<1x256x768xbf16> to vector<256x768xbf16>
    %cst = arith.constant dense<0.000000e+00> : vector<128x768xf32>
    %18 = tpu.matmul %15, %17, %cst {dimension_numbers = #tpu.dot_dimension_numbers<[1], [0], [0], [1], [0, 0, 1, 1], [], []>} : vector<128x256xbf16>, vector<256x768xbf16>, vector<128x768xf32> -> vector<128x768xf32>
    %19 = vector.broadcast %7 : vector<1x768xf32> to vector<128x768xf32>
    %20 = arith.addf %18, %19 : vector<128x768xf32>
    %21 = vector.extract_strided_slice %20 {offsets = [0, 0], sizes = [128, 128], strides = [1, 1]} : vector<128x768xf32> to vector<128x128xf32>
    %22 = vector.shape_cast %21 : vector<128x128xf32> to vector<8x16x128xf32>
    %23 = vector.extract_strided_slice %20 {offsets = [0, 256], sizes = [128, 128], strides = [1, 1]} : vector<128x768xf32> to vector<128x128xf32>
    %24 = vector.shape_cast %23 : vector<128x128xf32> to vector<8x16x128xf32>
    %25 = vector.extract_strided_slice %20 {offsets = [0, 512], sizes = [128, 128], strides = [1, 1]} : vector<128x768xf32> to vector<128x128xf32>
    %26 = vector.shape_cast %25 : vector<128x128xf32> to vector<8x16x128xf32>
    %27 = arith.truncf %22 : vector<8x16x128xf32> to vector<8x16x128xbf16>
    %28 = arith.truncf %24 : vector<8x16x128xf32> to vector<8x16x128xbf16>
    "tpu.trace_start"() <{level = 10 : i32, message = "bqd,bkd->bqk"}> : () -> ()
    %cst_11 = arith.constant dense<0.000000e+00> : vector<8x16x16xf32>
    %29 = tpu.matmul %27, %28, %cst_11 {dimension_numbers = #tpu.dot_dimension_numbers<[2], [2], [1], [1], [0, 0, 0, 1, 1, 1], [0], [0]>} : vector<8x16x128xbf16>, vector<8x16x128xbf16>, vector<8x16x16xf32> -> vector<8x16x16xf32>
    "tpu.trace_stop"() : () -> ()
    %cst_12 = arith.constant 0.0883883461 : f32
    %30 = vector.broadcast %cst_12 : f32 to vector<8x16x16xf32>
    %31 = arith.mulf %29, %30 : vector<8x16x16xf32>
    %32 = vector.broadcast %4 : vector<8x1x16xf32> to vector<8x16x16xf32>
    %33 = arith.addf %31, %32 : vector<8x16x16xf32>
    %cst_13 = arith.constant dense<0xFF800000> : vector<8x16xf32>
    %34 = vector.multi_reduction <maximumf>, %33, %cst_13 [2] : vector<8x16x16xf32> to vector<8x16xf32>
    %35 = vector.shape_cast %34 : vector<8x16xf32> to vector<8x16x1xf32>
    %36 = vector.broadcast %35 : vector<8x16x1xf32> to vector<8x16x16xf32>
    %37 = arith.subf %33, %36 : vector<8x16x16xf32>
    %38 = math.exp %37 : vector<8x16x16xf32>
    %cst_14 = arith.constant dense<0.000000e+00> : vector<8x16xf32>
    %39 = vector.multi_reduction <add>, %38, %cst_14 [2] : vector<8x16x16xf32> to vector<8x16xf32>
    %40 = vector.shape_cast %39 : vector<8x16xf32> to vector<8x16x1xf32>
    %41 = tpu.reciprocal %40 {approx = true} : vector<8x16x1xf32> -> vector<8x16x1xf32>
    %42 = vector.broadcast %41 : vector<8x16x1xf32> to vector<8x16x16xf32>
    %43 = arith.mulf %38, %42 : vector<8x16x16xf32>
    %44 = arith.truncf %43 : vector<8x16x16xf32> to vector<8x16x16xbf16>
    %45 = arith.truncf %26 : vector<8x16x128xf32> to vector<8x16x128xbf16>
    "tpu.trace_start"() <{level = 10 : i32, message = "bqk,bkd->bqd"}> : () -> ()
    %cst_15 = arith.constant dense<0.000000e+00> : vector<8x16x128xf32>
    %46 = tpu.matmul %44, %45, %cst_15 {dimension_numbers = #tpu.dot_dimension_numbers<[2], [1], [1], [2], [0, 0, 0, 1, 1, 2], [0], [0]>} : vector<8x16x16xbf16>, vector<8x16x128xbf16>, vector<8x16x128xf32> -> vector<8x16x128xf32>
    "tpu.trace_stop"() : () -> ()
    %47 = vector.extract_strided_slice %20 {offsets = [0, 128], sizes = [128, 128], strides = [1, 1]} : vector<128x768xf32> to vector<128x128xf32>
    %48 = vector.shape_cast %47 : vector<128x128xf32> to vector<8x16x128xf32>
    %49 = vector.extract_strided_slice %20 {offsets = [0, 384], sizes = [128, 128], strides = [1, 1]} : vector<128x768xf32> to vector<128x128xf32>
    %50 = vector.shape_cast %49 : vector<128x128xf32> to vector<8x16x128xf32>
    %51 = vector.extract_strided_slice %20 {offsets = [0, 640], sizes = [128, 128], strides = [1, 1]} : vector<128x768xf32> to vector<128x128xf32>
    %52 = vector.shape_cast %51 : vector<128x128xf32> to vector<8x16x128xf32>
    %53 = arith.truncf %48 : vector<8x16x128xf32> to vector<8x16x128xbf16>
    %54 = arith.truncf %50 : vector<8x16x128xf32> to vector<8x16x128xbf16>
    "tpu.trace_start"() <{level = 10 : i32, message = "bqd,bkd->bqk"}> : () -> ()
    %cst_16 = arith.constant dense<0.000000e+00> : vector<8x16x16xf32>
    %55 = tpu.matmul %53, %54, %cst_16 {dimension_numbers = #tpu.dot_dimension_numbers<[2], [2], [1], [1], [0, 0, 0, 1, 1, 1], [0], [0]>} : vector<8x16x128xbf16>, vector<8x16x128xbf16>, vector<8x16x16xf32> -> vector<8x16x16xf32>
    "tpu.trace_stop"() : () -> ()
    %cst_17 = arith.constant 0.0883883461 : f32
    %56 = vector.broadcast %cst_17 : f32 to vector<8x16x16xf32>
    %57 = arith.mulf %55, %56 : vector<8x16x16xf32>
    %58 = vector.broadcast %4 : vector<8x1x16xf32> to vector<8x16x16xf32>
    %59 = arith.addf %57, %58 : vector<8x16x16xf32>
    %cst_18 = arith.constant dense<0xFF800000> : vector<8x16xf32>
    %60 = vector.multi_reduction <maximumf>, %59, %cst_18 [2] : vector<8x16x16xf32> to vector<8x16xf32>
    %61 = vector.shape_cast %60 : vector<8x16xf32> to vector<8x16x1xf32>
    %62 = vector.broadcast %61 : vector<8x16x1xf32> to vector<8x16x16xf32>
    %63 = arith.subf %59, %62 : vector<8x16x16xf32>
    %64 = math.exp %63 : vector<8x16x16xf32>
    %cst_19 = arith.constant dense<0.000000e+00> : vector<8x16xf32>
    %65 = vector.multi_reduction <add>, %64, %cst_19 [2] : vector<8x16x16xf32> to vector<8x16xf32>
    %66 = vector.shape_cast %65 : vector<8x16xf32> to vector<8x16x1xf32>
    %67 = tpu.reciprocal %66 {approx = true} : vector<8x16x1xf32> -> vector<8x16x1xf32>
    %68 = vector.broadcast %67 : vector<8x16x1xf32> to vector<8x16x16xf32>
    %69 = arith.mulf %64, %68 : vector<8x16x16xf32>
    %70 = arith.truncf %69 : vector<8x16x16xf32> to vector<8x16x16xbf16>
    %71 = arith.truncf %52 : vector<8x16x128xf32> to vector<8x16x128xbf16>
    "tpu.trace_start"() <{level = 10 : i32, message = "bqk,bkd->bqd"}> : () -> ()
    %cst_20 = arith.constant dense<0.000000e+00> : vector<8x16x128xf32>
    %72 = tpu.matmul %70, %71, %cst_20 {dimension_numbers = #tpu.dot_dimension_numbers<[2], [1], [1], [2], [0, 0, 0, 1, 1, 2], [0], [0]>} : vector<8x16x16xbf16>, vector<8x16x128xbf16>, vector<8x16x128xf32> -> vector<8x16x128xf32>
    "tpu.trace_stop"() : () -> ()
    %73 = tpu.concatenate %46, %72 in 2 : vector<8x16x128xf32>, vector<8x16x128xf32> -> vector<8x16x256xf32>
    %74 = vector.shape_cast %73 : vector<8x16x256xf32> to vector<128x256xf32>
    %75 = arith.truncf %74 : vector<128x256xf32> to vector<128x256xbf16>
    %c0_21 = arith.constant 0 : index
    %c0_22 = arith.constant 0 : index
    %c0_23 = arith.constant 0 : index
    %76 = vector.load %arg5[%c0_21, %c0_22, %c0_23] : memref<1x256x256xbf16, #tpu.memory_space<vmem>>, vector<1x256x256xbf16>
    %77 = vector.shape_cast %76 : vector<1x256x256xbf16> to vector<256x256xbf16>
    %cst_24 = arith.constant dense<0.000000e+00> : vector<128x256xf32>
    %78 = tpu.matmul %75, %77, %cst_24 {dimension_numbers = #tpu.dot_dimension_numbers<[1], [0], [0], [1], [0, 0, 1, 1], [], []>} : vector<128x256xbf16>, vector<256x256xbf16>, vector<128x256xf32> -> vector<128x256xf32>
    %79 = vector.broadcast %8 : vector<1x256xf32> to vector<128x256xf32>
    %80 = arith.addf %78, %79 : vector<128x256xf32>
    %81 = arith.addf %3, %80 : vector<128x256xf32>
    %cst_25 = arith.constant dense<0.000000e+00> : vector<128xf32>
    %82 = vector.multi_reduction <add>, %81, %cst_25 [1] : vector<128x256xf32> to vector<128xf32>
    %83 = vector.shape_cast %82 : vector<128xf32> to vector<128x1xf32>
    %cst_26 = arith.constant 2.560000e+02 : f32
    %84 = vector.broadcast %cst_26 : f32 to vector<128x1xf32>
    %85 = arith.divf %83, %84 : vector<128x1xf32>
    %86 = vector.broadcast %85 : vector<128x1xf32> to vector<128x256xf32>
    %87 = arith.subf %81, %86 : vector<128x256xf32>
    %88 = arith.mulf %87, %87 : vector<128x256xf32>
    %cst_27 = arith.constant dense<0.000000e+00> : vector<128xf32>
    %89 = vector.multi_reduction <add>, %88, %cst_27 [1] : vector<128x256xf32> to vector<128xf32>
    %90 = vector.shape_cast %89 : vector<128xf32> to vector<128x1xf32>
    %cst_28 = arith.constant 2.560000e+02 : f32
    %91 = vector.broadcast %cst_28 : f32 to vector<128x1xf32>
    %92 = arith.divf %90, %91 : vector<128x1xf32>
    %93 = vector.broadcast %85 : vector<128x1xf32> to vector<128x256xf32>
    %94 = arith.subf %81, %93 : vector<128x256xf32>
    %cst_29 = arith.constant 9.99999997E-7 : f32
    %95 = vector.broadcast %cst_29 : f32 to vector<128x1xf32>
    %96 = arith.addf %92, %95 : vector<128x1xf32>
    %97 = math.rsqrt %96 : vector<128x1xf32>
    %98 = vector.broadcast %97 : vector<128x1xf32> to vector<128x256xf32>
    %99 = arith.mulf %94, %98 : vector<128x256xf32>
    %100 = vector.broadcast %11 : vector<1x256xf32> to vector<128x256xf32>
    %101 = arith.mulf %99, %100 : vector<128x256xf32>
    %102 = vector.broadcast %12 : vector<1x256xf32> to vector<128x256xf32>
    %103 = arith.addf %101, %102 : vector<128x256xf32>
    %104 = arith.truncf %103 : vector<128x256xf32> to vector<128x256xbf16>
    %c0_30 = arith.constant 0 : index
    %c0_31 = arith.constant 0 : index
    %c0_32 = arith.constant 0 : index
    %105 = vector.load %arg6[%c0_30, %c0_31, %c0_32] : memref<1x256x256xbf16, #tpu.memory_space<vmem>>, vector<1x256x256xbf16>
    %106 = vector.shape_cast %105 : vector<1x256x256xbf16> to vector<256x256xbf16>
    %cst_33 = arith.constant dense<0.000000e+00> : vector<128x256xf32>
    %107 = tpu.matmul %104, %106, %cst_33 {dimension_numbers = #tpu.dot_dimension_numbers<[1], [0], [0], [1], [0, 0, 1, 1], [], []>} : vector<128x256xbf16>, vector<256x256xbf16>, vector<128x256xf32> -> vector<128x256xf32>
    %108 = vector.broadcast %9 : vector<1x256xf32> to vector<128x256xf32>
    %109 = arith.addf %107, %108 : vector<128x256xf32>
    %cst_34 = arith.constant 0.000000e+00 : f32
    %110 = vector.broadcast %cst_34 : f32 to vector<128x256xf32>
    %111 = arith.maximumf %109, %110 : vector<128x256xf32>
    %112 = arith.truncf %111 : vector<128x256xf32> to vector<128x256xbf16>
    %c0_35 = arith.constant 0 : index
    %c0_36 = arith.constant 0 : index
    %c0_37 = arith.constant 0 : index
    %113 = vector.load %arg7[%c0_35, %c0_36, %c0_37] : memref<1x256x256xbf16, #tpu.memory_space<vmem>>, vector<1x256x256xbf16>
    %114 = vector.shape_cast %113 : vector<1x256x256xbf16> to vector<256x256xbf16>
    %cst_38 = arith.constant dense<0.000000e+00> : vector<128x256xf32>
    %115 = tpu.matmul %112, %114, %cst_38 {dimension_numbers = #tpu.dot_dimension_numbers<[1], [0], [0], [1], [0, 0, 1, 1], [], []>} : vector<128x256xbf16>, vector<256x256xbf16>, vector<128x256xf32> -> vector<128x256xf32>
    %116 = vector.broadcast %10 : vector<1x256xf32> to vector<128x256xf32>
    %117 = arith.addf %115, %116 : vector<128x256xf32>
    %118 = arith.addf %103, %117 : vector<128x256xf32>
    %cst_39 = arith.constant dense<0.000000e+00> : vector<128xf32>
    %119 = vector.multi_reduction <add>, %118, %cst_39 [1] : vector<128x256xf32> to vector<128xf32>
    %120 = vector.shape_cast %119 : vector<128xf32> to vector<128x1xf32>
    %cst_40 = arith.constant 2.560000e+02 : f32
    %121 = vector.broadcast %cst_40 : f32 to vector<128x1xf32>
    %122 = arith.divf %120, %121 : vector<128x1xf32>
    %123 = vector.broadcast %122 : vector<128x1xf32> to vector<128x256xf32>
    %124 = arith.subf %118, %123 : vector<128x256xf32>
    %125 = arith.mulf %124, %124 : vector<128x256xf32>
    %cst_41 = arith.constant dense<0.000000e+00> : vector<128xf32>
    %126 = vector.multi_reduction <add>, %125, %cst_41 [1] : vector<128x256xf32> to vector<128xf32>
    %127 = vector.shape_cast %126 : vector<128xf32> to vector<128x1xf32>
    %cst_42 = arith.constant 2.560000e+02 : f32
    %128 = vector.broadcast %cst_42 : f32 to vector<128x1xf32>
    %129 = arith.divf %127, %128 : vector<128x1xf32>
    %130 = vector.broadcast %122 : vector<128x1xf32> to vector<128x256xf32>
    %131 = arith.subf %118, %130 : vector<128x256xf32>
    %cst_43 = arith.constant 9.99999997E-7 : f32
    %132 = vector.broadcast %cst_43 : f32 to vector<128x1xf32>
    %133 = arith.addf %129, %132 : vector<128x1xf32>
    %134 = math.rsqrt %133 : vector<128x1xf32>
    %135 = vector.broadcast %134 : vector<128x1xf32> to vector<128x256xf32>
    %136 = arith.mulf %131, %135 : vector<128x256xf32>
    %137 = vector.broadcast %13 : vector<1x256xf32> to vector<128x256xf32>
    %138 = arith.mulf %136, %137 : vector<128x256xf32>
    %139 = vector.broadcast %14 : vector<1x256xf32> to vector<128x256xf32>
    %140 = arith.addf %138, %139 : vector<128x256xf32>
    %c1_i32 = arith.constant 1 : i32
    %141 = arith.cmpi slt, %arg1, %c1_i32 : i32
    %142 = arith.extui %141 : i1 to i32
    %c0_i32_44 = arith.constant 0 : i32
    %143 = arith.cmpi ne, %142, %c0_i32_44 : i32
    scf.if %143 {
      %c0_47 = arith.constant 0 : index
      %c0_48 = arith.constant 0 : index
      %147 = vector.load %arg11[%c0_47, %c0_48] : memref<128x256xf32, #tpu.memory_space<vmem>>, vector<128x256xf32>
      tpu.vector_store %arg11[%c0_47, %c0_48], %140 {strides = array<i32>} : memref<128x256xf32, #tpu.memory_space<vmem>>, vector<128x256xf32>,
    } else {
    }
    %c1_i32_45 = arith.constant 1 : i32
    %144 = arith.cmpi eq, %arg1, %c1_i32_45 : i32
    %145 = arith.extui %144 : i1 to i32
    %c0_i32_46 = arith.constant 0 : i32
    %146 = arith.cmpi ne, %145, %c0_i32_46 : i32
    scf.if %146 {
      %c0_47 = arith.constant 0 : index
      %c0_48 = arith.constant 0 : index
      %147 = vector.load %arg9[%c0_47, %c0_48] : memref<2x256xf32, #tpu.memory_space<vmem>>, vector<1x256xf32>
      %c1 = arith.constant 1 : index
      %c0_49 = arith.constant 0 : index
      %148 = vector.load %arg9[%c1, %c0_49] : memref<2x256xf32, #tpu.memory_space<vmem>>, vector<1x256xf32>
      %cst_50 = arith.constant dense<0.000000e+00> : vector<128xf32>
      %149 = vector.multi_reduction <add>, %140, %cst_50 [1] : vector<128x256xf32> to vector<128xf32>
      %150 = vector.shape_cast %149 : vector<128xf32> to vector<128x1xf32>
      %cst_51 = arith.constant 2.560000e+02 : f32
      %151 = vector.broadcast %cst_51 : f32 to vector<128x1xf32>
      %152 = arith.divf %150, %151 : vector<128x1xf32>
      %153 = vector.broadcast %152 : vector<128x1xf32> to vector<128x256xf32>
      %154 = arith.subf %140, %153 : vector<128x256xf32>
      %155 = arith.mulf %154, %154 : vector<128x256xf32>
      %cst_52 = arith.constant dense<0.000000e+00> : vector<128xf32>
      %156 = vector.multi_reduction <add>, %155, %cst_52 [1] : vector<128x256xf32> to vector<128xf32>
      %157 = vector.shape_cast %156 : vector<128xf32> to vector<128x1xf32>
      %cst_53 = arith.constant 2.560000e+02 : f32
      %158 = vector.broadcast %cst_53 : f32 to vector<128x1xf32>
      %159 = arith.divf %157, %158 : vector<128x1xf32>
      %160 = vector.broadcast %152 : vector<128x1xf32> to vector<128x256xf32>
      %161 = arith.subf %140, %160 : vector<128x256xf32>
      %cst_54 = arith.constant 9.99999997E-7 : f32
      %162 = vector.broadcast %cst_54 : f32 to vector<128x1xf32>
      %163 = arith.addf %159, %162 : vector<128x1xf32>
      %164 = math.rsqrt %163 : vector<128x1xf32>
      %165 = vector.broadcast %164 : vector<128x1xf32> to vector<128x256xf32>
      %166 = arith.mulf %161, %165 : vector<128x256xf32>
      %167 = vector.broadcast %147 : vector<1x256xf32> to vector<128x256xf32>
      %168 = arith.mulf %166, %167 : vector<128x256xf32>
      %169 = vector.broadcast %148 : vector<1x256xf32> to vector<128x256xf32>
      %170 = arith.addf %168, %169 : vector<128x256xf32>
      %171 = vector.shape_cast %170 : vector<128x256xf32> to vector<8x16x256xf32>
      %c0_55 = arith.constant 0 : index
      %c0_56 = arith.constant 0 : index
      %c0_57 = arith.constant 0 : index
      %172 = vector.load %arg10[%c0_55, %c0_56, %c0_57] : memref<8x16x256xf32, #tpu.memory_space<vmem>>, vector<8x16x256xf32>
      tpu.vector_store %arg10[%c0_55, %c0_56, %c0_57], %171 {strides = array<i32>} : memref<8x16x256xf32, #tpu.memory_space<vmem>>, vector<8x16x256xf32>,
    } else {
    }
    return
  }
  func.func @transform_0(%arg0: i32, %arg1: i32) -> (i32, i32, i32) {
    %c0_i32 = arith.constant 0 : i32
    %c0_i32_0 = arith.constant 0 : i32
    %c0_i32_1 = arith.constant 0 : i32
    return %arg0, %c0_i32, %c0_i32_0 : i32, i32, i32
  }
  func.func @transform_1(%arg0: i32, %arg1: i32) -> (i32, i32, i32) {
    %c0_i32 = arith.constant 0 : i32
    %c0_i32_0 = arith.constant 0 : i32
    %c0_i32_1 = arith.constant 0 : i32
    return %arg0, %c0_i32, %c0_i32_0 : i32, i32, i32
  }
  func.func @transform_2(%arg0: i32, %arg1: i32) -> (i32, i32, i32) {
    %c0_i32 = arith.constant 0 : i32
    %c0_i32_0 = arith.constant 0 : i32
    %c0_i32_1 = arith.constant 0 : i32
    return %arg1, %c0_i32, %c0_i32_0 : i32, i32, i32
  }
  func.func @transform_3(%arg0: i32, %arg1: i32) -> (i32, i32, i32) {
    %c0_i32 = arith.constant 0 : i32
    %c0_i32_0 = arith.constant 0 : i32
    %c0_i32_1 = arith.constant 0 : i32
    return %arg1, %c0_i32, %c0_i32_0 : i32, i32, i32
  }
  func.func @transform_4(%arg0: i32, %arg1: i32) -> (i32, i32, i32) {
    %c0_i32 = arith.constant 0 : i32
    %c0_i32_0 = arith.constant 0 : i32
    %c0_i32_1 = arith.constant 0 : i32
    return %arg1, %c0_i32, %c0_i32_0 : i32, i32, i32
  }
  func.func @transform_5(%arg0: i32, %arg1: i32) -> (i32, i32, i32) {
    %c0_i32 = arith.constant 0 : i32
    %c0_i32_0 = arith.constant 0 : i32
    %c0_i32_1 = arith.constant 0 : i32
    return %arg1, %c0_i32, %c0_i32_0 : i32, i32, i32
  }
  func.func @transform_6(%arg0: i32, %arg1: i32) -> (i32, i32, i32) {
    %c0_i32 = arith.constant 0 : i32
    %c0_i32_0 = arith.constant 0 : i32
    %c0_i32_1 = arith.constant 0 : i32
    return %arg1, %c0_i32, %c0_i32_0 : i32, i32, i32
  }
  func.func @transform_7(%arg0: i32, %arg1: i32) -> (i32, i32) {
    %c0_i32 = arith.constant 0 : i32
    %c0_i32_0 = arith.constant 0 : i32
    %c0_i32_1 = arith.constant 0 : i32
    return %c0_i32, %c0_i32_0 : i32, i32
  }
  func.func @transform_8(%arg0: i32, %arg1: i32) -> (i32, i32, i32) {
    %c0_i32 = arith.constant 0 : i32
    %c0_i32_0 = arith.constant 0 : i32
    %c0_i32_1 = arith.constant 0 : i32
    return %arg0, %c0_i32, %c0_i32_0 : i32, i32, i32
  }
}

</mosaic_0001>

<bundles_post_ra>
// kernel: tpu_custom_call.1
= control target key start
LH: loop header
LB: loop body
LE: loop exit
PB: predicated region body
PF: predicated region fallthrough
CT: control target
= control target key end

     0   :  { %s10760_s0 = inlined_call_operand.hbm [shape: f32[16,16,256], index: 0, kind: input, shape index: {}]   ;;  %s10761_s1 = inlined_call_operand.hbm [shape: f32[16,1,16], index: 1, kind: input, shape index: {}]   ;;  %s10762_s2 = inlined_call_operand.hbm [shape: bf16[2,256,768], index: 2, kind: input, shape index: {}]   ;;  %s10763_s3 = inlined_call_operand.hbm [shape: bf16[2,256,256], index: 3, kind: input, shape index: {}]   ;;  %s10764_s4 = inlined_call_operand.hbm [shape: bf16[2,256,256], index: 4, kind: input, shape index: {}]   ;;  %s10765_s5 = inlined_call_operand.hbm [shape: bf16[2,256,256], index: 5, kind: input, shape index: {}]   ;;  %s10766_s6 = inlined_call_operand.hbm [shape: f32[2,8,768], index: 6, kind: input, shape index: {}]   ;;  %s10767_s7 = inlined_call_operand.vmem [shape: f32[2,256], index: 7, kind: input, shape index: {}]   ;;  %s10768_s8 = inlined_call_operand.hbm [shape: f32[16,16,256], index: 8, kind: output, shape index: {}]  }
   0x1   :  { %10845 = sst [smem:[#allocation71_spill]] %s10761_s1 }
   0x2   :  { %10846 = sst [smem:[#allocation72_spill]] %s10763_s3 }
   0x3   :  { %10847 = sst [smem:[#allocation73_spill]] %s10765_s5 }
   0x4   :  { %10848 = sst [smem:[#allocation74_spill]] %s10767_s7 }
   0x5   :  { %10849 = sst [smem:[#allocation75_spill]] %s10768_s8 }
   0x6   :  { %13 = vsyncpa [#allocation4], 0 }
   0x7   :  { %15 = vsyncpa [#allocation4 + $0x1], 0 }
   0x8   :  { %16 = vsyncpa [#allocation7], 0 }
   0x9   :  { %18 = vsyncpa [#allocation7 + $0x1], 0 }
   0xa   :  { %19 = vsyncpa [#allocation10], 0 }
   0xb   :  { %21 = vsyncpa [#allocation10 + $0x1], 0 }
   0xc   :  { %22 = vsyncpa [#allocation13], 0 }
   0xd   :  { %24 = vsyncpa [#allocation13 + $0x1], 0 }
   0xe   :  { %25 = vsyncpa [#allocation5], 0 }
   0xf   :  { %27 = vsyncpa [#allocation5 + $0x1], 0  ;;  %s7591_s27 = smov 0   ;;  %s7593_s28 = smov 0  }
  0x10   :  { %s7595_s29 = smov 0   ;;  %s7597_s30 = smov 0  }
  0x11   :  { %s7599_s9 = smov 0   ;;  %s7601_s10 = smov 0  }
  0x12   :  { %s7603_s11 = smov 0   ;;  %s7605_s12 = smov 0  }
  0x13   :  { %s7607_s13 = smov 0   ;;  %s7609_s14 = smov 0  }
  0x14   :  { %s7611_s15 = smov 0  }
  0x15 LB: > { %10850 = sst [smem:[#allocation22_spill]] %s7489_s28  ;;  %s7647_s16 = sadd.s32 4294967295, %s7525_s15   ;;  %s7525_s15 = sphi %s7611_s15, %s33_s15   ;;  %s7521_s14 = sphi %s7609_s14, %s11020_s14   ;;  %s7517_s13 = sphi %s7607_s13, %s11019_s13   ;;  %s7513_s12 = sphi %s7605_s12, %s11018_s12   ;;  %s7509_s11 = sphi %s7603_s11, %s11017_s11   ;;  %s7505_s10 = sphi %s7601_s10, %s11012_s10   ;;  %s7501_s9 = sphi %s7599_s9, %s11016_s9   ;;  %s7497_s30 = sphi %s7597_s30, %s11015_s30   ;;  %s7493_s29 = sphi %s7595_s29, %s11010_s29   ;;  %s7489_s28 = sphi %s7593_s28, %s11009_s28   ;;  %s7485_s27 = sphi %s7591_s27, %s11008_s27  }
  0x16   : > { %10851 = sst [smem:[#allocation23_spill]] %s7493_s29  ;;  %s5930_s17 = sadd.s32 4294967294, %s7525_s15  }
  0x17   : > { %10852 = sst [smem:[#allocation24_spill]] %s7497_s30  ;;  %p59_p0 = scmp.ne.s32.totalorder %s7505_s10, %s7501_s9 }
  0x18   : > { %10853 = sst [smem:[#allocation25_spill]] %s7505_s10  ;;  %p10776_p1 = scmp.eq.s32.totalorder %s7525_s15, 0 }
  0x19   : > { %10854 = sst [smem:[#allocation26_spill]] %s7509_s11  ;;  %p65_p2 = scmp.ne.s32.totalorder %s7501_s9, %s7497_s30 }
  0x1a   : > { %10855 = sst [smem:[#allocation27_spill]] %s7513_s12  ;;  %p10775_p3 = scmp.eq.s32.totalorder %s7647_s16, 0 }
  0x1b   : > { %10856 = sst [smem:[#allocation28_spill]] %s7525_s15  ;;  %p61_p4 = por %p10776_p1, %p59_p0 }
  0x1c   : > { %10857 = sst [smem:[#allocation29_spill]] %s7647_s16  ;;  %p266_p5 = scmp.eq.s32.totalorder %s7647_s16, 3 }
  0x1d   : > { %p7663_p6 = por %p10775_p3, %p65_p2  ;;  %p272_p7 = scmp.eq.s32.totalorder %s5930_s17, 3 }
  0x1e   : > { %p7667_p8 = por %p266_p5, %p59_p0  ;;  %p10774_p10 = scmp.lt.s32.totalorder %s7525_s15, 4 }
  0x1f   : > { %s10858_s20 = scalar_select %p7663_p6, 1, 0 }
  0x20   : > { %s10860_s21 = scalar_select %p7667_p8, 1, 0 }
  0x21   : > { %10859 = sst [smem:[#allocation30_spill]] %s10858_s20  ;;  %p7671_p9 = por %p272_p7, %p65_p2 }
  0x22   : > { %10861 = sst [smem:[#allocation31_spill]] %s10860_s21  ;;  %s7677_s23 = sand.u32 1, %s7505_s10  }
  0x23   : > { %s10862_s22 = scalar_select %p7671_p9, 1, 0 }
  0x24   : > { %p7681_p11 = pnand %p10774_p10, %p61_p4  ;;  %s7686_s25 = sand.u32 1, %s7525_s15  }
  0x25   : > { %10863 = sst [smem:[#allocation32_spill]] %s10862_s22  ;;  %s5937_s26 = sshll.u32 %s7677_s23, 3 }
  0x26   : > { %s10864_s24 = scalar_select %p7681_p11, 1, 0 }
  0x27   : > { %s6186_s17 = sshll.u32 %s7521_s14, 7  ;;  %s321_s19 = scalar_lea.vmem [#allocation6], %s5937_s26 }
  0x28   : > { %s328_s18 = sshll.u32 %s321_s19, 4  ;;  %s10865_s1 = sld [smem:[#allocation71_spill]]  ;;  %s7695_s18 = int_to_ptr.vmem [resolvable:$true] %s328_s18 }
  0x29   : > { %p10778_p0 = pneg %p7681_p11 }
  0x2e   : > { %s7693_s8 = scalar_lea.hbm %s10865_s1, %s6186_s17  ;;  %s7182_s22 = scalar_lea.hbm %s10865_s1, 256 }
  0x2f   : > { %s7177_s12 = scalar_lea.hbm %s7693_s8, 128  ;;  %p7183_p5 = scmp.lt.u32.totalorder %s7693_s8, %s10865_s1 }
  0x30   : > { %p7178_p13 = scmp.ne.s32.totalorder %s7693_s8, %s7177_s12  ;;  %p7184_p7 = scmp.lt.u32.totalorder %s7182_s22, %s7177_s12 }
  0x31   : > { %p7186_p3 = scmp.lt.u32.totalorder %s7177_s12, %s7693_s8 }
  0x32   : > { %p7180_p2 = pnand %p10778_p0, %p7178_p13  ;;  %p7185_p10 = por %p7184_p7, %p7183_p5 }
  0x34   : > { %p7181_p4 = pneg %p7180_p2  ;;  %p7187_p1 = por %p7186_p3, %p7185_p10 }
  0x36   : > { %p7188_p12 = pnand %p7187_p1, %p7181_p4 }
  0x38   : > { %7191 = shalt.err (!%p7188_p12)
}
  0x39   : > { %s7192_s21 = scalar_lea.vmem %s7695_s18, 128  ;;  %s7527_s19 = smov [#allocation6]  }
  0x3a   : > { %p7193_p13 = scmp.ne.s32.totalorder %s7695_s18, %s7192_s21  ;;  %s7197_s30 = sshll.u32 %s7527_s19, 4  ;;  %s7198_s30 = int_to_ptr.vmem [resolvable:$false] %s7197_s30 }
  0x3b   : > { %s7199_s26 = scalar_lea.vmem %s7198_s30, 256  ;;  %p7200_p8 = scmp.lt.s32.totalorder %s7695_s18, %s7198_s30 }
  0x3c   : > { %p7195_p2 = pnand %p7193_p13, %p10778_p0  ;;  %p7201_p5 = scmp.lt.s32.totalorder %s7199_s26, %s7192_s21 }
  0x3e   : > { %p7196_p9 = pneg %p7195_p2  ;;  %p7202_p7 = por %p7201_p5, %p7200_p8 }
  0x40   : > { %p7203_p3 = pnand %p7202_p7, %p7196_p9 }
  0x42   : > { %7206 = shalt.err (!%p7203_p3)
}
  0x43   : > { %s10779_s12 = smov 16   ;;  %s7529_s21 = smov 1  }
  0x44   : > { %s10866_s22 = scalar_lea.sflag [#allocation7], %s7686_s25  ;;  %p439_p1 = scmp.lt.s32.totalorder %s7525_s15, 5 }
  0x45   : > { %6508 = dma.hbm_to_vmem [thread:$0]  (!%p7681_p11), %s7693_s8, 128, %s7695_s18, %s10866_s22, %s10779_s12, %s10779_s12, %s7529_s21  }
  0x46   : > { %p10867_p8 = scmp.ge.s32.totalorder %s7525_s15, 1  ;;  %s42_s19 = sadd.s32 1, %s7517_s13 }
  0x47   : > { %s104_s30 = sadd.s32 1, %s7493_s29  ;;  %p43_p10 = scmp.ge.s32.totalorder %s42_s19, 2 }
  0x48   : > { %p7731_p9 = pnand %p10867_p8, %p439_p1  ;;  %p111_p12 = scmp.ne.s32.totalorder %s7493_s29, %s7489_s28 }
  0x49   : > { %p117_p4 = scmp.ne.s32.totalorder %s7489_s28, %s7485_s27  ;;  %s7742_s26 = sand.u32 1, %s7493_s29  }
  0x4a   : > { %s10868_s17 = scalar_select %p7731_p9, 1, 0 }
  0x4b   : > { %s11022_s19 = smov (%p43_p10, %s42_s19), 0  ;;  %s10870_s8 = sadd.s32 1, %s7521_s14 }
  0x4c   : > { %10869 = sst [smem:[#allocation33_spill]] %s11022_s19  ;;  %s11024_s8 = smov (!%p43_p10, %s10870_s8), %s7521_s14 }
  0x4d   : > { %s101_s18 = ssub.s32 %s7517_s13, %s11022_s19  ;;  %p10871_p13 = scmp.eq.s32.totalorder %s7525_s15, 0 }
  0x4e   : > { %p47_p5 = scmp.ge.s32.totalorder %s11024_s8, 2  ;;  %p102_p7 = scmp.eq.s32.totalorder %s101_s18, 0 }
  0x4f   : > { %p113_p2 = por %p111_p12, %p10871_p13  ;;  %p10872_p3 = scmp.eq.s32.totalorder %s7647_s16, 0 }
  0x50   : > { %p10875_p8 = scmp.lt.s32.totalorder %s7525_s15, 4  ;;  %s11026_s8 = smov (%p47_p5, %s11024_s8), 0 }
  0x51   : > { %p7755_p1 = por %p117_p4, %p10872_p3  ;;  %10877 = sst [smem:[#allocation35_spill]] %s11026_s8 }
  0x52   : > { %p7761_p0 = pnand %p10875_p8, %p113_p2  ;;  %s49_s12 = ssub.s32 %s7521_s14, %s11026_s8 }
  0x53   : > { %s10873_s21 = scalar_select %p7755_p1, 1, 0 }
  0x54   : > { %s10876_s27 = scalar_select %p7761_p0, 1, 0 }
  0x55   : > { %10874 = sst [smem:[#allocation34_spill]] %s10873_s21  ;;  %p50_p10 = scmp.eq.s32.totalorder %s49_s12, 0 }
  0x56   : > { %s7768_s22 = scalar_select %p102_p7, %s7493_s29, %s104_s30  }
  0x57   : > { %s7773_s1 = sshll.u32 %s7742_s26, 8  ;;  %s7776_s18 = sshll.u32 %s7517_s13, 12 }
  0x58   : > { %10878 = sst [smem:[#allocation36_spill]] %s7768_s22  ;;  %s10879_s19 = sadd.s32 1, %s7505_s10 }
  0x59   : > { %s7781_s15 = scalar_select %p50_p10, %s7505_s10, %s10879_s19  }
  0x5a   : > { %s10881_s3 = sld [smem:[#allocation72_spill]]  ;;  %s363_s30 = scalar_lea.vmem [#allocation9], %s7773_s1 }
  0x5b   : > { %10880 = sst [smem:[#allocation37_spill]] %s7781_s15  ;;  %s370_s12 = sshll.u32 %s363_s30, 4  ;;  %s7790_s12 = int_to_ptr.vmem [resolvable:$true] %s370_s12 }
  0x5c   : > { %p7797_p4 = pneg %p7761_p0 }
  0x60   : > { %s7787_s21 = scalar_lea.hbm %s10881_s3, %s7776_s18  ;;  %s7212_s15 = scalar_lea.hbm %s10881_s3, 8192 }
  0x61   : > { %s7207_s22 = scalar_lea.hbm %s7787_s21, 4096  ;;  %p7213_p5 = scmp.lt.u32.totalorder %s7787_s21, %s10881_s3 }
  0x62   : > { %p7208_p12 = scmp.ne.s32.totalorder %s7787_s21, %s7207_s22  ;;  %p7214_p7 = scmp.lt.u32.totalorder %s7212_s15, %s7207_s22 }
  0x63   : > { %p7216_p8 = scmp.lt.u32.totalorder %s7207_s22, %s7787_s21 }
  0x64   : > { %p7210_p13 = pnand %p7797_p4, %p7208_p12  ;;  %p7215_p3 = por %p7214_p7, %p7213_p5 }
  0x66   : > { %p7211_p2 = pneg %p7210_p13  ;;  %p7217_p10 = por %p7216_p8, %p7215_p3 }
  0x68   : > { %p7218_p1 = pnand %p7217_p10, %p7211_p2 }
  0x6a   : > { %7221 = shalt.err (!%p7218_p1)
}
  0x6b   : > { %s7222_s8 = scalar_lea.vmem %s7790_s12, 4096  ;;  %s7530_s7 = smov [#allocation9]  }
  0x6c   : > { %p7223_p12 = scmp.ne.s32.totalorder %s7790_s12, %s7222_s8  ;;  %s7227_s11 = sshll.u32 %s7530_s7, 4  ;;  %s7228_s11 = int_to_ptr.vmem [resolvable:$false] %s7227_s11 }
  0x6d   : > { %s7229_s10 = scalar_lea.vmem %s7228_s11, 8192  ;;  %p7230_p9 = scmp.lt.s32.totalorder %s7790_s12, %s7228_s11 }
  0x6e   : > { %p7225_p13 = pnand %p7223_p12, %p7797_p4  ;;  %p7231_p11 = scmp.lt.s32.totalorder %s7229_s10, %s7222_s8 }
  0x70   : > { %p7226_p6 = pneg %p7225_p13  ;;  %p7232_p5 = por %p7231_p11, %p7230_p9 }
  0x72   : > { %p7233_p7 = pnand %p7232_p5, %p7226_p6 }
  0x74   : > { %7236 = shalt.err (!%p7233_p7)
}
  0x75   : > { %s7531_s15 = smov 128   ;;  %s7532_s22 = smov 8  }
  0x76   : > { %s10883_s30 = scalar_lea.sflag [#allocation10], %s7686_s25  ;;  %s10884_s5 = sld [smem:[#allocation73_spill]] }
  0x77   : > { %6514 = dma.hbm_to_vmem [thread:$0]  (!%p7761_p0), %s7787_s21, 4096, %s7790_s12, %s10883_s30, %s7531_s15, %s7531_s15, %s7532_s22  }
  0x78   : > { %s405_s10 = scalar_lea.vmem [#allocation12], %s7773_s1  ;;  %s402_s29 = scalar_lea.sflag [#allocation13], %s7686_s25 }
  0x79   : > { %s412_s3 = sshll.u32 %s405_s10, 4  ;;  %s7832_s3 = int_to_ptr.vmem [resolvable:$true] %s412_s3 }
  0x7c   : > { %s7829_s11 = scalar_lea.hbm %s10884_s5, %s7776_s18  ;;  %s7242_s30 = scalar_lea.hbm %s10884_s5, 8192 }
  0x7d   : > { %s7237_s28 = scalar_lea.hbm %s7829_s11, 4096  ;;  %p7243_p1 = scmp.lt.u32.totalorder %s7829_s11, %s10884_s5 }
  0x7e   : > { %p7238_p6 = scmp.ne.s32.totalorder %s7829_s11, %s7237_s28  ;;  %p7244_p2 = scmp.lt.u32.totalorder %s7242_s30, %s7237_s28 }
  0x7f   : > { %p7246_p8 = scmp.lt.u32.totalorder %s7237_s28, %s7829_s11 }
  0x80   : > { %p7240_p11 = pnand %p7238_p6, %p7797_p4  ;;  %p7245_p3 = por %p7244_p2, %p7243_p1 }
  0x82   : > { %p7241_p9 = pneg %p7240_p11  ;;  %p7247_p10 = por %p7246_p8, %p7245_p3 }
  0x84   : > { %p7248_p12 = pnand %p7247_p10, %p7241_p9 }
  0x86   : > { %7251 = shalt.err (!%p7248_p12)
}
  0x87   : > { %s7252_s10 = scalar_lea.vmem %s7832_s3, 4096  ;;  %s7533_s21 = smov [#allocation12]  }
  0x88   : > { %p7253_p13 = scmp.ne.s32.totalorder %s7832_s3, %s7252_s10  ;;  %s7257_s12 = sshll.u32 %s7533_s21, 4  ;;  %s7258_s12 = int_to_ptr.vmem [resolvable:$false] %s7257_s12 }
  0x89   : > { %s7259_s8 = scalar_lea.vmem %s7258_s12, 8192  ;;  %p7260_p6 = scmp.lt.s32.totalorder %s7832_s3, %s7258_s12 }
  0x8a   : > { %p7255_p5 = pnand %p7253_p13, %p7797_p4  ;;  %p7261_p11 = scmp.lt.s32.totalorder %s7259_s8, %s7252_s10 }
  0x8c   : > { %p7256_p7 = pneg %p7255_p5  ;;  %p7262_p1 = por %p7261_p11, %p7260_p6 }
  0x8e   : > { %p7263_p2 = pnand %p7262_p1, %p7256_p7 }
  0x90   : > { %7266 = shalt.err (!%p7263_p2)
}
  0x91   : > { %6520 = dma.hbm_to_vmem [thread:$0]  (!%p7761_p0), %s7829_s11, 4096, %s7832_s3, %s402_s29, %s7531_s15, %s7531_s15, %s7532_s22  }
  0x92   : > { %s5933_s28 = sshll.u32 %s7677_s23, 8  ;;  %s6185_s30 = sshll.u32 %s7521_s14, 12 }
  0x93   : > { %s7866_s21 = scalar_lea.hbm %s10760_s0, %s6185_s30  ;;  %s299_s12 = scalar_lea.vmem [#allocation3], %s5933_s28 }
  0x94   : > { %s307_s8 = sshll.u32 %s299_s12, 4  ;;  %s6480_s5 = smul.u32 768, %s7742_s26  ;;  %s7868_s8 = int_to_ptr.vmem [resolvable:$true] %s307_s8 }
  0x95   : > { %s296_s16 = scalar_lea.sflag [#allocation4], %s7677_s23  ;;  %s7267_s20 = scalar_lea.hbm %s7866_s21, 4096 }
  0x96   : > { %p7268_p9 = scmp.ne.s32.totalorder %s7866_s21, %s7267_s20  ;;  %p10885_p3 = scmp.ne.s32.totalorder %s10864_s24, 0 }
  0x97   : > { %s7272_s30 = scalar_lea.hbm %s10760_s0, 8192  ;;  %p7273_p13 = scmp.lt.u32.totalorder %s7866_s21, %s10760_s0 }
  0x98   : > { %p10886_p8 = pneg %p10885_p3  ;;  %p7274_p5 = scmp.lt.u32.totalorder %s7272_s30, %s7267_s20 }
  0x99   : > { %p7276_p6 = scmp.lt.u32.totalorder %s7267_s20, %s7866_s21 }
  0x9a   : > { %p7270_p10 = pnand %p7268_p9, %p10886_p8  ;;  %p7275_p7 = por %p7274_p5, %p7273_p13 }
  0x9c   : > { %p7271_p12 = pneg %p7270_p10  ;;  %p7277_p11 = por %p7276_p6, %p7275_p7 }
  0x9e   : > { %p7278_p1 = pnand %p7277_p11, %p7271_p12 }
  0xa0   : > { %7281 = shalt.err (!%p7278_p1)
}
  0xa1   : > { %s7282_s28 = scalar_lea.vmem %s7868_s8, 4096  ;;  %p10887_p9 = pmov %p10886_p8 }
  0xa2   : > { %p7283_p2 = scmp.ne.s32.totalorder %s7868_s8, %s7282_s28  ;;  %s7534_s12 = smov [#allocation3]  }
  0xa3   : > { %s7287_s3 = sshll.u32 %s7534_s12, 4  ;;  %s7288_s3 = int_to_ptr.vmem [resolvable:$false] %s7287_s3 }
  0xa4   : > { %p7285_p8 = pnand %p7283_p2, %p10887_p9  ;;  %s7289_s11 = scalar_lea.vmem %s7288_s3, 8192 }
  0xa5   : > { %p7290_p0 = scmp.lt.s32.totalorder %s7868_s8, %s7288_s3  ;;  %p7291_p13 = scmp.lt.s32.totalorder %s7289_s11, %s7282_s28 }
  0xa6   : > { %p7286_p10 = pneg %p7285_p8 }
  0xa7   : > { %p7292_p5 = por %p7291_p13, %p7290_p0 }
  0xa9   : > { %p7293_p7 = pnand %p7292_p5, %p7286_p10 }
  0xab   : > { %7296 = shalt.err (!%p7293_p7)
}
  0xac   : > { %s7535_s20 = smov 256   ;;  %s10888_s30 = smov 16  }
  0xad   : > { %6505 = dma.hbm_to_vmem [thread:$0]  (!%p10885_p3), %s7866_s21, 4096, %s7868_s8, %s296_s16, %s7535_s20, %s7535_s20, %s10888_s30  }
  0xae   : > { %s6481_s7 = smul.u32 12288, %s7517_s13  ;;  %s342_s10 = scalar_lea.vmem [#allocation8], %s6480_s5 }
  0xaf   : > { %s349_s12 = sshll.u32 %s342_s10, 4  ;;  %s7302_s5 = scalar_lea.hbm %s10762_s2, 24576  ;;  %s7906_s12 = int_to_ptr.vmem [resolvable:$true] %s349_s12 }
  0xb0   : > { %s7904_s11 = scalar_lea.hbm %s10762_s2, %s6481_s7 }
  0xb1   : > { %s7297_s23 = scalar_lea.hbm %s7904_s11, 12288  ;;  %p7303_p6 = scmp.lt.u32.totalorder %s7904_s11, %s10762_s2 }
  0xb2   : > { %p7298_p0 = scmp.ne.s32.totalorder %s7904_s11, %s7297_s23  ;;  %p7304_p11 = scmp.lt.u32.totalorder %s7302_s5, %s7297_s23 }
  0xb3   : > { %p7306_p2 = scmp.lt.u32.totalorder %s7297_s23, %s7904_s11 }
  0xb4   : > { %p7300_p12 = pnand %p7298_p0, %p7797_p4  ;;  %p7305_p1 = por %p7304_p11, %p7303_p6 }
  0xb6   : > { %p7301_p3 = pneg %p7300_p12  ;;  %p7307_p9 = por %p7306_p2, %p7305_p1 }
  0xb8   : > { %p7308_p8 = pnand %p7307_p9, %p7301_p3 }
  0xba   : > { %7311 = shalt.err (!%p7308_p8)
}
  0xbb   : > { %s7312_s20 = scalar_lea.vmem %s7906_s12, 12288  ;;  %s7536_s30 = smov [#allocation8]  }
  0xbc   : > { %p7313_p10 = scmp.ne.s32.totalorder %s7906_s12, %s7312_s20  ;;  %s7317_s7 = sshll.u32 %s7536_s30, 4  ;;  %s7318_s7 = int_to_ptr.vmem [resolvable:$false] %s7317_s7 }
  0xbd   : > { %s7319_s10 = scalar_lea.vmem %s7318_s7, 24576  ;;  %p7320_p7 = scmp.lt.s32.totalorder %s7906_s12, %s7318_s7 }
  0xbe   : > { %p7315_p13 = pnand %p7313_p10, %p7797_p4  ;;  %p7321_p0 = scmp.lt.s32.totalorder %s7319_s10, %s7312_s20 }
  0xc0   : > { %p7316_p5 = pneg %p7315_p13  ;;  %p7322_p12 = por %p7321_p0, %p7320_p7 }
  0xc2   : > { %p7323_p6 = pnand %p7322_p12, %p7316_p5 }
  0xc4   : > { %7326 = shalt.err (!%p7323_p6)
}
  0xc5   : > { %s7537_s28 = smov 384   ;;  %s7538_s3 = smov 24  }
  0xc6   : > { %p10889_p3 = scmp.ne.s32.totalorder %s10876_s27, 0  ;;  %s10890_s23 = scalar_lea.sflag [#allocation7], %s7686_s25 }
  0xc7   : > { %s7935_s5 = scalar_lea.hbm %s10764_s4, %s7776_s18  ;;  %s384_s21 = scalar_lea.vmem [#allocation11], %s7773_s1 }
  0xc8   : > { %6511 = dma.hbm_to_vmem [thread:$0]  (!%p10889_p3), %s7904_s11, 12288, %s7906_s12, %s10890_s23, %s7537_s28, %s7537_s28, %s7538_s3  }
  0xc9   : > { %s391_s8 = sshll.u32 %s384_s21, 4  ;;  %s6482_s20 = smul.u32 48, %s7742_s26  ;;  %s7938_s8 = int_to_ptr.vmem [resolvable:$true] %s391_s8 }
  0xca   : > { %s7327_s30 = scalar_lea.hbm %s7935_s5, 4096  ;;  %s7332_s7 = scalar_lea.hbm %s10764_s4, 8192 }
  0xcb   : > { %p7328_p11 = scmp.ne.s32.totalorder %s7935_s5, %s7327_s30  ;;  %p7333_p9 = scmp.lt.u32.totalorder %s7935_s5, %s10764_s4 }
  0xcc   : > { %p7334_p8 = scmp.lt.u32.totalorder %s7332_s7, %s7327_s30  ;;  %p7336_p13 = scmp.lt.u32.totalorder %s7327_s30, %s7935_s5 }
  0xcd   : > { %p7330_p1 = pnand %p7328_p11, %p7797_p4 }
  0xce   : > { %p7335_p10 = por %p7334_p8, %p7333_p9 }
  0xcf   : > { %p7331_p2 = pneg %p7330_p1 }
  0xd0   : > { %p7337_p5 = por %p7336_p13, %p7335_p10 }
  0xd2   : > { %p7338_p7 = pnand %p7337_p5, %p7331_p2 }
  0xd4   : > { %7341 = shalt.err (!%p7338_p7)
}
  0xd5   : > { %s7342_s1 = scalar_lea.vmem %s7938_s8, 4096  ;;  %s7539_s28 = smov [#allocation11]  }
  0xd6   : > { %p7343_p0 = scmp.ne.s32.totalorder %s7938_s8, %s7342_s1  ;;  %s7347_s3 = sshll.u32 %s7539_s28, 4  ;;  %s7348_s3 = int_to_ptr.vmem [resolvable:$false] %s7347_s3 }
  0xd7   : > { %s7349_s23 = scalar_lea.vmem %s7348_s3, 8192  ;;  %p7350_p11 = scmp.lt.s32.totalorder %s7938_s8, %s7348_s3 }
  0xd8   : > { %p7345_p12 = pnand %p7343_p0, %p7797_p4  ;;  %p7351_p1 = scmp.lt.s32.totalorder %s7349_s23, %s7342_s1 }
  0xda   : > { %p7346_p6 = pneg %p7345_p12  ;;  %p7352_p9 = por %p7351_p1, %p7350_p11 }
  0xdc   : > { %p7353_p8 = pnand %p7352_p9, %p7346_p6 }
  0xde   : > { %7356 = shalt.err (!%p7353_p8)
}
  0xdf   : > { %s10891_s16 = scalar_lea.sflag [#allocation10], %s7686_s25  ;;  %s6483_s24 = smul.u32 768, %s7517_s13 }
  0xe0   : > { %6517 = dma.hbm_to_vmem [thread:$0]  (!%p10889_p3), %s7935_s5, 4096, %s7938_s8, %s10891_s16, %s7531_s15, %s7531_s15, %s7532_s22  }
  0xe1   : > { %s426_s21 = scalar_lea.vmem [#allocation14], %s6482_s20  ;;  %s432_s7 = scalar_lea.hbm %s10766_s6, %s6483_s24 }
  0xe2   : > { %s434_s30 = sshll.u32 %s426_s21, 4  ;;  %s7357_s18 = scalar_lea.hbm %s432_s7, 768  ;;  %s435_s30 = int_to_ptr.vmem [resolvable:$true] %s434_s30 }
  0xe3   : > { %p7358_p2 = scmp.ne.s32.totalorder %s432_s7, %s7357_s18  ;;  %s7362_s28 = scalar_lea.hbm %s10766_s6, 1536 }
  0xe4   : > { %p7363_p5 = scmp.lt.u32.totalorder %s432_s7, %s10766_s6  ;;  %p7364_p7 = scmp.lt.u32.totalorder %s7362_s28, %s7357_s18 }
  0xe5   : > { %p7360_p10 = pnand %p7358_p2, %p7797_p4  ;;  %p7366_p12 = scmp.lt.u32.totalorder %s7357_s18, %s432_s7 }
  0xe6   : > { %p7365_p0 = por %p7364_p7, %p7363_p5 }
  0xe7   : > { %p7361_p13 = pneg %p7360_p10 }
  0xe8   : > { %p7367_p6 = por %p7366_p12, %p7365_p0 }
  0xea   : > { %p7368_p11 = pnand %p7367_p6, %p7361_p13 }
  0xec   : > { %7371 = shalt.err (!%p7368_p11)
}
  0xed   : > { %s7372_s26 = scalar_lea.vmem %s435_s30, 768  ;;  %s7540_s22 = smov [#allocation14]  }
  0xee   : > { %p7373_p1 = scmp.ne.s32.totalorder %s435_s30, %s7372_s26  ;;  %s7377_s5 = sshll.u32 %s7540_s22, 4  ;;  %s7378_s5 = int_to_ptr.vmem [resolvable:$false] %s7377_s5 }
  0xef   : > { %s7379_s8 = scalar_lea.vmem %s7378_s5, 1536  ;;  %p7380_p2 = scmp.lt.s32.totalorder %s435_s30, %s7378_s5 }
  0xf0   : > { %p7375_p9 = pnand %p7373_p1, %p7797_p4  ;;  %p7381_p10 = scmp.lt.s32.totalorder %s7379_s8, %s7372_s26 }
  0xf2   : > { %p7376_p8 = pneg %p7375_p9  ;;  %p7382_p3 = por %p7381_p10, %p7380_p2 }
  0xf4   : > { %p7383_p5 = pnand %p7382_p3, %p7376_p8 }
  0xf6   : > { %7386 = shalt.err (!%p7383_p5)
}
  0xf7   : > { %p10892_p7 = scmp.ne.s32.totalorder %s10876_s27, 0  ;;  %p10893_p13 = scmp.ne.s32.totalorder %s10868_s17, 0 }
  0xf9   : > { %6523 = dma.hbm_to_vmem [thread:$0]  (!%p10892_p7), %s432_s7, 768, %s435_s30, %s402_s29  }
  0xfa   : > { %443 = sbr.rel (%p10893_p13) target bundleno = 3687 (0xe67), region = 52 }
 0x101   : > { %s10894_s19 = sld [smem:[#allocation30_spill]]  ;;  %s7990_s20 = sand.u32 1, %s7501_s9  }
 0x102   : > { %s5952_s23 = sshll.u32 %s7990_s20, 8  ;;  %s446_s16 = scalar_lea.sflag [#allocation4], %s7990_s20 }
 0x103   : > { %s7994_s24 = scalar_lea.vmem [#allocation3], %s5952_s23 }
 0x107   : > { %p10895_p4 = scmp.ne.s32.totalorder %s10894_s19, 0 }
 0x109   : > { %7460 = dma.done.wait (%p10895_p4), %s446_s16, 4096  }
 0x10a   : > { %7462 = vsyncadd (%p10895_p4), %s446_s16, 4294963200  ;;  %s10896_s25 = sld [smem:[#allocation29_spill]]  ;;  %s5953_s17 = sshll.u32 %s7990_s20, 3 }
 0x10b   : > { %s8002_s21 = scalar_lea.vmem [#allocation6], %s5953_s17 }
 0x110   : > { %s454_s29 = sand.u32 1, %s10896_s25  }
 0x111   : > { %s455_s27 = scalar_lea.sflag [#allocation7], %s454_s29 }
 0x112   : > { %7464 = dma.done.wait (%p10895_p4), %s455_s27, 128  }
 0x113   : > { %7466 = vsyncadd (%p10895_p4), %s455_s27, 4294967168  ;;  %s10897_s30 = sld [smem:[#allocation22_spill]]  ;;  %s10898_s12 = sld [smem:[#allocation34_spill]] }
 0x119   : > { %s465_s11 = sand.u32 1, %s10897_s30   ;;  %p10899_p3 = scmp.ne.s32.totalorder %s10898_s12, 0 }
 0x11a   : > { %s6484_s7 = smul.u32 768, %s465_s11 }
 0x11c   : > { %s8009_s18 = scalar_lea.vmem [#allocation8], %s6484_s7 }
 0x11d   : > { %7468 = dma.done.wait (%p10899_p3), %s455_s27, 12288  }
 0x11e   : > { %7470 = vsyncadd (%p10899_p3), %s455_s27, 4294955008  ;;  %s5954_s10 = sshll.u32 %s465_s11, 8  ;;  %s473_s1 = scalar_lea.sflag [#allocation10], %s454_s29 }
 0x11f   : > { %s8015_s28 = scalar_lea.vmem [#allocation9], %s5954_s10 }
 0x120   : > { %7472 = dma.done.wait (%p10899_p3), %s473_s1, 8192  }
 0x121   : > { %7474 = vsyncadd (%p10899_p3), %s473_s1, 4294959104  ;;  %s8021_s3 = scalar_lea.vmem [#allocation11], %s5954_s10  ;;  %s491_s15 = scalar_lea.sflag [#allocation13], %s454_s29 }
 0x122   : > { %s8023_s26 = scalar_lea.vmem [#allocation12], %s5954_s10 }
 0x123   : > { %7476 = dma.done.wait (%p10899_p3), %s491_s15, 4864  }
 0x124   : > { %7478 = vsyncadd (%p10899_p3), %s491_s15, 4294962432  ;;  %s6485_s22 = smul.u32 48, %s465_s11  ;;  %s8031_s8 = scalar_lea.vmem [#allocation15], %s5952_s23 }
 0x125   : > { %s10900_s19 = sld [smem:[#allocation26_spill]] }
 0x126   : > { %s8029_s5 = scalar_lea.vmem [#allocation14], %s6485_s22 }
 0x12b   : > { %p5958_p0 = scmp.ne.s32.totalorder %s10900_s19, 0 }
 0x12c   : > { %v574_v0 = vld [vmem:[%s7994_s24] sm:$0xff] (!%p5958_p0)  ;;  %v575_v1 = vld [vmem:[%s7994_s24 + $0x8] sm:$0xff] (!%p5958_p0)  ;;  %v576_v2 = vld [vmem:[%s7994_s24 + $0x10] sm:$0xff] (!%p5958_p0) }
 0x12d   : > { %573 = sbr.rel (%p5958_p0) target bundleno = 317 (0x13d), region = 84  ;;  %606 = vst [vmem:[#allocation2] sm:$0xff] (!%p5958_p0), %v574_v0  ;;  %607 = vst [vmem:[#allocation2 + $0x8] sm:$0xff] (!%p5958_p0), %v575_v1  ;;  %v577_v3 = vld [vmem:[%s7994_s24 + $0x18] sm:$0xff] (!%p5958_p0)  ;;  %v578_v4 = vld [vmem:[%s7994_s24 + $0x20] sm:$0xff] (!%p5958_p0) }
 0x12e   : > { %608 = vst [vmem:[#allocation2 + $0x10] sm:$0xff] (!%p5958_p0), %v576_v2  ;;  %v579_v5 = vld [vmem:[%s7994_s24 + $0x28] sm:$0xff] (!%p5958_p0)  ;;  %609 = vst [vmem:[#allocation2 + $0x18] sm:$0xff] (!%p5958_p0), %v577_v3  ;;  %v580_v6 = vld [vmem:[%s7994_s24 + $0x30] sm:$0xff] (!%p5958_p0) }
 0x12f   : > { %610 = vst [vmem:[#allocation2 + $0x20] sm:$0xff] (!%p5958_p0), %v578_v4  ;;  %611 = vst [vmem:[#allocation2 + $0x28] sm:$0xff] (!%p5958_p0), %v579_v5  ;;  %v581_v7 = vld [vmem:[%s7994_s24 + $0x38] sm:$0xff] (!%p5958_p0)  ;;  %v582_v8 = vld [vmem:[%s7994_s24 + $0x40] sm:$0xff] (!%p5958_p0) }
 0x130   : > { %612 = vst [vmem:[#allocation2 + $0x30] sm:$0xff] (!%p5958_p0), %v580_v6  ;;  %613 = vst [vmem:[#allocation2 + $0x38] sm:$0xff] (!%p5958_p0), %v581_v7  ;;  %v583_v9 = vld [vmem:[%s7994_s24 + $0x48] sm:$0xff] (!%p5958_p0)  ;;  %v584_v10 = vld [vmem:[%s7994_s24 + $0x50] sm:$0xff] (!%p5958_p0) }
 0x131   : > { %614 = vst [vmem:[#allocation2 + $0x40] sm:$0xff] (!%p5958_p0), %v582_v8  ;;  %v585_v11 = vld [vmem:[%s7994_s24 + $0x58] sm:$0xff] (!%p5958_p0)  ;;  %615 = vst [vmem:[#allocation2 + $0x48] sm:$0xff] (!%p5958_p0), %v583_v9  ;;  %v586_v12 = vld [vmem:[%s7994_s24 + $0x60] sm:$0xff] (!%p5958_p0) }
 0x132   : > { %616 = vst [vmem:[#allocation2 + $0x50] sm:$0xff] (!%p5958_p0), %v584_v10  ;;  %617 = vst [vmem:[#allocation2 + $0x58] sm:$0xff] (!%p5958_p0), %v585_v11  ;;  %v587_v13 = vld [vmem:[%s7994_s24 + $0x68] sm:$0xff] (!%p5958_p0)  ;;  %v588_v14 = vld [vmem:[%s7994_s24 + $0x70] sm:$0xff] (!%p5958_p0) }
 0x133   : > { %618 = vst [vmem:[#allocation2 + $0x60] sm:$0xff] (!%p5958_p0), %v586_v12  ;;  %619 = vst [vmem:[#allocation2 + $0x68] sm:$0xff] (!%p5958_p0), %v587_v13  ;;  %v589_v15 = vld [vmem:[%s7994_s24 + $0x78] sm:$0xff] (!%p5958_p0)  ;;  %v590_v16 = vld [vmem:[%s7994_s24 + $0x80] sm:$0xff] (!%p5958_p0) }
 0x134   : > { %620 = vst [vmem:[#allocation2 + $0x70] sm:$0xff] %v588_v14  ;;  %v591_v17 = vld [vmem:[%s7994_s24 + $0x88] sm:$0xff]  ;;  %621 = vst [vmem:[#allocation2 + $0x78] sm:$0xff] %v589_v15  ;;  %v592_v18 = vld [vmem:[%s7994_s24 + $0x90] sm:$0xff] }
 0x135   : > { %622 = vst [vmem:[#allocation2 + $0x80] sm:$0xff] %v590_v16  ;;  %623 = vst [vmem:[#allocation2 + $0x88] sm:$0xff] %v591_v17  ;;  %v593_v19 = vld [vmem:[%s7994_s24 + $0x98] sm:$0xff]  ;;  %v594_v20 = vld [vmem:[%s7994_s24 + $0xa0] sm:$0xff] }
 0x136   : > { %624 = vst [vmem:[#allocation2 + $0x90] sm:$0xff] %v592_v18  ;;  %625 = vst [vmem:[#allocation2 + $0x98] sm:$0xff] %v593_v19  ;;  %v595_v21 = vld [vmem:[%s7994_s24 + $0xa8] sm:$0xff]  ;;  %v596_v22 = vld [vmem:[%s7994_s24 + $0xb0] sm:$0xff] }
 0x137   : > { %626 = vst [vmem:[#allocation2 + $0xa0] sm:$0xff] %v594_v20  ;;  %v597_v23 = vld [vmem:[%s7994_s24 + $0xb8] sm:$0xff]  ;;  %627 = vst [vmem:[#allocation2 + $0xa8] sm:$0xff] %v595_v21  ;;  %v598_v24 = vld [vmem:[%s7994_s24 + $0xc0] sm:$0xff] }
 0x138   : > { %628 = vst [vmem:[#allocation2 + $0xb0] sm:$0xff] %v596_v22  ;;  %629 = vst [vmem:[#allocation2 + $0xb8] sm:$0xff] %v597_v23  ;;  %v599_v25 = vld [vmem:[%s7994_s24 + $0xc8] sm:$0xff]  ;;  %v600_v26 = vld [vmem:[%s7994_s24 + $0xd0] sm:$0xff] }
 0x139   : > { %630 = vst [vmem:[#allocation2 + $0xc0] sm:$0xff] %v598_v24  ;;  %631 = vst [vmem:[#allocation2 + $0xc8] sm:$0xff] %v599_v25  ;;  %v601_v27 = vld [vmem:[%s7994_s24 + $0xd8] sm:$0xff]  ;;  %v602_v28 = vld [vmem:[%s7994_s24 + $0xe0] sm:$0xff] }
 0x13a   : > { %632 = vst [vmem:[#allocation2 + $0xd0] sm:$0xff] %v600_v26  ;;  %v603_v29 = vld [vmem:[%s7994_s24 + $0xe8] sm:$0xff]  ;;  %633 = vst [vmem:[#allocation2 + $0xd8] sm:$0xff] %v601_v27  ;;  %v604_v30 = vld [vmem:[%s7994_s24 + $0xf0] sm:$0xff] }
 0x13b   : > { %634 = vst [vmem:[#allocation2 + $0xe0] sm:$0xff] %v602_v28  ;;  %635 = vst [vmem:[#allocation2 + $0xe8] sm:$0xff] %v603_v29  ;;  %v605_v31 = vld [vmem:[%s7994_s24 + $0xf8] sm:$0xff] }
 0x13c   : > { %636 = vst [vmem:[#allocation2 + $0xf0] sm:$0xff] %v604_v30  ;;  %637 = vst [vmem:[#allocation2 + $0xf8] sm:$0xff] %v605_v31 }
 0x13d PF: > { %v6629_v32 = vld [vmem:[%s8009_s18 + $0xc] ss:$24 sps:$4 sm:$0xff]   ;;  %v6631_v33 = vld [vmem:[%s8009_s18 + $0x8] ss:$24 sps:$4 sm:$0xff]   ;;  %v6632_v34 = vld [vmem:[%s8009_s18 + $0x3c] ss:$24 sps:$4 sm:$0xff]  }
 0x13e   : > { %1413 = vmatprep.subr.bf16.mxu1 %v6629_v32  ;;  %v6634_v35 = vld [vmem:[%s8009_s18 + $0x38] ss:$24 sps:$4 sm:$0xff]   ;;  %v6635_v36 = vld [vmem:[%s8009_s18 + $0x4] ss:$24 sps:$4 sm:$0xff]   ;;  %v6641_v39 = vld [vmem:[%s8009_s18 + $0x34] ss:$24 sps:$4 sm:$0xff]  }
 0x13f   : > { %1414 = vmatpush1.bf16.msra.mxu1 %v6631_v33  ;;  %v6637_v37 = vld [vmem:[%s8009_s18] ss:$24 sps:$4 sm:$0xff]   ;;  %v6638_v38 = vld [vmem:[%s8009_s18 + $0x6c] ss:$24 sps:$4 sm:$0xff]   ;;  %1300 = vmatprep.subr.bf16.mxu0 %v6635_v36  ;;  %v6643_v40 = vld [vmem:[%s8009_s18 + $0x30] ss:$24 sps:$4 sm:$0xff]  }
 0x140   : > { %1415 = vmatprep.subr.bf16.mxu1 %v6632_v34  ;;  %1301 = vmatpush1.bf16.msra.mxu0 %v6637_v37  ;;  %v6640_v41 = vld [vmem:[%s8009_s18 + $0x68] ss:$24 sps:$4 sm:$0xff]   ;;  %v6644_v42 = vld [vmem:[%s8009_s18 + $0x9c] ss:$24 sps:$4 sm:$0xff]   ;;  %v6646_v45 = vld [vmem:[%s8009_s18 + $0x98] ss:$24 sps:$4 sm:$0xff]  }
 0x141   : > { %1302 = vmatprep.subr.bf16.mxu0 %v6641_v39  ;;  %v6647_v43 = vld [vmem:[%s8009_s18 + $0x64] ss:$24 sps:$4 sm:$0xff]   ;;  %v6649_v44 = vld [vmem:[%s8009_s18 + $0x60] ss:$24 sps:$4 sm:$0xff]   ;;  %v6653_v46 = vld [vmem:[%s8009_s18 + $0x94] ss:$24 sps:$4 sm:$0xff]  }
 0x142   : > { %v6650_v47 = vld [vmem:[%s8009_s18 + $0xcc] ss:$24 sps:$4 sm:$0xff]   ;;  %v6655_v48 = vld [vmem:[%s8009_s18 + $0x90] ss:$24 sps:$4 sm:$0xff]   ;;  %v6656_v51 = vld [vmem:[%s8009_s18 + $0xfc] ss:$24 sps:$4 sm:$0xff]  }
 0x143   : > { %1416 = vmatpush1.bf16.msra.mxu1 %v6634_v35  ;;  %v6652_v49 = vld [vmem:[%s8009_s18 + $0xc8] ss:$24 sps:$4 sm:$0xff]   ;;  %v6659_v50 = vld [vmem:[%s8009_s18 + $0xc4] ss:$24 sps:$4 sm:$0xff]   ;;  %v6658_v53 = vld [vmem:[%s8009_s18 + $0xf8] ss:$24 sps:$4 sm:$0xff]  }
 0x144   : > { %1417 = vmatprep.subr.bf16.mxu1 %v6638_v38  ;;  %1303 = vmatpush1.bf16.msra.mxu0 %v6643_v40  ;;  %v6661_v52 = vld [vmem:[%s8009_s18 + $0xc0] ss:$24 sps:$4 sm:$0xff]   ;;  %v6665_v54 = vld [vmem:[%s8009_s18 + $0xf4] ss:$24 sps:$4 sm:$0xff]   ;;  %v6667_v56 = vld [vmem:[%s8009_s18 + $0xf0] ss:$24 sps:$4 sm:$0xff]  }
 0x145   : > { %1304 = vmatprep.subr.bf16.mxu0 %v6647_v43  ;;  %v6662_v55 = vld [vmem:[%s8009_s18 + $0x12c] ss:$24 sps:$4 sm:$0xff]   ;;  %v6664_v57 = vld [vmem:[%s8009_s18 + $0x128] ss:$24 sps:$4 sm:$0xff]   ;;  %v6668_v59 = vld [vmem:[%s8009_s18 + $0x15c] ss:$24 sps:$4 sm:$0xff]  }
 0x146   : > { %v6671_v58 = vld [vmem:[%s8009_s18 + $0x124] ss:$24 sps:$4 sm:$0xff]   ;;  %v6673_v60 = vld [vmem:[%s8009_s18 + $0x120] ss:$24 sps:$4 sm:$0xff]   ;;  %v6677_v62 = vld [vmem:[%s8009_s18 + $0x154] ss:$24 sps:$4 sm:$0xff]  }
 0x147   : > { %1418 = vmatpush1.bf16.msra.mxu1 %v6640_v41  ;;  %v6670_v61 = vld [vmem:[%s8009_s18 + $0x158] ss:$24 sps:$4 sm:$0xff]   ;;  %v6674_v63 = vld [vmem:[%s8009_s18 + $0x18c] ss:$24 sps:$4 sm:$0xff]   ;;  %v6676_v1 = vld [vmem:[%s8009_s18 + $0x188] ss:$24 sps:$4 sm:$0xff]  }
 0x148   : > { %1419 = vmatprep.subr.bf16.mxu1 %v6644_v42  ;;  %1305 = vmatpush1.bf16.msra.mxu0 %v6649_v44  ;;  %v6679_v0 = vld [vmem:[%s8009_s18 + $0x150] ss:$24 sps:$4 sm:$0xff]   ;;  %v6683_v2 = vld [vmem:[%s8009_s18 + $0x184] ss:$24 sps:$4 sm:$0xff]   ;;  %v6685_v4 = vld [vmem:[%s8009_s18 + $0x180] ss:$24 sps:$4 sm:$0xff]  }
 0x149   : > { %1306 = vmatprep.subr.bf16.mxu0 %v6653_v46  ;;  %v6680_v3 = vld [vmem:[%s8009_s18 + $0x1bc] ss:$24 sps:$4 sm:$0xff]   ;;  %v6682_v5 = vld [vmem:[%s8009_s18 + $0x1b8] ss:$24 sps:$4 sm:$0xff]   ;;  %v6686_v7 = vld [vmem:[%s8009_s18 + $0x1ec] ss:$24 sps:$4 sm:$0xff]  }
 0x14a   : > { %v6689_v6 = vld [vmem:[%s8009_s18 + $0x1b4] ss:$24 sps:$4 sm:$0xff]   ;;  %v6691_v8 = vld [vmem:[%s8009_s18 + $0x1b0] ss:$24 sps:$4 sm:$0xff]   ;;  %v6695_v10 = vld [vmem:[%s8009_s18 + $0x1e4] ss:$24 sps:$4 sm:$0xff]  }
 0x14b   : > { %1420 = vmatpush1.bf16.msra.mxu1 %v6646_v45  ;;  %v6688_v9 = vld [vmem:[%s8009_s18 + $0x1e8] ss:$24 sps:$4 sm:$0xff]   ;;  %v6692_v11 = vld [vmem:[%s8009_s18 + $0x21c] ss:$24 sps:$4 sm:$0xff]   ;;  %v6694_v16 = vld [vmem:[%s8009_s18 + $0x218] ss:$24 sps:$4 sm:$0xff]  }
 0x14c   : > { %1421 = vmatprep.subr.bf16.mxu1 %v6650_v47  ;;  %1307 = vmatpush1.bf16.msra.mxu0 %v6655_v48  ;;  %v639_v12 = vld [vmem:[#allocation2 + $0x8] sm:$0xff]  ;;  %v641_v13 = vld [vmem:[#allocation2 + $0x18] sm:$0xff]  ;;  %v638_v33 = vld [vmem:[#allocation2] sm:$0xff]  ;;  %vm7542_vm0 = vmmov 0   ;;  %vm2063_vm1 = vcmask 130048   ;;  %s10994_s23 = sld [smem:[#allocation26_spill]] }
 0x14d   : > { %1308 = vmatprep.subr.bf16.mxu0 %v6659_v50  ;;  %v6697_v14 = vld [vmem:[%s8009_s18 + $0x1e0] ss:$24 sps:$4 sm:$0xff]   ;;  %v8111_v15 = vpack.c.bf16 %v641_v13, %v639_v12  ;;  %v6701_v17 = vld [vmem:[%s8009_s18 + $0x214] ss:$24 sps:$4 sm:$0xff]   ;;  %v6703_v19 = vld [vmem:[%s8009_s18 + $0x210] ss:$24 sps:$4 sm:$0xff]  }
 0x14e   : > { %v6698_v18 = vld [vmem:[%s8009_s18 + $0x24c] ss:$24 sps:$4 sm:$0xff]   ;;  %v6700_v20 = vld [vmem:[%s8009_s18 + $0x248] ss:$24 sps:$4 sm:$0xff]   ;;  %v6704_v22 = vld [vmem:[%s8009_s18 + $0x27c] ss:$24 sps:$4 sm:$0xff]  }
 0x14f   : > { %1422 = vmatpush1.bf16.msra.mxu1 %v6652_v49  ;;  %1445 = vmatprep.mubr.bf16.mxu1 %v8111_v15  ;;  %v6707_v21 = vld [vmem:[%s8009_s18 + $0x244] ss:$24 sps:$4 sm:$0xff]   ;;  %v6709_v23 = vld [vmem:[%s8009_s18 + $0x240] ss:$24 sps:$4 sm:$0xff]   ;;  %v6713_v25 = vld [vmem:[%s8009_s18 + $0x274] ss:$24 sps:$4 sm:$0xff]  }
 0x150   : > { %1423 = vmatprep.subr.bf16.mxu1 %v6656_v51  ;;  %1309 = vmatpush1.bf16.msra.mxu0 %v6661_v52  ;;  %v6706_v24 = vld [vmem:[%s8009_s18 + $0x278] ss:$24 sps:$4 sm:$0xff]   ;;  %v6710_v26 = vld [vmem:[%s8009_s18 + $0x2ac] ss:$24 sps:$4 sm:$0xff]   ;;  %v6712_v27 = vld [vmem:[%s8009_s18 + $0x2a8] ss:$24 sps:$4 sm:$0xff]  }
 0x151   : > { %1310 = vmatprep.subr.bf16.mxu0 %v6665_v54  ;;  %1332 = vmatprep.mubr.bf16.mxu0 %v8111_v15  ;;  %v6715_v28 = vld [vmem:[%s8009_s18 + $0x270] ss:$24 sps:$4 sm:$0xff]   ;;  %v6716_v29 = vld [vmem:[%s8009_s18 + $0x2dc] ss:$24 sps:$4 sm:$0xff]   ;;  %v6721_v31 = vld [vmem:[%s8009_s18 + $0x2a0] ss:$24 sps:$4 sm:$0xff]  }
 0x152   : > { %v6719_v30 = vld [vmem:[%s8009_s18 + $0x2a4] ss:$24 sps:$4 sm:$0xff]   ;;  %v6718_v32 = vld [vmem:[%s8009_s18 + $0x2d8] ss:$24 sps:$4 sm:$0xff]   ;;  %v6722_v35 = vld [vmem:[%s8009_s18 + $0x2d4] ss:$24 sps:$4 sm:$0xff]  }
 0x153   : > { %1424 = vmatpush1.bf16.msra.mxu1 %v6658_v53  ;;  %v640_v34 = vld [vmem:[#allocation2 + $0x10] sm:$0xff]  ;;  %v643_v36 = vld [vmem:[#allocation2 + $0x28] sm:$0xff]  ;;  %v645_v37 = vld [vmem:[#allocation2 + $0x38] sm:$0xff]  ;;  %p6175_p12 = scmp.ge.s32.totalorder %s10994_s23, 1 }
 0x154   : > { %1425 = vmatprep.subr.bf16.mxu1 %v6662_v55  ;;  %1311 = vmatpush1.bf16.msra.mxu0 %v6667_v56  ;;  %v6727_v38 = vld [vmem:[%s8009_s18 + $0x14] ss:$24 sps:$4 sm:$0xff]   ;;  %v8134_v39 = vpack.c.bf16 %v640_v34, %v638_v33  ;;  %v6724_v40 = vld [vmem:[%s8009_s18 + $0x2d0] ss:$24 sps:$4 sm:$0xff]   ;;  %v8137_v41 = vpack.c.bf16 %v645_v37, %v643_v36  ;;  %v6730_v43 = vld [vmem:[%s8009_s18 + $0x44] ss:$24 sps:$4 sm:$0xff]  }
 0x155   : > { %1312 = vmatprep.subr.bf16.mxu0 %v6671_v58  ;;  %v6725_v42 = vld [vmem:[%s8009_s18 + $0x10] ss:$24 sps:$4 sm:$0xff]   ;;  %v644_v45 = vld [vmem:[#allocation2 + $0x30] sm:$0xff]  ;;  %v647_v46 = vld [vmem:[#allocation2 + $0x48] sm:$0xff] }
 0x156   : > { %v642_v44 = vld [vmem:[#allocation2 + $0x20] sm:$0xff]  ;;  %v649_v47 = vld [vmem:[#allocation2 + $0x58] sm:$0xff]  ;;  %v6728_v48 = vld [vmem:[%s8009_s18 + $0x40] ss:$24 sps:$4 sm:$0xff]  }
 0x157   : > { %1426 = vmatpush1.bf16.msra.mxu1 %v6664_v57  ;;  %v6733_v49 = vld [vmem:[%s8009_s18 + $0x74] ss:$24 sps:$4 sm:$0xff]   ;;  %v8146_v50 = vpack.c.bf16 %v644_v45, %v642_v44  ;;  %v8149_v51 = vpack.c.bf16 %v649_v47, %v647_v46  ;;  %v6731_v52 = vld [vmem:[%s8009_s18 + $0x70] ss:$24 sps:$4 sm:$0xff]   ;;  %v6736_v53 = vld [vmem:[%s8009_s18 + $0xa4] ss:$24 sps:$4 sm:$0xff]  }
 0x158   : > { %1427 = vmatprep.subr.bf16.mxu1 %v6668_v59  ;;  %1313 = vmatpush1.bf16.msra.mxu0 %v6673_v60  ;;  %v646_v54 = vld [vmem:[#allocation2 + $0x40] sm:$0xff]  ;;  %v648_v55 = vld [vmem:[#allocation2 + $0x50] sm:$0xff]  ;;  %v651_v56 = vld [vmem:[#allocation2 + $0x68] sm:$0xff] }
 0x159   : > { %1314 = vmatprep.subr.bf16.mxu0 %v6677_v62  ;;  %v653_v57 = vld [vmem:[#allocation2 + $0x78] sm:$0xff]  ;;  %v6734_v58 = vld [vmem:[%s8009_s18 + $0xa0] ss:$24 sps:$4 sm:$0xff]   ;;  %v6742_v62 = vld [vmem:[%s8009_s18 + $0x104] ss:$24 sps:$4 sm:$0xff]  }
 0x15a   : > { %v6739_v59 = vld [vmem:[%s8009_s18 + $0xd4] ss:$24 sps:$4 sm:$0xff]   ;;  %v6737_v60 = vld [vmem:[%s8009_s18 + $0xd0] ss:$24 sps:$4 sm:$0xff]   ;;  %v6746_v12 = vld [vmem:[%s8009_s18 + $0x160] ss:$24 sps:$4 sm:$0xff]  }
 0x15b   : > { %1428 = vmatpush1.bf16.msra.mxu1 %v6670_v61  ;;  %v8159_v61 = vpack.c.bf16 %v648_v55, %v646_v54  ;;  %v659_v13 = vld [vmem:[#allocation2 + $0xa8] sm:$0xff]  ;;  %v6763_v36 = vld [vmem:[%s8009_s18 + $0x254] ss:$24 sps:$4 sm:$0xff]   ;;  %v668_v44 = vld [vmem:[#allocation2 + $0xf0] sm:$0xff] }
 0x15c   : > { %1429 = vmatprep.subr.bf16.mxu1 %v6674_v63  ;;  %1315 = vmatpush1.bf16.msra.mxu0 %v6679_v0  ;;  %v8163_v63 = vpack.c.bf16 %v653_v57, %v651_v56  ;;  %v650_v0 = vld [vmem:[#allocation2 + $0x60] sm:$0xff]  ;;  %v6758_v33 = vld [vmem:[%s8009_s18 + $0x220] ss:$24 sps:$4 sm:$0xff]  }
 0x15d   : > { %1316 = vmatprep.subr.bf16.mxu0 %v6683_v2  ;;  %v6740_v2 = vld [vmem:[%s8009_s18 + $0x100] ss:$24 sps:$4 sm:$0xff]   ;;  %v6769_v46 = vld [vmem:[%s8009_s18 + $0x2b4] ss:$24 sps:$4 sm:$0xff]  }
 0x15e   : > { %v667_v34 = vld [vmem:[#allocation2 + $0xe8] sm:$0xff]  ;;  %v678_v54 = vld [vmem:[%s8029_s5] sm:$0xff] }
 0x15f   : > { %1430 = vmatpush1.bf16.msra.mxu1 %v6676_v1  ;;  %v652_v1 = vld [vmem:[#allocation2 + $0x70] sm:$0xff]  ;;  %v679_v55 = vld [vmem:[%s8029_s5 + $0x8] sm:$0xff] }
 0x160   : > { %1431 = vmatprep.subr.bf16.mxu1 %v6680_v3  ;;  %1317 = vmatpush1.bf16.msra.mxu0 %v6685_v4  ;;  %v655_v3 = vld [vmem:[#allocation2 + $0x88] sm:$0xff]  ;;  %v657_v4 = vld [vmem:[#allocation2 + $0x98] sm:$0xff] }
 0x161   : > { %1318 = vmatprep.subr.bf16.mxu0 %v6689_v6  ;;  %v6743_v6 = vld [vmem:[%s8009_s18 + $0x130] ss:$24 sps:$4 sm:$0xff]   ;;  %v6764_v45 = vld [vmem:[%s8009_s18 + $0x280] ss:$24 sps:$4 sm:$0xff]  }
 0x163   : > { %1432 = vmatpush1.bf16.msra.mxu1 %v6682_v5  ;;  %v6745_v5 = vld [vmem:[%s8009_s18 + $0x134] ss:$24 sps:$4 sm:$0xff]  }
 0x164   : > { %1433 = vmatprep.subr.bf16.mxu1 %v6686_v7  ;;  %1319 = vmatpush1.bf16.msra.mxu0 %v6691_v8  ;;  %v8171_v7 = vpack.c.bf16 %v652_v1, %v650_v0  ;;  %v6748_v8 = vld [vmem:[%s8009_s18 + $0x164] ss:$24 sps:$4 sm:$0xff]  }
 0x165   : > { %1320 = vmatprep.subr.bf16.mxu0 %v6695_v10  ;;  %v654_v10 = vld [vmem:[#allocation2 + $0x80] sm:$0xff] }
 0x167   : > { %1434 = vmatpush1.bf16.msra.mxu1 %v6688_v9  ;;  %v8175_v9 = vpack.c.bf16 %v657_v4, %v655_v3 }
 0x168   : > { %1435 = vmatprep.subr.bf16.mxu1 %v6692_v11  ;;  %1321 = vmatpush1.bf16.msra.mxu0 %v6697_v14  ;;  %v656_v11 = vld [vmem:[#allocation2 + $0x90] sm:$0xff]  ;;  %v661_v14 = vld [vmem:[#allocation2 + $0xb8] sm:$0xff] }
 0x169   : > { %1322 = vmatprep.subr.bf16.mxu0 %v6701_v17  ;;  %v6749_v17 = vld [vmem:[%s8009_s18 + $0x190] ss:$24 sps:$4 sm:$0xff]  }
 0x16b   : > { %1436 = vmatpush1.bf16.msra.mxu1 %v6694_v16  ;;  %v6751_v16 = vld [vmem:[%s8009_s18 + $0x194] ss:$24 sps:$4 sm:$0xff]  }
 0x16c   : > { %1437 = vmatprep.subr.bf16.mxu1 %v6698_v18  ;;  %1323 = vmatpush1.bf16.msra.mxu0 %v6703_v19  ;;  %v8183_v18 = vpack.c.bf16 %v656_v11, %v654_v10  ;;  %v6754_v19 = vld [vmem:[%s8009_s18 + $0x1c4] ss:$24 sps:$4 sm:$0xff]  }
 0x16d   : > { %1324 = vmatprep.subr.bf16.mxu0 %v6707_v21  ;;  %v658_v21 = vld [vmem:[#allocation2 + $0xa0] sm:$0xff] }
 0x16f   : > { %1438 = vmatpush1.bf16.msra.mxu1 %v6700_v20  ;;  %v8187_v20 = vpack.c.bf16 %v661_v14, %v659_v13 }
 0x170   : > { %1439 = vmatprep.subr.bf16.mxu1 %v6704_v22  ;;  %1325 = vmatpush1.bf16.msra.mxu0 %v6709_v23  ;;  %v660_v22 = vld [vmem:[#allocation2 + $0xb0] sm:$0xff] }
 0x171   : > { %1326 = vmatprep.subr.bf16.mxu0 %v6713_v25  ;;  %v6752_v23 = vld [vmem:[%s8009_s18 + $0x1c0] ss:$24 sps:$4 sm:$0xff]   ;;  %v665_v25 = vld [vmem:[#allocation2 + $0xd8] sm:$0xff] }
 0x173   : > { %1440 = vmatpush1.bf16.msra.mxu1 %v6706_v24  ;;  %v663_v24 = vld [vmem:[#allocation2 + $0xc8] sm:$0xff] }
 0x174   : > { %1441 = vmatprep.subr.bf16.mxu1 %v6710_v26  ;;  %1327 = vmatpush1.bf16.msra.mxu0 %v6715_v28  ;;  %v6757_v26 = vld [vmem:[%s8009_s18 + $0x1f4] ss:$24 sps:$4 sm:$0xff]   ;;  %v8195_v28 = vpack.c.bf16 %v660_v22, %v658_v21 }
 0x175   : > { %1328 = vmatprep.subr.bf16.mxu0 %v6719_v30  ;;  %v697_v30 = vpack.c.bf16 %v665_v25, %v663_v24 }
 0x177   : > { %1442 = vmatpush1.bf16.msra.mxu1 %v6712_v27  ;;  %v6755_v27 = vld [vmem:[%s8009_s18 + $0x1f0] ss:$24 sps:$4 sm:$0xff]  }
 0x178   : > { %1443 = vmatprep.subr.bf16.mxu1 %v6716_v29  ;;  %1329 = vmatpush1.bf16.msra.mxu0 %v6721_v31  ;;  %v6760_v29 = vld [vmem:[%s8009_s18 + $0x224] ss:$24 sps:$4 sm:$0xff]   ;;  %v662_v31 = vld [vmem:[#allocation2 + $0xc0] sm:$0xff] }
 0x179   : > { %1330 = vmatprep.subr.bf16.mxu0 %v6722_v35  ;;  %v669_v35 = vld [vmem:[#allocation2 + $0xf8] sm:$0xff] }
 0x17b   : > { %1444 = vmatpush1.bf16.msra.mxu1 %v6718_v32  ;;  %v664_v32 = vld [vmem:[#allocation2 + $0xd0] sm:$0xff] }
 0x17c   : > { %6448 = vmatprep.subr.bf16.mxu1 %v6727_v38  ;;  %1331 = vmatpush1.bf16.msra.mxu0 %v6724_v40  ;;  %v696_v37 = vpack.c.bf16 %v664_v32, %v662_v31  ;;  %v6761_v40 = vld [vmem:[%s8009_s18 + $0x250] ss:$24 sps:$4 sm:$0xff]  }
 0x17d   : > { %1526 = vmatprep.subr.bf16.mxu0 %v6727_v38  ;;  %v699_v38 = vpack.c.bf16 %v669_v35, %v667_v34 }
 0x17e   : > { %1446 = vmatmul.mubr.bf16.vlgmr.msra.gmra.mrb[0].mxu1 %v8134_v39 }
 0x17f   : > { %1455 = vmatprep.mubr.bf16.mxu1 %v8137_v41  ;;  %6464 = vmatpush1.bf16.msra.mxu1 %v6725_v42 }
 0x180   : > { %6449 = vmatprep.subr.bf16.mxu1 %v6730_v43  ;;  %1333 = vmatmul.mubr.bf16.vlgmr.msra.gmra.mrb[0].mxu0 %v8134_v39 }
 0x181   : > { %1342 = vmatprep.mubr.bf16.mxu0 %v8137_v41  ;;  %1527 = vmatpush1.bf16.msra.mxu0 %v6725_v42  ;;  %v6766_v42 = vld [vmem:[%s8009_s18 + $0x284] ss:$24 sps:$4 sm:$0xff]  }
 0x182   : > { %1528 = vmatprep.subr.bf16.mxu0 %v6730_v43  ;;  %v666_v43 = vld [vmem:[#allocation2 + $0xe0] sm:$0xff] }
 0x183   : > { %6465 = vmatpush1.bf16.msra.mxu1 %v6728_v48  ;;  %v698_v47 = vpack.c.bf16 %v668_v44, %v666_v43 }
 0x184   : > { %6450 = vmatprep.subr.bf16.mxu1 %v6733_v49 }
 0x185   : > { %1529 = vmatpush1.bf16.msra.mxu0 %v6728_v48  ;;  %v6767_v48 = vld [vmem:[%s8009_s18 + $0x2b0] ss:$24 sps:$4 sm:$0xff]  }
 0x186   : > { %1456 = vmatmul.mubr.bf16.gmra.mrb[4].mxu1 %v8146_v50  ;;  %1530 = vmatprep.subr.bf16.mxu0 %v6733_v49  ;;  %v6772_v49 = vld [vmem:[%s8009_s18 + $0x2e4] ss:$24 sps:$4 sm:$0xff]  }
 0x187   : > { %1465 = vmatprep.mubr.bf16.mxu1 %v8149_v51  ;;  %6466 = vmatpush1.bf16.msra.mxu1 %v6731_v52 }
 0x188   : > { %6451 = vmatprep.subr.bf16.mxu1 %v6736_v53  ;;  %1343 = vmatmul.mubr.bf16.gmra.mrb[4].mxu0 %v8146_v50 }
 0x189   : > { %1352 = vmatprep.mubr.bf16.mxu0 %v8149_v51  ;;  %1531 = vmatpush1.bf16.msra.mxu0 %v6731_v52  ;;  %v6770_v52 = vld [vmem:[%s8009_s18 + $0x2e0] ss:$24 sps:$4 sm:$0xff]  }
 0x18a   : > { %1532 = vmatprep.subr.bf16.mxu0 %v6736_v53  ;;  %v681_v53 = vld [vmem:[%s8029_s5 + $0x18] sm:$0xff] }
 0x18b   : > { %6467 = vmatpush1.bf16.msra.mxu1 %v6734_v58 }
 0x18c   : > { %6452 = vmatprep.subr.bf16.mxu1 %v6739_v59 }
 0x18d   : > { %1533 = vmatpush1.bf16.msra.mxu0 %v6734_v58 }
 0x18e   : > { %1466 = vmatmul.mubr.bf16.gmra.mrb[8].mxu1 %v8159_v61  ;;  %1534 = vmatprep.subr.bf16.mxu0 %v6739_v59 }
 0x18f   : > { %1475 = vmatprep.mubr.bf16.mxu1 %v8163_v63  ;;  %6468 = vmatpush1.bf16.msra.mxu1 %v6737_v60 }
 0x190   : > { %6453 = vmatprep.subr.bf16.mxu1 %v6742_v62  ;;  %1353 = vmatmul.mubr.bf16.gmra.mrb[8].mxu0 %v8159_v61 }
 0x191   : > { %1362 = vmatprep.mubr.bf16.mxu0 %v8163_v63  ;;  %1535 = vmatpush1.bf16.msra.mxu0 %v6737_v60 }
 0x192   : > { %1536 = vmatprep.subr.bf16.mxu0 %v6742_v62 }
 0x193   : > { %6469 = vmatpush1.bf16.msra.mxu1 %v6740_v2 }
 0x194   : > { %6454 = vmatprep.subr.bf16.mxu1 %v6745_v5 }
 0x195   : > { %1537 = vmatpush1.bf16.msra.mxu0 %v6740_v2 }
 0x196   : > { %1476 = vmatmul.mubr.bf16.gmra.mrb[12].mxu1 %v8171_v7  ;;  %1538 = vmatprep.subr.bf16.mxu0 %v6745_v5 }
 0x197   : > { %1485 = vmatprep.mubr.bf16.mxu1 %v8175_v9  ;;  %6470 = vmatpush1.bf16.msra.mxu1 %v6743_v6 }
 0x198   : > { %6455 = vmatprep.subr.bf16.mxu1 %v6748_v8  ;;  %1363 = vmatmul.mubr.bf16.gmra.mrb[12].mxu0 %v8171_v7 }
 0x199   : > { %1372 = vmatprep.mubr.bf16.mxu0 %v8175_v9  ;;  %1539 = vmatpush1.bf16.msra.mxu0 %v6743_v6 }
 0x19a   : > { %1540 = vmatprep.subr.bf16.mxu0 %v6748_v8 }
 0x19b   : > { %6471 = vmatpush1.bf16.msra.mxu1 %v6746_v12 }
 0x19c   : > { %6456 = vmatprep.subr.bf16.mxu1 %v6751_v16 }
 0x19d   : > { %1541 = vmatpush1.bf16.msra.mxu0 %v6746_v12 }
 0x19e   : > { %1486 = vmatmul.mubr.bf16.gmra.mrb[16].mxu1 %v8183_v18  ;;  %1542 = vmatprep.subr.bf16.mxu0 %v6751_v16 }
 0x19f   : > { %1495 = vmatprep.mubr.bf16.mxu1 %v8187_v20  ;;  %6472 = vmatpush1.bf16.msra.mxu1 %v6749_v17 }
 0x1a0   : > { %6457 = vmatprep.subr.bf16.mxu1 %v6754_v19  ;;  %1373 = vmatmul.mubr.bf16.gmra.mrb[16].mxu0 %v8183_v18 }
 0x1a1   : > { %1382 = vmatprep.mubr.bf16.mxu0 %v8187_v20  ;;  %1543 = vmatpush1.bf16.msra.mxu0 %v6749_v17 }
 0x1a2   : > { %1544 = vmatprep.subr.bf16.mxu0 %v6754_v19 }
 0x1a3   : > { %6473 = vmatpush1.bf16.msra.mxu1 %v6752_v23 }
 0x1a4   : > { %6458 = vmatprep.subr.bf16.mxu1 %v6757_v26 }
 0x1a5   : > { %1545 = vmatpush1.bf16.msra.mxu0 %v6752_v23 }
 0x1a6   : > { %1496 = vmatmul.mubr.bf16.gmra.mrb[20].mxu1 %v8195_v28  ;;  %1546 = vmatprep.subr.bf16.mxu0 %v6757_v26 }
 0x1a7   : > { %1505 = vmatprep.mubr.bf16.mxu1 %v697_v30  ;;  %6474 = vmatpush1.bf16.msra.mxu1 %v6755_v27 }
 0x1a8   : > { %6459 = vmatprep.subr.bf16.mxu1 %v6760_v29  ;;  %1383 = vmatmul.mubr.bf16.gmra.mrb[20].mxu0 %v8195_v28 }
 0x1a9   : > { %1392 = vmatprep.mubr.bf16.mxu0 %v697_v30  ;;  %1547 = vmatpush1.bf16.msra.mxu0 %v6755_v27 }
 0x1aa   : > { %1548 = vmatprep.subr.bf16.mxu0 %v6760_v29 }
 0x1ab   : > { %6475 = vmatpush1.bf16.msra.mxu1 %v6758_v33 }
 0x1ac   : > { %6460 = vmatprep.subr.bf16.mxu1 %v6763_v36 }
 0x1ad   : > { %1549 = vmatpush1.bf16.msra.mxu0 %v6758_v33 }
 0x1ae   : > { %1506 = vmatmul.mubr.bf16.gmra.mrb[24].mxu1 %v696_v37  ;;  %1550 = vmatprep.subr.bf16.mxu0 %v6763_v36 }
 0x1af   : > { %1515 = vmatprep.mubr.bf16.mxu1 %v699_v38  ;;  %6476 = vmatpush1.bf16.msra.mxu1 %v6761_v40 }
 0x1b0   : > { %6461 = vmatprep.subr.bf16.mxu1 %v6766_v42  ;;  %1393 = vmatmul.mubr.bf16.gmra.mrb[24].mxu0 %v696_v37 }
 0x1b1   : > { %1402 = vmatprep.mubr.bf16.mxu0 %v699_v38  ;;  %1551 = vmatpush1.bf16.msra.mxu0 %v6761_v40 }
 0x1b2   : > { %1552 = vmatprep.subr.bf16.mxu0 %v6766_v42 }
 0x1b3   : > { %6477 = vmatpush1.bf16.msra.mxu1 %v6764_v45 }
 0x1b4   : > { %6462 = vmatprep.subr.bf16.mxu1 %v6769_v46 }
 0x1b5   : > { %1553 = vmatpush1.bf16.msra.mxu0 %v6764_v45 }
 0x1b6   : > { %1516 = vmatmul.mubr.bf16.gmra.mrb[28].mxu1 %v698_v47  ;;  %1554 = vmatprep.subr.bf16.mxu0 %v6769_v46 }
 0x1b7   : > { %6478 = vmatpush1.bf16.msra.mxu1 %v6767_v48  ;;  %1598 = vmatprep.mubr.bf16.mxu1 %v8175_v9 }
 0x1b8   : > { %6463 = vmatprep.subr.bf16.mxu1 %v6772_v49  ;;  %1403 = vmatmul.mubr.bf16.gmra.mrb[28].mxu0 %v698_v47 }
 0x1b9   : > { %1555 = vmatpush1.bf16.msra.mxu0 %v6767_v48  ;;  %1558 = vmatprep.mubr.bf16.mxu0 %v8111_v15  ;;  %v10800_v15 = vmov 0.0  }
 0x1ba   : > { %1556 = vmatprep.subr.bf16.mxu0 %v6772_v49 }
 0x1bb   : > { %6479 = vmatpush1.bf16.msra.mxu1 %v6770_v52 }
 0x1bc   : > { %6256 = vmatprep.subr.bf16.mxu1 %v10800_v15 }
 0x1bd   : > { %1557 = vmatpush1.bf16.msra.mxu0 %v6770_v52 }
 0x1be   : > { %1599 = vmatmul.mubr.bf16.vlgmr.msra.gmra.mrb[32].mxu1 %v8183_v18  ;;  %6304 = vmatprep.subr.bf16.mxu0 %v10800_v15  ;;  %v8506_v18 = vld [vmem:[%s8002_s21] ss:$0 sm:$0xff] }
 0x1bf   : > { %1608 = vmatprep.mubr.bf16.mxu1 %v8187_v20  ;;  %10922 = vst [vmem:[#allocation59_spill] sm:$0xff] %v8506_v18 }
 0x1c0   : > { %1559 = vmatmul.mubr.bf16.vlgmr.msra.gmra.mrb[32].mxu0 %v8134_v39  ;;  %v796_v39 = vlaneseq }
 0x1c1   : > { %1568 = vmatprep.mubr.bf16.mxu0 %v8137_v41 }
 0x1c2   : > { %v8228_v41 = vshrl.u32 %v796_v39, 7 }
 0x1c4   : > { %10901 = vst [vmem:[#allocation38_spill] sm:$0xff] %v8228_v41 }
 0x1c6   : > { %1609 = vmatmul.mubr.bf16.gmra.mrb[36].mxu1 %v8195_v28 }
 0x1c7   : > { %1618 = vmatprep.mubr.bf16.mxu1 %v697_v30 }
 0x1c8   : > { %1569 = vmatmul.mubr.bf16.gmra.mrb[36].mxu0 %v8146_v50  ;;  %v8231_v50 = vsub.s32 0, %v8228_v41 }
 0x1c9   : > { %1578 = vmatprep.mubr.bf16.mxu0 %v8149_v51  ;;  %v680_v51 = vld [vmem:[%s8029_s5 + $0x10] sm:$0xff] }
 0x1ca   : > { %10902 = vst [vmem:[#allocation39_spill] sm:$0xff] %v8231_v50  ;;  %v8238_v56 = vrot.slane %v680_v51, %v8231_v50  ;;  %v8241_v58 = vrot.slane %v681_v53, %v8231_v50  ;;  %v8244_v59 = vrot.slane %v678_v54, %v8231_v50 }
 0x1ce   : > { %1619 = vmatmul.mubr.bf16.gmra.mrb[40].mxu1 %v696_v37 }
 0x1cf   : > { %1628 = vmatprep.mubr.bf16.mxu1 %v699_v38 }
 0x1d0   : > { %1579 = vmatmul.mubr.bf16.gmra.mrb[40].mxu0 %v8159_v61  ;;  %v8247_v61 = vrot.slane %v679_v55, %v8231_v50 }
 0x1d1   : > { %1588 = vmatprep.mubr.bf16.mxu0 %v8163_v63 }
 0x1d6   : > { %1629 = vmatmul.mubr.bf16.gmra.mrb[44].mxu1 %v698_v47 }
 0x1d7   : > { %6258 = vmatprep.mubr.msk.bf16.mxu1 %vm7542_vm0, %v10800_v15 }
 0x1d8   : > { %1589 = vmatmul.mubr.bf16.gmra.mrb[44].mxu0 %v8171_v7 }
 0x1d9   : > { %6306 = vmatprep.mubr.msk.bf16.mxu0 %vm7542_vm0, %v10800_v15 }
 0x251   : > { %v1447_v57 = vpop.f32.mrb[0].mxu1 }
 0x252   : > { %v1449_v60 = vpop.f32.mrb[1].mxu1  ;;  %v1448_v63 = vadd.f32 %v1447_v57, %v8238_v56 }
 0x253   : > { %v1451_v62 = vpop.f32.mrb[2].mxu1  ;;  %v1334_v2 = vpop.f32.mrb[0].mxu0  ;;  %v8252_v3 = vadd.f32 %v1449_v60, %v8241_v58 }
 0x254   : > { %v1452_v0 = vadd.f32 %v1451_v62, %v8238_v56  ;;  %v1453_v1 = vpop.f32.mrb[3].mxu1  ;;  %v1335_v5 = vadd.f32 %v1334_v2, %v8244_v59  ;;  %v1336_v6 = vpop.f32.mrb[1].mxu0 }
 0x255   : > { %v8255_v4 = vadd.f32 %v1453_v1, %v8241_v58  ;;  %v8259_v8 = vadd.f32 %v1336_v6, %v8247_v61  ;;  %v1338_v9 = vpop.f32.mrb[2].mxu0 }
 0x256   : > { %v1647_v7 = vpack.c.bf16 %v1452_v0, %v1448_v63  ;;  %v1339_v11 = vadd.f32 %v1338_v9, %v8244_v59  ;;  %v1340_v12 = vpop.f32.mrb[3].mxu0 }
 0x257   : > { %v8265_v13 = vadd.f32 %v1340_v12, %v8247_v61 }
 0x258   : > { %6257 = vmatpush3.bf16.xpose.msra.mxu1 %v1647_v7  ;;  %v1639_v16 = vpack.c.bf16 %v1339_v11, %v1335_v5 }
 0x259   : > { %v1457_v14 = vpop.f32.mrb[4].mxu1  ;;  %6262 = vmatprep.subr.bf16.mxu1 %v10800_v15 }
 0x25a   : > { %v1459_v17 = vpop.f32.mrb[5].mxu1  ;;  %v1458_v20 = vadd.f32 %v1457_v14, %v8238_v56 }
 0x25b   : > { %v1461_v19 = vpop.f32.mrb[6].mxu1  ;;  %v1344_v22 = vpop.f32.mrb[4].mxu0  ;;  %v8273_v24 = vadd.f32 %v1459_v17, %v8241_v58 }
 0x25c   : > { %v1462_v21 = vadd.f32 %v1461_v19, %v8238_v56  ;;  %v1463_v23 = vpop.f32.mrb[7].mxu1  ;;  %v1345_v25 = vadd.f32 %v1344_v22, %v8244_v59  ;;  %v1346_v27 = vpop.f32.mrb[5].mxu0 }
 0x25d   : > { %v8277_v26 = vadd.f32 %v1463_v23, %v8241_v58  ;;  %v8280_v29 = vadd.f32 %v1346_v27, %v8247_v61  ;;  %v1348_v30 = vpop.f32.mrb[6].mxu0 }
 0x25e   : > { %v1648_v28 = vpack.c.bf16 %v1462_v21, %v1458_v20  ;;  %v1349_v32 = vadd.f32 %v1348_v30, %v8244_v59  ;;  %v1350_v33 = vpop.f32.mrb[7].mxu0 }
 0x25f   : > { %6259 = vmatmul.mubr.bf16.vlgmr.msra.gmra.mrb[48].mxu1 %v1639_v16  ;;  %v8288_v34 = vadd.f32 %v1350_v33, %v8247_v61 }
 0x260   : > { %6263 = vmatpush3.bf16.xpose.msra.mxu1 %v1648_v28  ;;  %6264 = vmatprep.mubr.msk.bf16.mxu1 %vm7542_vm0, %v10800_v15  ;;  %v1640_v36 = vpack.c.bf16 %v1349_v32, %v1345_v25 }
 0x261   : > { %v1467_v35 = vpop.f32.mrb[8].mxu1  ;;  %6268 = vmatprep.subr.bf16.mxu1 %v10800_v15 }
 0x262   : > { %v1469_v37 = vpop.f32.mrb[9].mxu1  ;;  %v1468_v42 = vadd.f32 %v1467_v35, %v8238_v56 }
 0x263   : > { %v1471_v40 = vpop.f32.mrb[10].mxu1  ;;  %v1354_v44 = vpop.f32.mrb[8].mxu0  ;;  %v8296_v46 = vadd.f32 %v1469_v37, %v8241_v58 }
 0x264   : > { %v1472_v43 = vadd.f32 %v1471_v40, %v8238_v56  ;;  %v1473_v45 = vpop.f32.mrb[11].mxu1  ;;  %v1355_v47 = vadd.f32 %v1354_v44, %v8244_v59  ;;  %v1356_v49 = vpop.f32.mrb[9].mxu0 }
 0x265   : > { %v8300_v48 = vadd.f32 %v1473_v45, %v8241_v58  ;;  %v8303_v39 = vadd.f32 %v1356_v49, %v8247_v61  ;;  %v1358_v51 = vpop.f32.mrb[10].mxu0 }
 0x266   : > { %v1649_v52 = vpack.c.bf16 %v1472_v43, %v1468_v42  ;;  %v1359_v54 = vadd.f32 %v1358_v51, %v8244_v59  ;;  %v1360_v55 = vpop.f32.mrb[11].mxu0 }
 0x267   : > { %6265 = vmatmul.mubr.bf16.vlgmr.msra.gmra.mrb[52].mxu1 %v1640_v36  ;;  %v8311_v57 = vadd.f32 %v1360_v55, %v8247_v61 }
 0x268   : > { %6269 = vmatpush3.bf16.xpose.msra.mxu1 %v1649_v52  ;;  %6270 = vmatprep.mubr.msk.bf16.mxu1 %vm7542_vm0, %v10800_v15  ;;  %v1641_v62 = vpack.c.bf16 %v1359_v54, %v1355_v47 }
 0x269   : > { %v1477_v60 = vpop.f32.mrb[12].mxu1  ;;  %6274 = vmatprep.subr.bf16.mxu1 %v10800_v15 }
 0x26a   : > { %v1479_v63 = vpop.f32.mrb[13].mxu1  ;;  %v1478_v2 = vadd.f32 %v1477_v60, %v8238_v56 }
 0x26b   : > { %v1481_v1 = vpop.f32.mrb[14].mxu1  ;;  %v1364_v6 = vpop.f32.mrb[12].mxu0  ;;  %v8319_v9 = vadd.f32 %v1479_v63, %v8241_v58 }
 0x26c   : > { %v1482_v5 = vadd.f32 %v1481_v1, %v8238_v56  ;;  %v1483_v7 = vpop.f32.mrb[15].mxu1  ;;  %v1365_v11 = vadd.f32 %v1364_v6, %v8244_v59  ;;  %v1366_v14 = vpop.f32.mrb[13].mxu0 }
 0x26d   : > { %v8323_v12 = vadd.f32 %v1483_v7, %v8241_v58  ;;  %v8326_v17 = vadd.f32 %v1366_v14, %v8247_v61  ;;  %v1368_v19 = vpop.f32.mrb[14].mxu0 }
 0x26e   : > { %v1650_v16 = vpack.c.bf16 %v1482_v5, %v1478_v2  ;;  %v1369_v21 = vadd.f32 %v1368_v19, %v8244_v59  ;;  %v1370_v22 = vpop.f32.mrb[15].mxu0 }
 0x26f   : > { %6271 = vmatmul.mubr.bf16.vlgmr.msra.gmra.mrb[56].mxu1 %v1641_v62  ;;  %v8334_v23 = vadd.f32 %v1370_v22, %v8247_v61 }
 0x270   : > { %6275 = vmatpush3.bf16.xpose.msra.mxu1 %v1650_v16  ;;  %6276 = vmatprep.mubr.msk.bf16.mxu1 %vm7542_vm0, %v10800_v15  ;;  %v1642_v27 = vpack.c.bf16 %v1369_v21, %v1365_v11 }
 0x271   : > { %v1487_v25 = vpop.f32.mrb[16].mxu1  ;;  %6280 = vmatprep.subr.bf16.mxu1 %v10800_v15 }
 0x272   : > { %v1489_v28 = vpop.f32.mrb[17].mxu1  ;;  %v1488_v33 = vadd.f32 %v1487_v25, %v8238_v56 }
 0x273   : > { %v1491_v32 = vpop.f32.mrb[18].mxu1  ;;  %v1374_v36 = vpop.f32.mrb[16].mxu0  ;;  %v8342_v40 = vadd.f32 %v1489_v28, %v8241_v58 }
 0x274   : > { %v1492_v35 = vadd.f32 %v1491_v32, %v8238_v56  ;;  %v1493_v37 = vpop.f32.mrb[19].mxu1  ;;  %v1375_v42 = vadd.f32 %v1374_v36, %v8244_v59  ;;  %v1376_v44 = vpop.f32.mrb[17].mxu0 }
 0x275   : > { %v8346_v43 = vadd.f32 %v1493_v37, %v8241_v58  ;;  %v8349_v47 = vadd.f32 %v1376_v44, %v8247_v61  ;;  %v1378_v49 = vpop.f32.mrb[18].mxu0 }
 0x276   : > { %v1651_v45 = vpack.c.bf16 %v1492_v35, %v1488_v33  ;;  %v1379_v51 = vadd.f32 %v1378_v49, %v8244_v59  ;;  %v1380_v54 = vpop.f32.mrb[19].mxu0 }
 0x277   : > { %6277 = vmatmul.mubr.bf16.vlgmr.msra.gmra.mrb[60].mxu1 %v1642_v27  ;;  %v8357_v55 = vadd.f32 %v1380_v54, %v8247_v61 }
 0x278   : > { %6281 = vmatpush3.bf16.xpose.msra.mxu1 %v1651_v45  ;;  %6282 = vmatprep.mubr.msk.bf16.mxu1 %vm7542_vm0, %v10800_v15  ;;  %v1643_v62 = vpack.c.bf16 %v1379_v51, %v1375_v42 }
 0x279   : > { %v1497_v60 = vpop.f32.mrb[20].mxu1  ;;  %6286 = vmatprep.subr.bf16.mxu1 %v10800_v15 }
 0x27a   : > { %v1499_v63 = vpop.f32.mrb[21].mxu1  ;;  %v1498_v5 = vadd.f32 %v1497_v60, %v8238_v56 }
 0x27b   : > { %v1501_v2 = vpop.f32.mrb[22].mxu1  ;;  %v1384_v7 = vpop.f32.mrb[20].mxu0  ;;  %v8365_v14 = vadd.f32 %v1499_v63, %v8241_v58 }
 0x27c   : > { %v1502_v6 = vadd.f32 %v1501_v2, %v8238_v56  ;;  %v1503_v11 = vpop.f32.mrb[23].mxu1  ;;  %v1385_v16 = vadd.f32 %v1384_v7, %v8244_v59  ;;  %v1386_v21 = vpop.f32.mrb[21].mxu0 }
 0x27d   : > { %10903 = vst [vmem:[#allocation40_spill] sm:$0xff] %v8365_v14  ;;  %v8369_v19 = vadd.f32 %v1503_v11, %v8241_v58  ;;  %v8372_v25 = vadd.f32 %v1386_v21, %v8247_v61  ;;  %v1388_v27 = vpop.f32.mrb[22].mxu0 }
 0x27e   : > { %v1652_v22 = vpack.c.bf16 %v1502_v6, %v1498_v5  ;;  %v1389_v32 = vadd.f32 %v1388_v27, %v8244_v59  ;;  %v1390_v33 = vpop.f32.mrb[23].mxu0 }
 0x27f   : > { %10904 = vst [vmem:[#allocation41_spill] sm:$0xff] %v8372_v25  ;;  %6283 = vmatmul.mubr.bf16.vlgmr.msra.gmra.mrb[64].mxu1 %v1643_v62  ;;  %v8380_v35 = vadd.f32 %v1390_v33, %v8247_v61 }
 0x280   : > { %6287 = vmatpush3.bf16.xpose.msra.mxu1 %v1652_v22  ;;  %6288 = vmatprep.mubr.msk.bf16.mxu1 %vm7542_vm0, %v10800_v15  ;;  %v1644_v37 = vpack.c.bf16 %v1389_v32, %v1385_v16 }
 0x281   : > { %10905 = vst [vmem:[#allocation42_spill] sm:$0xff] %v8380_v35  ;;  %v1507_v36 = vpop.f32.mrb[24].mxu1  ;;  %6292 = vmatprep.subr.bf16.mxu1 %v10800_v15 }
 0x282   : > { %v1509_v42 = vpop.f32.mrb[25].mxu1  ;;  %v1508_v49 = vadd.f32 %v1507_v36, %v8238_v56 }
 0x283   : > { %v1511_v45 = vpop.f32.mrb[26].mxu1  ;;  %v1394_v54 = vpop.f32.mrb[24].mxu0  ;;  %v8388_v62 = vadd.f32 %v1509_v42, %v8241_v58 }
 0x284   : > { %v1512_v51 = vadd.f32 %v1511_v45, %v8238_v56  ;;  %v1513_v60 = vpop.f32.mrb[27].mxu1  ;;  %v1395_v63 = vadd.f32 %v1394_v54, %v8244_v59  ;;  %v1396_v5 = vpop.f32.mrb[25].mxu0  ;;  %v682_v45 = vld [vmem:[%s8029_s5 + $0x20] sm:$0xff] }
 0x285   : > { %10906 = vst [vmem:[#allocation43_spill] sm:$0xff] %v8388_v62  ;;  %v8392_v2 = vadd.f32 %v1513_v60, %v8241_v58  ;;  %v8395_v7 = vadd.f32 %v1396_v5, %v8247_v61  ;;  %v1398_v11 = vpop.f32.mrb[26].mxu0  ;;  %v683_v5 = vld [vmem:[%s8029_s5 + $0x28] sm:$0xff] }
 0x286   : > { %v1653_v6 = vpack.c.bf16 %v1512_v51, %v1508_v49  ;;  %v1399_v21 = vadd.f32 %v1398_v11, %v8244_v59  ;;  %v1400_v22 = vpop.f32.mrb[27].mxu0 }
 0x287   : > { %10907 = vst [vmem:[#allocation44_spill] sm:$0xff] %v8392_v2  ;;  %10908 = vst [vmem:[#allocation45_spill] sm:$0xff] %v8395_v7  ;;  %6289 = vmatmul.mubr.bf16.vlgmr.msra.gmra.mrb[68].mxu1 %v1644_v37  ;;  %v8403_v27 = vadd.f32 %v1400_v22, %v8247_v61 }
 0x288   : > { %6293 = vmatpush3.bf16.xpose.msra.mxu1 %v1653_v6  ;;  %6294 = vmatprep.mubr.msk.bf16.mxu1 %vm7542_vm0, %v10800_v15  ;;  %v1645_v33 = vpack.c.bf16 %v1399_v21, %v1395_v63 }
 0x289   : > { %10909 = vst [vmem:[#allocation46_spill] sm:$0xff] %v8403_v27  ;;  %v1517_v32 = vpop.f32.mrb[28].mxu1  ;;  %6298 = vmatprep.subr.bf16.mxu1 %v10800_v15 }
 0x28a   : > { %v1519_v36 = vpop.f32.mrb[29].mxu1  ;;  %v1518_v49 = vadd.f32 %v1517_v32, %v8238_v56  ;;  %v8423_v32 = vrot.slane %v682_v45, %v8231_v50 }
 0x28b   : > { %v1521_v42 = vpop.f32.mrb[30].mxu1  ;;  %v1404_v54 = vpop.f32.mrb[28].mxu0  ;;  %v8413_v6 = vadd.f32 %v1519_v36, %v8241_v58 }
 0x28c   : > { %v1522_v51 = vadd.f32 %v1521_v42, %v8238_v56  ;;  %v1523_v60 = vpop.f32.mrb[31].mxu1  ;;  %v1405_v63 = vadd.f32 %v1404_v54, %v8244_v59  ;;  %v1406_v11 = vpop.f32.mrb[29].mxu0  ;;  %v8429_v54 = vrot.slane %v683_v5, %v8231_v50 }
 0x28d   : > { %10910 = vst [vmem:[#allocation47_spill] sm:$0xff] %v8413_v6  ;;  %v8417_v21 = vadd.f32 %v1523_v60, %v8241_v58  ;;  %v8420_v37 = vadd.f32 %v1406_v11, %v8247_v61  ;;  %v1408_v44 = vpop.f32.mrb[30].mxu0 }
 0x28e   : > { %v1654_v22 = vpack.c.bf16 %v1522_v51, %v1518_v49  ;;  %v1409_v56 = vadd.f32 %v1408_v44, %v8244_v59  ;;  %v1410_v42 = vpop.f32.mrb[31].mxu0 }
 0x28f   : > { %10911 = vst [vmem:[#allocation48_spill] sm:$0xff] %v8417_v21  ;;  %10912 = vst [vmem:[#allocation49_spill] sm:$0xff] %v8420_v37  ;;  %6295 = vmatmul.mubr.bf16.vlgmr.msra.gmra.mrb[72].mxu1 %v1645_v33  ;;  %v8434_v58 = vadd.f32 %v1410_v42, %v8247_v61 }
 0x290   : > { %6299 = vmatpush3.bf16.xpose.msra.mxu1 %v1654_v22  ;;  %6300 = vmatprep.mubr.msk.bf16.mxu1 %vm7542_vm0, %v10800_v15  ;;  %v1646_v49 = vpack.c.bf16 %v1409_v56, %v1405_v63 }
 0x291   : > { %10913 = vst [vmem:[#allocation50_spill] sm:$0xff] %v8434_v58  ;;  %v1600_v45 = vpop.f32.mrb[32].mxu1  ;;  %6310 = vmatprep.subr.bf16.mxu1 %v10800_v15 }
 0x292   : > { %v8440_v44 = vadd.f32 %v1600_v45, %v8423_v32  ;;  %v1602_v33 = vpop.f32.mrb[33].mxu1 }
 0x293   : > { %v8443_v51 = vadd.f32 %v1602_v33, %v8429_v54  ;;  %v1604_v60 = vpop.f32.mrb[34].mxu1 }
 0x294   : > { %v8446_v5 = vadd.f32 %v1604_v60, %v8423_v32  ;;  %v1606_v61 = vpop.f32.mrb[35].mxu1 }
 0x295   : > { %10914 = vst [vmem:[#allocation51_spill] sm:$0xff] %v8443_v51  ;;  %v8449_v63 = vadd.f32 %v1606_v61, %v8429_v54 }
 0x297   : > { %10915 = vst [vmem:[#allocation52_spill] sm:$0xff] %v8449_v63  ;;  %6301 = vmatmul.mubr.bf16.vlgmr.msra.gmra.mrb[76].mxu1 %v1646_v49 }
 0x298   : > { %6312 = vmatprep.mubr.msk.bf16.mxu1 %vm7542_vm0, %v10800_v15  ;;  %v8517_v15 = vld [vmem:[%s8002_s21 + $0x1] ss:$0 sm:$0xff] }
 0x299   : > { %v1610_v56 = vpop.f32.mrb[36].mxu1  ;;  %10923 = vst [vmem:[#allocation60_spill] sm:$0xff] %v8517_v15 }
 0x29a   : > { %v8458_v42 = vadd.f32 %v1610_v56, %v8423_v32  ;;  %v1612_v45 = vpop.f32.mrb[37].mxu1 }
 0x29b   : > { %v8461_v33 = vadd.f32 %v1612_v45, %v8429_v54  ;;  %v1614_v60 = vpop.f32.mrb[38].mxu1 }
 0x29c   : > { %v8464_v61 = vadd.f32 %v1614_v60, %v8423_v32  ;;  %v1616_v59 = vpop.f32.mrb[39].mxu1 }
 0x29d   : > { %10916 = vst [vmem:[#allocation53_spill] sm:$0xff] %v8461_v33  ;;  %v8467_v49 = vadd.f32 %v1616_v59, %v8429_v54 }
 0x29f   : > { %10917 = vst [vmem:[#allocation54_spill] sm:$0xff] %v8467_v49 }
 0x2a1   : > { %v1620_v56 = vpop.f32.mrb[40].mxu1 }
 0x2a2   : > { %v8474_v16 = vadd.f32 %v1620_v56, %v8423_v32  ;;  %v1622_v45 = vpop.f32.mrb[41].mxu1 }
 0x2a3   : > { %v8477_v28 = vadd.f32 %v1622_v45, %v8429_v54  ;;  %v1624_v60 = vpop.f32.mrb[42].mxu1 }
 0x2a4   : > { %v8480_v1 = vadd.f32 %v1624_v60, %v8423_v32  ;;  %v1626_v59 = vpop.f32.mrb[43].mxu1 }
 0x2a5   : > { %10918 = vst [vmem:[#allocation55_spill] sm:$0xff] %v8477_v28  ;;  %v8483_v30 = vadd.f32 %v1626_v59, %v8429_v54 }
 0x2a7   : > { %10919 = vst [vmem:[#allocation56_spill] sm:$0xff] %v8483_v30 }
 0x2a9   : > { %v1630_v52 = vpop.f32.mrb[44].mxu1 }
 0x2aa   : > { %v8490_v20 = vadd.f32 %v1630_v52, %v8423_v32  ;;  %v1632_v45 = vpop.f32.mrb[45].mxu1 }
 0x2ab   : > { %v8493_v0 = vadd.f32 %v1632_v45, %v8429_v54  ;;  %v1634_v60 = vpop.f32.mrb[46].mxu1 }
 0x2ac   : > { %v8496_v38 = vadd.f32 %v1634_v60, %v8423_v32  ;;  %v1636_v59 = vpop.f32.mrb[47].mxu1 }
 0x2ad   : > { %10920 = vst [vmem:[#allocation57_spill] sm:$0xff] %v8493_v0  ;;  %v8499_v53 = vadd.f32 %v1636_v59, %v8429_v54 }
 0x2af   : > { %10921 = vst [vmem:[#allocation58_spill] sm:$0xff] %v8499_v53 }
 0x332   : > { %v1689_v31 = vpop.f32.mrb[48].mxu1 }
 0x333   : > { %v1983_v45 = vmul.f32 0.088388346, %v1689_v31  ;;  %v6260_v10 = vpop.f32.mrb[49].mxu1 }
 0x334   : > { %v1692_v36 = vpop.f32.mrb[50].mxu1 }
 0x335   : > { %v1984_v60 = vmul.f32 0.088388346, %v1692_v36  ;;  %v8509_v22 = vadd.f32 %v8506_v18, %v1983_v45  ;;  %v6261_v59 = vpop.f32.mrb[51].mxu1 }
 0x337   : > { %v2064_v11 = vsel %vm2063_vm1, %v8509_v22, -inf  ;;  %v8514_v56 = vadd.f32 %v8506_v18, %v1984_v60 }
 0x338   : > { %2065 = vmax.xlane.f32.xlu0 %v2064_v11 }
 0x339   : > { %v2067_v10 = vsel %vm2063_vm1, %v8514_v56, -inf }
 0x33a   : > { %v1730_v52 = vpop.f32.mrb[52].mxu1 }
 0x33b   : > { %v1985_v31 = vmul.f32 0.088388346, %v1730_v52  ;;  %v6266_v36 = vpop.f32.mrb[53].mxu1  ;;  %v8530_v52 = vld [vmem:[%s8002_s21 + $0x2] ss:$0 sm:$0xff] }
 0x33c   : > { %2068 = vmax.xlane.f32.xlu0 %v2067_v10  ;;  %v1733_v45 = vpop.f32.mrb[54].mxu1  ;;  %10924 = vst [vmem:[#allocation61_spill] sm:$0xff] %v8530_v52 }
 0x33d   : > { %v1986_v50 = vmul.f32 0.088388346, %v1733_v45  ;;  %v8522_v59 = vadd.f32 %v8517_v15, %v1985_v31  ;;  %v6267_v41 = vpop.f32.mrb[55].mxu1 }
 0x33f   : > { %v2070_v60 = vsel %vm2063_vm1, %v8522_v59, -inf  ;;  %v8527_v11 = vadd.f32 %v8517_v15, %v1986_v50 }
 0x340   : > { %2071 = vmax.xlane.f32.xlu1 %v2070_v60 }
 0x341   : > { %v2073_v10 = vsel %vm2063_vm1, %v8527_v11, -inf }
 0x342   : > { %v1771_v0 = vpop.f32.mrb[56].mxu1 }
 0x343   : > { %v1987_v53 = vmul.f32 0.088388346, %v1771_v0  ;;  %v6272_v36 = vpop.f32.mrb[57].mxu1 }
 0x344   : > { %2074 = vmax.xlane.f32.xlu1 %v2073_v10  ;;  %v1774_v31 = vpop.f32.mrb[58].mxu1  ;;  %v8545_v10 = vld [vmem:[%s8002_s21 + $0x3] ss:$0 sm:$0xff] }
 0x345   : > { %v1988_v45 = vmul.f32 0.088388346, %v1774_v31  ;;  %v8535_v41 = vadd.f32 %v8530_v52, %v1987_v53  ;;  %v6273_v28 = vpop.f32.mrb[59].mxu1  ;;  %10925 = vst [vmem:[#allocation62_spill] sm:$0xff] %v8545_v10 }
 0x347   : > { %v2076_v50 = vsel %vm2063_vm1, %v8535_v41, -inf  ;;  %v8540_v60 = vadd.f32 %v8530_v52, %v1988_v45 }
 0x348   : > { %2077 = vmax.xlane.f32.xlu0 %v2076_v50 }
 0x349   : > { %v2079_v0 = vsel %vm2063_vm1, %v8540_v60, -inf }
 0x34a   : > { %2080 = vmax.xlane.f32.xlu1 %v2079_v0  ;;  %v1812_v36 = vpop.f32.mrb[60].mxu1 }
 0x34b   : > { %v1989_v31 = vmul.f32 0.088388346, %v1812_v36  ;;  %v6278_v30 = vpop.f32.mrb[61].mxu1 }
 0x34c   : > { %v1815_v53 = vpop.f32.mrb[62].mxu1  ;;  %v8558_v30 = vld [vmem:[%s8002_s21 + $0x4] ss:$0 sm:$0xff] }
 0x34d   : > { %v1990_v33 = vmul.f32 0.088388346, %v1815_v53  ;;  %v8548_v28 = vadd.f32 %v8545_v10, %v1989_v31  ;;  %v6279_v49 = vpop.f32.mrb[63].mxu1  ;;  %10926 = vst [vmem:[#allocation63_spill] sm:$0xff] %v8558_v30 }
 0x34f   : > { %v2082_v45 = vsel %vm2063_vm1, %v8548_v28, -inf  ;;  %v8553_v50 = vadd.f32 %v8545_v10, %v1990_v33 }
 0x350   : > { %2083 = vmax.xlane.f32.xlu0 %v2082_v45 }
 0x351   : > { %v2085_v0 = vsel %vm2063_vm1, %v8553_v50, -inf }
 0x352   : > { %2086 = vmax.xlane.f32.xlu1 %v2085_v0  ;;  %v1853_v36 = vpop.f32.mrb[64].mxu1 }
 0x353   : > { %v1991_v53 = vmul.f32 0.088388346, %v1853_v36  ;;  %v6284_v51 = vpop.f32.mrb[65].mxu1 }
 0x354   : > { %v1856_v31 = vpop.f32.mrb[66].mxu1  ;;  %v8571_v51 = vld [vmem:[%s8002_s21 + $0x5] ss:$0 sm:$0xff] }
 0x355   : > { %v1992_v63 = vmul.f32 0.088388346, %v1856_v31  ;;  %v8561_v49 = vadd.f32 %v8558_v30, %v1991_v53  ;;  %v6285_v52 = vpop.f32.mrb[67].mxu1  ;;  %10927 = vst [vmem:[#allocation64_spill] sm:$0xff] %v8571_v51 }
 0x357   : > { %v2088_v33 = vsel %vm2063_vm1, %v8561_v49, -inf  ;;  %v8566_v45 = vadd.f32 %v8558_v30, %v1992_v63 }
 0x358   : > { %2089 = vmax.xlane.f32.xlu0 %v2088_v33 }
 0x359   : > { %v2091_v0 = vsel %vm2063_vm1, %v8566_v45, -inf }
 0x35a   : > { %2092 = vmax.xlane.f32.xlu1 %v2091_v0  ;;  %v1894_v36 = vpop.f32.mrb[68].mxu1 }
 0x35b   : > { %v1993_v31 = vmul.f32 0.088388346, %v1894_v36  ;;  %v6290_v10 = vpop.f32.mrb[69].mxu1 }
 0x35c   : > { %v1897_v53 = vpop.f32.mrb[70].mxu1  ;;  %v8584_v10 = vld [vmem:[%s8002_s21 + $0x6] ss:$0 sm:$0xff] }
 0x35d   : > { %v1994_v15 = vmul.f32 0.088388346, %v1897_v53  ;;  %v8574_v52 = vadd.f32 %v8571_v51, %v1993_v31  ;;  %v6291_v18 = vpop.f32.mrb[71].mxu1  ;;  %10928 = vst [vmem:[#allocation65_spill] sm:$0xff] %v8584_v10 }
 0x35f   : > { %v2094_v63 = vsel %vm2063_vm1, %v8574_v52, -inf  ;;  %v8579_v33 = vadd.f32 %v8571_v51, %v1994_v15 }
 0x360   : > { %2095 = vmax.xlane.f32.xlu0 %v2094_v63 }
 0x361   : > { %v2097_v0 = vsel %vm2063_vm1, %v8579_v33, -inf }
 0x362   : > { %2098 = vmax.xlane.f32.xlu1 %v2097_v0  ;;  %v1935_v36 = vpop.f32.mrb[72].mxu1 }
 0x363   : > { %v1995_v53 = vmul.f32 0.088388346, %v1935_v36  ;;  %v6296_v30 = vpop.f32.mrb[73].mxu1  ;;  %v8597_v36 = vld [vmem:[%s8002_s21 + $0x7] ss:$0 sm:$0xff] }
 0x364   : > { %v1938_v31 = vpop.f32.mrb[74].mxu1  ;;  %10929 = vst [vmem:[#allocation66_spill] sm:$0xff] %v8597_v36 }
 0x365   : > { %v1996_v37 = vmul.f32 0.088388346, %v1938_v31  ;;  %v8587_v18 = vadd.f32 %v8584_v10, %v1995_v53  ;;  %v6297_v58 = vpop.f32.mrb[75].mxu1 }
 0x367   : > { %v2100_v15 = vsel %vm2063_vm1, %v8587_v18, -inf  ;;  %v8592_v63 = vadd.f32 %v8584_v10, %v1996_v37 }
 0x368   : > { %2101 = vmax.xlane.f32.xlu0 %v2100_v15 }
 0x369   : > { %v2103_v0 = vsel %vm2063_vm1, %v8592_v63, -inf }
 0x36a   : > { %2104 = vmax.xlane.f32.xlu1 %v2103_v0  ;;  %v1976_v51 = vpop.f32.mrb[76].mxu1 }
 0x36b   : > { %v1997_v30 = vmul.f32 0.088388346, %v1976_v51  ;;  %v6302_v31 = vpop.f32.mrb[77].mxu1 }
 0x36c   : > { %v1979_v6 = vpop.f32.mrb[78].mxu1 }
 0x36d   : > { %v1998_v53 = vmul.f32 0.088388346, %v1979_v6  ;;  %v8600_v58 = vadd.f32 %v8597_v36, %v1997_v30  ;;  %v6303_v21 = vpop.f32.mrb[79].mxu1 }
 0x36f   : > { %v2106_v37 = vsel %vm2063_vm1, %v8600_v58, -inf  ;;  %v8605_v15 = vadd.f32 %v8597_v36, %v1998_v53 }
 0x370   : > { %2107 = vmax.xlane.f32.xlu0 %v2106_v37 }
 0x371   : > { %v2109_v0 = vsel %vm2063_vm1, %v8605_v15, -inf }
 0x372   : > { %2110 = vmax.xlane.f32.xlu1 %v2109_v0 }
 0x3c5   : > { %v2066_v10 = vpop.xlane.xlu0 %2065 }
 0x3c6   : > { %v2112_v51 = vsub.f32 %v8509_v22, %v2066_v10 }
 0x3c8   : > { %v2128_v31 = vmul.f32 1.442695, %v2112_v51 }
 0x3c9   : > { %v2069_v6 = vpop.xlane.xlu0 %2068 }
 0x3ca   : > { %6917 = vpow2.f32 %v2128_v31  ;;  %v2113_v30 = vsub.f32 %v8514_v56, %v2069_v6 }
 0x3cc   : > { %v2130_v21 = vmul.f32 1.442695, %v2113_v30 }
 0x3cd   : > { %v2072_v7 = vpop.xlane.xlu1 %2071 }
 0x3ce   : > { %6919 = vpow2.f32 %v2130_v21  ;;  %v2114_v27 = vsub.f32 %v8522_v59, %v2072_v7 }
 0x3d0   : > { %v2132_v53 = vmul.f32 1.442695, %v2114_v27 }
 0x3d1   : > { %v2075_v36 = vpop.xlane.xlu1 %2074 }
 0x3d2   : > { %6921 = vpow2.f32 %v2132_v53  ;;  %v2115_v37 = vsub.f32 %v8527_v11, %v2075_v36 }
 0x3d4   : > { %v8613_v25 = vpop.eup %6917  ;;  %v2134_v0 = vmul.f32 1.442695, %v2115_v37 }
 0x3d5   : > { %v2078_v35 = vpop.xlane.xlu0 %2077  ;;  %v2160_v22 = vsel %vm2063_vm1, %v8613_v25, 0.0 }
 0x3d6   : > { %6923 = vpow2.f32 %v2134_v0  ;;  %v2116_v56 = vsub.f32 %v8535_v41, %v2078_v35  ;;  %2161 = vadd.xlane.f32.xlu0 %v2160_v22 }
 0x3d7   : > { %v2081_v10 = vpop.xlane.xlu1 %2080 }
 0x3d8   : > { %v8618_v51 = vpop.eup %6919  ;;  %v2136_v7 = vmul.f32 1.442695, %v2116_v56  ;;  %v2117_v27 = vsub.f32 %v8540_v60, %v2081_v10 }
 0x3d9   : > { %v2163_v59 = vsel %vm2063_vm1, %v8618_v51, 0.0 }
 0x3da   : > { %6925 = vpow2.f32 %v2136_v7  ;;  %v2138_v11 = vmul.f32 1.442695, %v2117_v27  ;;  %2164 = vadd.xlane.f32.xlu1 %v2163_v59 }
 0x3dc   : > { %v8623_v36 = vpop.eup %6921  ;;  %6927 = vpow2.f32 %v2138_v11 }
 0x3dd   : > { %v2084_v31 = vpop.xlane.xlu0 %2083  ;;  %v2166_v35 = vsel %vm2063_vm1, %v8623_v36, 0.0 }
 0x3de   : > { %v2118_v41 = vsub.f32 %v8548_v28, %v2084_v31  ;;  %2167 = vadd.xlane.f32.xlu0 %v2166_v35 }
 0x3df   : > { %v2087_v6 = vpop.xlane.xlu1 %2086 }
 0x3e0   : > { %v8628_v30 = vpop.eup %6923  ;;  %v2140_v60 = vmul.f32 1.442695, %v2118_v41  ;;  %v2119_v21 = vsub.f32 %v8553_v50, %v2087_v6  ;;  %v1560_v6 = vpop.f32.mrb[32].mxu0 }
 0x3e1   : > { %v2169_v53 = vsel %vm2063_vm1, %v8628_v30, 0.0 }
 0x3e2   : > { %6929 = vpow2.f32 %v2140_v60  ;;  %v2142_v37 = vmul.f32 1.442695, %v2119_v21  ;;  %2170 = vadd.xlane.f32.xlu1 %v2169_v53  ;;  %v1562_v21 = vpop.f32.mrb[33].mxu0 }
 0x3e4   : > { %v8633_v0 = vpop.eup %6925  ;;  %6931 = vpow2.f32 %v2142_v37  ;;  %v1564_v37 = vpop.f32.mrb[34].mxu0 }
 0x3e5   : > { %v2090_v22 = vpop.xlane.xlu0 %2089  ;;  %v2172_v28 = vsel %vm2063_vm1, %v8633_v0, 0.0 }
 0x3e6   : > { %v8637_v56 = vpop.eup %6927  ;;  %v2120_v10 = vsub.f32 %v8561_v49, %v2090_v22  ;;  %2173 = vadd.xlane.f32.xlu0 %v2172_v28 }
 0x3e7   : > { %v2093_v7 = vpop.xlane.xlu1 %2092  ;;  %v2175_v50 = vsel %vm2063_vm1, %v8637_v56, 0.0 }
 0x3e8   : > { %v2144_v27 = vmul.f32 1.442695, %v2120_v10  ;;  %v2121_v59 = vsub.f32 %v8566_v45, %v2093_v7  ;;  %2176 = vadd.xlane.f32.xlu1 %v2175_v50  ;;  %v1561_v10 = vadd.f32 %v1560_v6, %v8423_v32  ;;  %v1565_v7 = vadd.f32 %v1564_v37, %v8423_v32 }
 0x3ea   : > { %6933 = vpow2.f32 %v2144_v27  ;;  %v2146_v11 = vmul.f32 1.442695, %v2121_v59  ;;  %v2248_v27 = vpack.c.bf16 %v1565_v7, %v1561_v10 }
 0x3ec   : > { %v8643_v31 = vpop.eup %6929  ;;  %6935 = vpow2.f32 %v2146_v11  ;;  %6305 = vmatpush3.bf16.msra.mxu0 %v2248_v27 }
 0x3ed   : > { %v2096_v35 = vpop.xlane.xlu0 %2095  ;;  %v2178_v41 = vsel %vm2063_vm1, %v8643_v31, 0.0 }
 0x3ee   : > { %v8647_v49 = vpop.eup %6931  ;;  %v2122_v60 = vsub.f32 %v8574_v52, %v2096_v35  ;;  %2179 = vadd.xlane.f32.xlu0 %v2178_v41  ;;  %v1566_v52 = vpop.f32.mrb[35].mxu0 }
 0x3ef   : > { %v2099_v53 = vpop.xlane.xlu1 %2098  ;;  %v2181_v45 = vsel %vm2063_vm1, %v8647_v49, 0.0  ;;  %v1570_v41 = vpop.f32.mrb[36].mxu0 }
 0x3f0   : > { %v2148_v22 = vmul.f32 1.442695, %v2122_v60  ;;  %v2123_v28 = vsub.f32 %v8579_v33, %v2099_v53  ;;  %2182 = vadd.xlane.f32.xlu1 %v2181_v45  ;;  %v10930_v60 = vmov 0.0   ;;  %v1572_v53 = vpop.f32.mrb[37].mxu0  ;;  %v1571_v7 = vadd.f32 %v1570_v41, %v8423_v32 }
 0x3f1   : > { %6316 = vmatprep.subr.bf16.mxu0 %v10930_v60 }
 0x3f2   : > { %6937 = vpow2.f32 %v2148_v22  ;;  %v2150_v50 = vmul.f32 1.442695, %v2123_v28  ;;  %v1574_v22 = vpop.f32.mrb[38].mxu0 }
 0x3f3   : > { %v1576_v27 = vpop.f32.mrb[39].mxu0 }
 0x3f4   : > { %v8655_v59 = vpop.eup %6933  ;;  %6939 = vpow2.f32 %v2150_v50  ;;  %v1575_v50 = vadd.f32 %v1574_v22, %v8423_v32 }
 0x3f5   : > { %v2102_v11 = vpop.xlane.xlu0 %2101  ;;  %v2184_v35 = vsel %vm2063_vm1, %v8655_v59, 0.0 }
 0x3f6   : > { %v8660_v33 = vpop.eup %6935  ;;  %v2124_v6 = vsub.f32 %v8587_v18, %v2102_v11  ;;  %2185 = vadd.xlane.f32.xlu0 %v2184_v35  ;;  %v8669_v18 = vadd.f32 %v1562_v21, %v8429_v54  ;;  %v2249_v11 = vpack.c.bf16 %v1575_v50, %v1571_v7  ;;  %v1580_v35 = vpop.f32.mrb[40].mxu0 }
 0x3f7   : > { %v2105_v45 = vpop.xlane.xlu1 %2104  ;;  %v2187_v37 = vsel %vm2063_vm1, %v8660_v33, 0.0  ;;  %v1582_v2 = vpop.f32.mrb[41].mxu0 }
 0x3f8   : > { %v2152_v28 = vmul.f32 1.442695, %v2124_v6  ;;  %v2125_v10 = vsub.f32 %v8592_v63, %v2105_v45  ;;  %2188 = vadd.xlane.f32.xlu1 %v2187_v37  ;;  %10931 = vst [vmem:[#allocation67_spill] sm:$0xff] %v8669_v18  ;;  %v8674_v6 = vadd.f32 %v1566_v52, %v8429_v54  ;;  %v1584_v63 = vpop.f32.mrb[42].mxu0  ;;  %6311 = vmatpush3.bf16.msra.mxu1 %v2249_v11 }
 0x3f9   : > { %v8679_v37 = vadd.f32 %v1580_v35, %v8423_v32  ;;  %v8682_v21 = vadd.f32 %v1584_v63, %v8423_v32  ;;  %6322 = vmatprep.subr.bf16.mxu1 %v10930_v60  ;;  %v8696_v35 = vadd.f32 %v1572_v53, %v8429_v54  ;;  %v1586_v63 = vpop.f32.mrb[43].mxu0 }
 0x3fa   : > { %6941 = vpow2.f32 %v2152_v28  ;;  %v2154_v62 = vmul.f32 1.442695, %v2125_v10  ;;  %10932 = vst [vmem:[#allocation68_spill] sm:$0xff] %v8674_v6 }
 0x3fb   : > { %v2250_v7 = vpack.c.bf16 %v8682_v21, %v8679_v37 }
 0x3fc   : > { %v8671_v14 = vpop.eup %6937  ;;  %6943 = vpow2.f32 %v2154_v62 }
 0x3fd   : > { %v2108_v41 = vpop.xlane.xlu0 %2107  ;;  %v2190_v45 = vsel %vm2063_vm1, %v8671_v14, 0.0 }
 0x3fe   : > { %v8685_v22 = vpop.eup %6939  ;;  %v2126_v62 = vsub.f32 %v8600_v58, %v2108_v41  ;;  %2191 = vadd.xlane.f32.xlu0 %v2190_v45  ;;  %v8699_v58 = vadd.f32 %v1576_v27, %v8429_v54  ;;  %v1590_v45 = vpop.f32.mrb[44].mxu0 }
 0x3ff   : > { %v2111_v28 = vpop.xlane.xlu1 %2110  ;;  %v2193_v10 = vsel %vm2063_vm1, %v8685_v22, 0.0  ;;  %v1592_v18 = vpop.f32.mrb[45].mxu0  ;;  %v1591_v53 = vadd.f32 %v1590_v45, %v8423_v32 }
 0x400   : > { %v2156_v50 = vmul.f32 1.442695, %v2126_v62  ;;  %v2127_v11 = vsub.f32 %v8605_v15, %v2111_v28  ;;  %2194 = vadd.xlane.f32.xlu1 %v2193_v10  ;;  %v1594_v37 = vpop.f32.mrb[46].mxu0  ;;  %v8714_v28 = vadd.f32 %v1582_v2, %v8429_v54 }
 0x401   : > { %v1595_v27 = vadd.f32 %v1594_v37, %v8423_v32  ;;  %v8730_v37 = vadd.f32 %v1592_v18, %v8429_v54 }
 0x402   : > { %6945 = vpow2.f32 %v2156_v50  ;;  %v2158_v41 = vmul.f32 1.442695, %v2127_v11  ;;  %10933 = vst [vmem:[#allocation69_spill] sm:$0xff] %v8714_v28  ;;  %v8717_v50 = vadd.f32 %v1586_v63, %v8429_v54  ;;  %v1596_v63 = vpop.f32.mrb[47].mxu0 }
 0x403   : > { %v2251_v10 = vpack.c.bf16 %v1595_v27, %v1591_v53 }
 0x404   : > { %v8703_v6 = vpop.eup %6941  ;;  %6947 = vpow2.f32 %v2158_v41  ;;  %10934 = vst [vmem:[#allocation70_spill] sm:$0xff] %v8717_v50 }
 0x405   : > { %v2196_v15 = vsel %vm2063_vm1, %v8703_v6, 0.0 }
 0x406   : > { %v8709_v21 = vpop.eup %6943  ;;  %2197 = vadd.xlane.f32.xlu0 %v2196_v15  ;;  %v8733_v15 = vadd.f32 %v1596_v63, %v8429_v54 }
 0x407   : > { %v2199_v62 = vsel %vm2063_vm1, %v8709_v21, 0.0 }
 0x408   : > { %2200 = vadd.xlane.f32.xlu1 %v2199_v62  ;;  %v3171_v53 = vpack.c.bf16 %v8733_v15, %v8730_v37  ;;  %v10981_v37 = vld [vmem:[#allocation52_spill] sm:$0xff]  ;;  %v10982_v15 = vld [vmem:[#allocation51_spill] sm:$0xff] }
 0x40c   : > { %v8721_v41 = vpop.eup %6945 }
 0x40d   : > { %v2202_v32 = vsel %vm2063_vm1, %v8721_v41, 0.0 }
 0x40e   : > { %v8725_v45 = vpop.eup %6947  ;;  %2203 = vadd.xlane.f32.xlu0 %v2202_v32 }
 0x40f   : > { %v2205_v2 = vsel %vm2063_vm1, %v8725_v45, 0.0 }
 0x410   : > { %2206 = vadd.xlane.f32.xlu1 %v2205_v2 }
 0x463   : > { %v2162_v27 = vpop.xlane.xlu0 %2161 }
 0x464   : > { %6949 = vrcp.f32 %v2162_v27 }
 0x467   : > { %v2165_v62 = vpop.xlane.xlu1 %2164 }
 0x468   : > { %6951 = vrcp.f32 %v2165_v62 }
 0x46b   : > { %v2168_v11 = vpop.xlane.xlu0 %2167 }
 0x46c   : > { %6953 = vrcp.f32 %v2168_v11 }
 0x46e   : > { %v6950_v52 = vpop.eup %6949 }
 0x46f   : > { %v2171_v32 = vpop.xlane.xlu1 %2170  ;;  %v2224_v18 = vmul.f32 %v6950_v52, %v8613_v25 }
 0x470   : > { %6955 = vrcp.f32 %v2171_v32 }
 0x472   : > { %v6952_v2 = vpop.eup %6951 }
 0x473   : > { %v2225_v28 = vmul.f32 %v6952_v2, %v8618_v51  ;;  %v2174_v50 = vpop.xlane.xlu0 %2173 }
 0x474   : > { %6957 = vrcp.f32 %v2174_v50 }
 0x475   : > { %v2240_v54 = vpack.c.bf16 %v2225_v28, %v2224_v18  ;;  %v2177_v63 = vpop.xlane.xlu1 %2176 }
 0x476   : > { %6959 = vrcp.f32 %v2177_v63  ;;  %v6954_v27 = vpop.eup %6953  ;;  %v10935_v63 = vpack.c.bf16 %v8446_v5, %v8440_v44  ;;  %v10936_v44 = vpack.c.bf16 %v8464_v61, %v8458_v42  ;;  %v10937_v42 = vpack.c.bf16 %v8480_v1, %v8474_v16 }
 0x477   : > { %6307 = vmatmul.mubr.msk.bf16.vlgmr.msra.gmra.mrb[48].mxu0 %vm2063_vm1, %v2240_v54  ;;  %v2226_v62 = vmul.f32 %v6954_v27, %v8623_v36  ;;  %v10938_v1 = vpack.c.bf16 %v8496_v38, %v8490_v20 }
 0x478   : > { %6317 = vmatpush3.bf16.msra.mxu0 %v2250_v7  ;;  %6318 = vmatprep.mubr.msk.bf16.mxu0 %vm7542_vm0, %v10930_v60 }
 0x479   : > { %6328 = vmatprep.subr.bf16.mxu0 %v10930_v60 }
 0x47a   : > { %v6956_v11 = vpop.eup %6955 }
 0x47b   : > { %v2227_v25 = vmul.f32 %v6956_v11, %v8628_v30  ;;  %v2180_v51 = vpop.xlane.xlu0 %2179 }
 0x47c   : > { %6961 = vrcp.f32 %v2180_v51 }
 0x47d   : > { %v2183_v52 = vpop.xlane.xlu1 %2182  ;;  %v2241_v28 = vpack.c.bf16 %v2227_v25, %v2226_v62 }
 0x47e   : > { %v6958_v50 = vpop.eup %6957  ;;  %6963 = vrcp.f32 %v2183_v52 }
 0x47f   : > { %6313 = vmatmul.mubr.msk.bf16.vlgmr.msra.gmra.mrb[80].mxu1 %vm2063_vm1, %v2241_v28  ;;  %v2228_v7 = vmul.f32 %v6958_v50, %v8633_v0 }
 0x480   : > { %v6960_v32 = vpop.eup %6959  ;;  %6323 = vmatpush3.bf16.msra.mxu1 %v2251_v10  ;;  %6324 = vmatprep.mubr.msk.bf16.mxu1 %vm7542_vm0, %v10930_v60 }
 0x481   : > { %v2229_v2 = vmul.f32 %v6960_v32, %v8637_v56  ;;  %6334 = vmatprep.subr.bf16.mxu1 %v10930_v60 }
 0x483   : > { %v2186_v36 = vpop.xlane.xlu0 %2185  ;;  %v2242_v30 = vpack.c.bf16 %v2229_v2, %v2228_v7 }
 0x484   : > { %6965 = vrcp.f32 %v2186_v36 }
 0x485   : > { %6319 = vmatmul.mubr.msk.bf16.vlgmr.msra.gmra.mrb[52].mxu0 %vm2063_vm1, %v2242_v30  ;;  %v2189_v18 = vpop.xlane.xlu1 %2188 }
 0x486   : > { %v6962_v54 = vpop.eup %6961  ;;  %6329 = vmatpush3.bf16.msra.mxu0 %v10935_v63  ;;  %6967 = vrcp.f32 %v2189_v18  ;;  %6330 = vmatprep.mubr.msk.bf16.mxu0 %vm7542_vm0, %v10930_v60 }
 0x487   : > { %6340 = vmatprep.subr.bf16.mxu0 %v10930_v60  ;;  %v2230_v56 = vmul.f32 %v6962_v54, %v8643_v31  ;;  %v10939_v54 = vpack.c.bf16 %v8255_v4, %v8252_v3  ;;  %v10941_v3 = vpack.c.bf16 %v8277_v26, %v8273_v24  ;;  %v10942_v4 = vpack.c.bf16 %v8300_v48, %v8296_v46  ;;  %v10949_v46 = vld [vmem:[#allocation40_spill] sm:$0xff] }
 0x488   : > { %v6964_v0 = vpop.eup %6963  ;;  %v10945_v24 = vpack.c.bf16 %v8323_v12, %v8319_v9  ;;  %v10946_v26 = vpack.c.bf16 %v8346_v43, %v8342_v40  ;;  %v10950_v48 = vpack.c.bf16 %v8369_v19, %v10949_v46  ;;  %v10954_v12 = vld [vmem:[#allocation42_spill] sm:$0xff]  ;;  %v10958_v43 = vld [vmem:[#allocation45_spill] sm:$0xff]  ;;  %v10961_v19 = vld [vmem:[#allocation47_spill] sm:$0xff] }
 0x489   : > { %v2231_v10 = vmul.f32 %v6964_v0, %v8647_v49  ;;  %v10957_v40 = vld [vmem:[#allocation46_spill] sm:$0xff]  ;;  %v10964_v0 = vld [vmem:[#allocation67_spill] sm:$0xff] }
 0x48b   : > { %v2192_v27 = vpop.xlane.xlu0 %2191  ;;  %v2243_v11 = vpack.c.bf16 %v2231_v10, %v2230_v56  ;;  %v10966_v10 = vld [vmem:[#allocation50_spill] sm:$0xff] }
 0x48c   : > { %6969 = vrcp.f32 %v2192_v27  ;;  %v10967_v27 = vld [vmem:[#allocation49_spill] sm:$0xff] }
 0x48d   : > { %6325 = vmatmul.mubr.msk.bf16.vlgmr.msra.gmra.mrb[84].mxu1 %vm2063_vm1, %v2243_v11  ;;  %v2195_v62 = vpop.xlane.xlu1 %2194  ;;  %v10968_v11 = vpack.c.bf16 %v10966_v10, %v10967_v27 }
 0x48e   : > { %v6966_v25 = vpop.eup %6965  ;;  %6335 = vmatpush3.bf16.msra.mxu1 %v10936_v44  ;;  %6971 = vrcp.f32 %v2195_v62  ;;  %6336 = vmatprep.mubr.msk.bf16.mxu1 %vm7542_vm0, %v10930_v60  ;;  %v10969_v62 = vpack.c.bf16 %v8699_v58, %v8696_v35 }
 0x48f   : > { %6346 = vmatprep.subr.bf16.mxu1 %v10930_v60  ;;  %v2232_v31 = vmul.f32 %v6966_v25, %v8655_v59 }
 0x490   : > { %v6968_v5 = vpop.eup %6967 }
 0x491   : > { %v2233_v49 = vmul.f32 %v6968_v5, %v8660_v33 }
 0x493   : > { %v2198_v51 = vpop.xlane.xlu0 %2197  ;;  %v2244_v52 = vpack.c.bf16 %v2233_v49, %v2232_v31 }
 0x494   : > { %6973 = vrcp.f32 %v2198_v51 }
 0x495   : > { %6331 = vmatmul.mubr.msk.bf16.vlgmr.msra.gmra.mrb[56].mxu0 %vm2063_vm1, %v2244_v52  ;;  %v2201_v28 = vpop.xlane.xlu1 %2200 }
 0x496   : > { %v6970_v50 = vpop.eup %6969  ;;  %6341 = vmatpush3.bf16.msra.mxu0 %v10937_v42  ;;  %6975 = vrcp.f32 %v2201_v28  ;;  %6342 = vmatprep.mubr.msk.bf16.mxu0 %vm7542_vm0, %v10930_v60 }
 0x497   : > { %6352 = vmatprep.subr.bf16.mxu0 %v10930_v60  ;;  %v2234_v59 = vmul.f32 %v6970_v50, %v8671_v14 }
 0x498   : > { %v6972_v61 = vpop.eup %6971 }
 0x499   : > { %v2235_v33 = vmul.f32 %v6972_v61, %v8685_v22 }
 0x49b   : > { %v2204_v32 = vpop.xlane.xlu0 %2203  ;;  %v2245_v7 = vpack.c.bf16 %v2235_v33, %v2234_v59 }
 0x49c   : > { %6977 = vrcp.f32 %v2204_v32 }
 0x49d   : > { %6337 = vmatmul.mubr.msk.bf16.vlgmr.msra.gmra.mrb[88].mxu1 %vm2063_vm1, %v2245_v7  ;;  %v2207_v2 = vpop.xlane.xlu1 %2206 }
 0x49e   : > { %v6974_v36 = vpop.eup %6973  ;;  %6347 = vmatpush3.bf16.msra.mxu1 %v10938_v1  ;;  %6979 = vrcp.f32 %v2207_v2  ;;  %6348 = vmatprep.mubr.msk.bf16.mxu1 %vm7542_vm0, %v10930_v60 }
 0x49f   : > { %6358 = vmatprep.subr.bf16.mxu1 %v10930_v60  ;;  %v2236_v16 = vmul.f32 %v6974_v36, %v8703_v6 }
 0x4a0   : > { %v6976_v14 = vpop.eup %6975 }
 0x4a1   : > { %v2237_v22 = vmul.f32 %v6976_v14, %v8709_v21  ;;  %v10940_v21 = vpack.c.bf16 %v8265_v13, %v8259_v8  ;;  %v10943_v8 = vpack.c.bf16 %v8288_v34, %v8280_v29  ;;  %v10944_v13 = vpack.c.bf16 %v8311_v57, %v8303_v39  ;;  %v10951_v39 = vld [vmem:[#allocation44_spill] sm:$0xff]  ;;  %v10952_v57 = vld [vmem:[#allocation43_spill] sm:$0xff] }
 0x4a2   : > { %v10947_v29 = vpack.c.bf16 %v8334_v23, %v8326_v17  ;;  %v10948_v34 = vpack.c.bf16 %v8357_v55, %v8349_v47  ;;  %v10953_v9 = vpack.c.bf16 %v10951_v39, %v10952_v57  ;;  %v10955_v17 = vld [vmem:[#allocation41_spill] sm:$0xff]  ;;  %v10959_v47 = vpack.c.bf16 %v10957_v40, %v10958_v43  ;;  %v10960_v55 = vld [vmem:[#allocation48_spill] sm:$0xff] }
 0x4a3   : > { %v2246_v30 = vpack.c.bf16 %v2237_v22, %v2236_v16  ;;  %v10956_v23 = vpack.c.bf16 %v10954_v12, %v10955_v17 }
 0x4a5   : > { %6343 = vmatmul.mubr.msk.bf16.vlgmr.msra.gmra.mrb[60].mxu0 %vm2063_vm1, %v2246_v30 }
 0x4a6   : > { %v6978_v18 = vpop.eup %6977  ;;  %6353 = vmatpush3.bf16.xpose.msra.mxu0 %v10939_v54  ;;  %6354 = vmatprep.mubr.msk.bf16.mxu0 %vm7542_vm0, %v10930_v60 }
 0x4a7   : > { %6364 = vmatprep.subr.bf16.mxu0 %v10930_v60  ;;  %v2238_v20 = vmul.f32 %v6978_v18, %v8721_v41  ;;  %v10962_v41 = vpack.c.bf16 %v10960_v55, %v10961_v19 }
 0x4a8   : > { %v6980_v38 = vpop.eup %6979 }
 0x4a9   : > { %v2239_v6 = vmul.f32 %v6980_v38, %v8725_v45  ;;  %v10963_v45 = vld [vmem:[#allocation68_spill] sm:$0xff] }
 0x4aa   : > { %v10965_v56 = vpack.c.bf16 %v10963_v45, %v10964_v0 }
 0x4ab   : > { %v2247_v63 = vpack.c.bf16 %v2239_v6, %v2238_v20 }
 0x4ad   : > { %6349 = vmatmul.mubr.msk.bf16.vlgmr.msra.gmra.mrb[92].mxu1 %vm2063_vm1, %v2247_v63  ;;  %6355 = vmatmul.mubr.bf16.vlgmr.msra.gmra.mrb[64].mxu0 %v10940_v21 }
 0x4ae   : > { %6359 = vmatpush3.bf16.xpose.msra.mxu1 %v10941_v3  ;;  %6365 = vmatpush3.bf16.xpose.msra.mxu0 %v10942_v4 }
 0x4af   : > { %6360 = vmatprep.mubr.msk.bf16.mxu1 %vm7542_vm0, %v10930_v60  ;;  %6366 = vmatprep.mubr.msk.bf16.mxu0 %vm7542_vm0, %v10930_v60 }
 0x4b0   : > { %6370 = vmatprep.subr.bf16.mxu1 %v10930_v60  ;;  %6376 = vmatprep.subr.bf16.mxu0 %v10930_v60 }
 0x4b5   : > { %6361 = vmatmul.mubr.bf16.vlgmr.msra.gmra.mrb[96].mxu1 %v10943_v8  ;;  %6367 = vmatmul.mubr.bf16.vlgmr.msra.gmra.mrb[68].mxu0 %v10944_v13 }
 0x4b6   : > { %6371 = vmatpush3.bf16.xpose.msra.mxu1 %v10945_v24  ;;  %6377 = vmatpush3.bf16.xpose.msra.mxu0 %v10946_v26 }
 0x4b7   : > { %6372 = vmatprep.mubr.msk.bf16.mxu1 %vm7542_vm0, %v10930_v60  ;;  %6378 = vmatprep.mubr.msk.bf16.mxu0 %vm7542_vm0, %v10930_v60 }
 0x4b8   : > { %6382 = vmatprep.subr.bf16.mxu1 %v10930_v60  ;;  %6388 = vmatprep.subr.bf16.mxu0 %v10930_v60 }
 0x4bd   : > { %6373 = vmatmul.mubr.bf16.vlgmr.msra.gmra.mrb[100].mxu1 %v10947_v29  ;;  %6379 = vmatmul.mubr.bf16.vlgmr.msra.gmra.mrb[72].mxu0 %v10948_v34 }
 0x4be   : > { %6383 = vmatpush3.bf16.xpose.msra.mxu1 %v10950_v48  ;;  %6389 = vmatpush3.bf16.xpose.msra.mxu0 %v10953_v9 }
 0x4bf   : > { %6384 = vmatprep.mubr.msk.bf16.mxu1 %vm7542_vm0, %v10930_v60  ;;  %6390 = vmatprep.mubr.msk.bf16.mxu0 %vm7542_vm0, %v10930_v60 }
 0x4c0   : > { %6394 = vmatprep.subr.bf16.mxu1 %v10930_v60  ;;  %6400 = vmatprep.subr.bf16.mxu0 %v10930_v60 }
 0x4c5   : > { %6385 = vmatmul.mubr.bf16.vlgmr.msra.gmra.mrb[104].mxu1 %v10956_v23  ;;  %6391 = vmatmul.mubr.bf16.vlgmr.msra.gmra.mrb[76].mxu0 %v10959_v47  ;;  %v10970_v23 = vld [vmem:[#allocation59_spill] sm:$0xff] }
 0x4c6   : > { %6395 = vmatpush3.bf16.xpose.msra.mxu1 %v10962_v41  ;;  %6401 = vmatpush3.bf16.msra.mxu0 %v10965_v56 }
 0x4c7   : > { %6396 = vmatprep.mubr.msk.bf16.mxu1 %vm7542_vm0, %v10930_v60  ;;  %6406 = vmatprep.subr.bf16.mxu1 %v10930_v60 }
 0x4c8   : > { %6402 = vmatprep.mubr.msk.bf16.mxu0 %vm7542_vm0, %v10930_v60  ;;  %6412 = vmatprep.subr.bf16.mxu0 %v10930_v60 }
 0x4cd   : > { %6397 = vmatmul.mubr.bf16.vlgmr.msra.gmra.mrb[108].mxu1 %v10968_v11 }
 0x4ce   : > { %6407 = vmatpush3.bf16.msra.mxu1 %v10969_v62  ;;  %6408 = vmatprep.mubr.msk.bf16.mxu1 %vm7542_vm0, %v10930_v60 }
 0x4cf   : > { %6418 = vmatprep.subr.bf16.mxu1 %v10930_v60 }
 0x54a   : > { %v8875_v25 = vpop.f32.mrb[48].mxu0 }
 0x54b   : > { %v6308_v44 = vpop.f32.mrb[49].mxu0 }
 0x54c   : > { %v8877_v5 = vpop.f32.mrb[50].mxu0 }
 0x54d   : > { %v3528_v31 = vpack.c.bf16 %v8877_v5, %v8875_v25  ;;  %v6309_v49 = vpop.f32.mrb[51].mxu0 }
 0x552   : > { %v8881_v51 = vpop.f32.mrb[80].mxu1 }
 0x553   : > { %v6314_v52 = vpop.f32.mrb[81].mxu1 }
 0x554   : > { %v8883_v28 = vpop.f32.mrb[82].mxu1 }
 0x555   : > { %v3530_v35 = vpack.c.bf16 %v8883_v28, %v8881_v51  ;;  %v6315_v58 = vpop.f32.mrb[83].mxu1 }
 0x556   : > { %v10971_v58 = vld [vmem:[#allocation60_spill] sm:$0xff] }
 0x558   : > { %v8887_v50 = vpop.f32.mrb[52].mxu0 }
 0x559   : > { %v6320_v42 = vpop.f32.mrb[53].mxu0 }
 0x55a   : > { %v8889_v61 = vpop.f32.mrb[54].mxu0 }
 0x55b   : > { %v3532_v59 = vpack.c.bf16 %v8889_v61, %v8887_v50  ;;  %v6321_v33 = vpop.f32.mrb[55].mxu0 }
 0x55c   : > { %v10972_v33 = vld [vmem:[#allocation61_spill] sm:$0xff] }
 0x560   : > { %v8893_v32 = vpop.f32.mrb[84].mxu1 }
 0x561   : > { %v6326_v7 = vpop.f32.mrb[85].mxu1 }
 0x562   : > { %v8895_v2 = vpop.f32.mrb[86].mxu1 }
 0x563   : > { %v3534_v36 = vpack.c.bf16 %v8895_v2, %v8893_v32  ;;  %v6327_v1 = vpop.f32.mrb[87].mxu1  ;;  %v10993_v32 = vld [vmem:[#allocation38_spill] sm:$0xff] }
 0x564   : > { %v9198_v2 = vsub.s32 1, %v10993_v32 }
 0x568   : > { %v8899_v14 = vpop.f32.mrb[56].mxu0 }
 0x569   : > { %v6332_v16 = vpop.f32.mrb[57].mxu0 }
 0x56a   : > { %v8901_v22 = vpop.f32.mrb[58].mxu0 }
 0x56b   : > { %v3536_v30 = vpack.c.bf16 %v8901_v22, %v8899_v14  ;;  %v6333_v18 = vpop.f32.mrb[59].mxu0  ;;  %v9208_v22 = vld [vmem:[%s8029_s5 + $0x8] sm:$0xff] }
 0x570   : > { %v8905_v54 = vpop.f32.mrb[88].mxu1 }
 0x571   : > { %v6338_v38 = vpop.f32.mrb[89].mxu1 }
 0x572   : > { %v8907_v20 = vpop.f32.mrb[90].mxu1 }
 0x573   : > { %v3538_v6 = vpack.c.bf16 %v8907_v20, %v8905_v54  ;;  %v6339_v63 = vpop.f32.mrb[91].mxu1 }
 0x578   : > { %v8911_v21 = vpop.f32.mrb[60].mxu0 }
 0x579   : > { %v6344_v3 = vpop.f32.mrb[61].mxu0 }
 0x57a   : > { %v8913_v4 = vpop.f32.mrb[62].mxu0 }
 0x57b   : > { %v3540_v8 = vpack.c.bf16 %v8913_v4, %v8911_v21  ;;  %v6345_v13 = vpop.f32.mrb[63].mxu0 }
 0x580   : > { %v8917_v24 = vpop.f32.mrb[92].mxu1  ;;  %v2658_v26 = vpop.f32.mrb[64].mxu0 }
 0x581   : > { %v2952_v29 = vmul.f32 0.088388346, %v2658_v26  ;;  %v6350_v34 = vpop.f32.mrb[93].mxu1  ;;  %v6356_v46 = vpop.f32.mrb[65].mxu0 }
 0x582   : > { %v8919_v48 = vpop.f32.mrb[94].mxu1  ;;  %v2661_v39 = vpop.f32.mrb[66].mxu0 }
 0x583   : > { %v3542_v57 = vpack.c.bf16 %v8919_v48, %v8917_v24  ;;  %v2953_v9 = vmul.f32 0.088388346, %v2661_v39  ;;  %v6351_v12 = vpop.f32.mrb[95].mxu1  ;;  %v6357_v17 = vpop.f32.mrb[67].mxu0  ;;  %v8924_v40 = vadd.f32 %v10970_v23, %v2952_v29 }
 0x585   : > { %v2984_v43 = vsel %vm2063_vm1, %v8924_v40, -inf  ;;  %v8929_v47 = vadd.f32 %v10970_v23, %v2953_v9 }
 0x586   : > { %2985 = vmax.xlane.f32.xlu0 %v2984_v43 }
 0x587   : > { %v2987_v55 = vsel %vm2063_vm1, %v8929_v47, -inf }
 0x588   : > { %2988 = vmax.xlane.f32.xlu1 %v2987_v55  ;;  %v2699_v19 = vpop.f32.mrb[96].mxu1  ;;  %v2740_v41 = vpop.f32.mrb[68].mxu0 }
 0x589   : > { %v2954_v45 = vmul.f32 0.088388346, %v2699_v19  ;;  %v2956_v0 = vmul.f32 0.088388346, %v2740_v41  ;;  %v6362_v56 = vpop.f32.mrb[97].mxu1  ;;  %v6368_v10 = vpop.f32.mrb[69].mxu0 }
 0x58a   : > { %v2702_v27 = vpop.f32.mrb[98].mxu1  ;;  %v2743_v11 = vpop.f32.mrb[70].mxu0  ;;  %v10973_v19 = vld [vmem:[#allocation62_spill] sm:$0xff] }
 0x58b   : > { %v2955_v62 = vmul.f32 0.088388346, %v2702_v27  ;;  %v2957_v44 = vmul.f32 0.088388346, %v2743_v11  ;;  %v6363_v49 = vpop.f32.mrb[99].mxu1  ;;  %v6369_v52 = vpop.f32.mrb[71].mxu0  ;;  %v8934_v42 = vadd.f32 %v10971_v58, %v2954_v45  ;;  %v8937_v7 = vadd.f32 %v10972_v33, %v2956_v0 }
 0x58c   : > { %v10974_v45 = vld [vmem:[#allocation63_spill] sm:$0xff] }
 0x58d   : > { %v2990_v1 = vsel %vm2063_vm1, %v8934_v42, -inf  ;;  %v8942_v16 = vadd.f32 %v10971_v58, %v2955_v62  ;;  %v8945_v18 = vadd.f32 %v10972_v33, %v2957_v44  ;;  %v2996_v13 = vsel %vm2063_vm1, %v8937_v7, -inf }
 0x58e   : > { %2991 = vmax.xlane.f32.xlu0 %v2990_v1 }
 0x58f   : > { %v2993_v38 = vsel %vm2063_vm1, %v8942_v16, -inf  ;;  %v2999_v12 = vsel %vm2063_vm1, %v8945_v18, -inf }
 0x590   : > { %v2822_v63 = vpop.f32.mrb[72].mxu0  ;;  %2994 = vmax.xlane.f32.xlu1 %v2993_v38  ;;  %v2781_v3 = vpop.f32.mrb[100].mxu1 }
 0x591   : > { %v2960_v26 = vmul.f32 0.088388346, %v2822_v63  ;;  %v2958_v29 = vmul.f32 0.088388346, %v2781_v3  ;;  %v6374_v34 = vpop.f32.mrb[101].mxu1  ;;  %v6380_v46 = vpop.f32.mrb[73].mxu0 }
 0x592   : > { %v2825_v39 = vpop.f32.mrb[74].mxu0  ;;  %2997 = vmax.xlane.f32.xlu0 %v2996_v13  ;;  %v2784_v9 = vpop.f32.mrb[102].mxu1  ;;  %v10975_v46 = vld [vmem:[#allocation64_spill] sm:$0xff] }
 0x593   : > { %v2961_v17 = vmul.f32 0.088388346, %v2825_v39  ;;  %v2959_v23 = vmul.f32 0.088388346, %v2784_v9  ;;  %v6375_v43 = vpop.f32.mrb[103].mxu1  ;;  %v6381_v55 = vpop.f32.mrb[75].mxu0  ;;  %v8954_v41 = vadd.f32 %v10973_v19, %v2958_v29  ;;  %v8957_v0 = vadd.f32 %v10974_v45, %v2960_v26 }
 0x594   : > { %3000 = vmax.xlane.f32.xlu1 %v2999_v12 }
 0x595   : > { %v3002_v56 = vsel %vm2063_vm1, %v8954_v41, -inf  ;;  %v8962_v10 = vadd.f32 %v10973_v19, %v2959_v23  ;;  %v8965_v27 = vadd.f32 %v10974_v45, %v2961_v17  ;;  %v3008_v49 = vsel %vm2063_vm1, %v8957_v0, -inf  ;;  %v10976_v17 = vld [vmem:[#allocation65_spill] sm:$0xff] }
 0x596   : > { %3003 = vmax.xlane.f32.xlu0 %v3002_v56 }
 0x597   : > { %v3005_v11 = vsel %vm2063_vm1, %v8962_v10, -inf  ;;  %v3011_v3 = vsel %vm2063_vm1, %v8965_v27, -inf }
 0x598   : > { %v2904_v62 = vpop.f32.mrb[76].mxu0  ;;  %3006 = vmax.xlane.f32.xlu1 %v3005_v11  ;;  %v2863_v44 = vpop.f32.mrb[104].mxu1 }
 0x599   : > { %v2964_v52 = vmul.f32 0.088388346, %v2904_v62  ;;  %v2962_v58 = vmul.f32 0.088388346, %v2863_v44  ;;  %v6386_v33 = vpop.f32.mrb[105].mxu1  ;;  %v6392_v1 = vpop.f32.mrb[77].mxu0 }
 0x59a   : > { %v2907_v38 = vpop.f32.mrb[78].mxu0  ;;  %3009 = vmax.xlane.f32.xlu0 %v3008_v49  ;;  %v2866_v63 = vpop.f32.mrb[106].mxu1 }
 0x59b   : > { %v2965_v13 = vmul.f32 0.088388346, %v2907_v38  ;;  %v2963_v26 = vmul.f32 0.088388346, %v2866_v63  ;;  %v6387_v29 = vpop.f32.mrb[107].mxu1  ;;  %v6393_v34 = vpop.f32.mrb[79].mxu0  ;;  %v8974_v39 = vadd.f32 %v10975_v46, %v2962_v58  ;;  %v8982_v23 = vadd.f32 %v10976_v17, %v2964_v52 }
 0x59c   : > { %3012 = vmax.xlane.f32.xlu1 %v3011_v3  ;;  %v10977_v58 = vld [vmem:[#allocation66_spill] sm:$0xff] }
 0x59d   : > { %v3014_v9 = vsel %vm2063_vm1, %v8974_v39, -inf  ;;  %v8979_v12 = vadd.f32 %v10975_v46, %v2963_v26  ;;  %v8987_v55 = vadd.f32 %v10976_v17, %v2965_v13  ;;  %v3020_v11 = vsel %vm2063_vm1, %v8982_v23, -inf }
 0x59e   : > { %3015 = vmax.xlane.f32.xlu0 %v3014_v9 }
 0x59f   : > { %v3017_v43 = vsel %vm2063_vm1, %v8979_v12, -inf  ;;  %v3023_v52 = vsel %vm2063_vm1, %v8987_v55, -inf }
 0x5a0   : > { %3018 = vmax.xlane.f32.xlu1 %v3017_v43  ;;  %v2945_v19 = vpop.f32.mrb[108].mxu1 }
 0x5a1   : > { %v2966_v45 = vmul.f32 0.088388346, %v2945_v19  ;;  %v6398_v56 = vpop.f32.mrb[109].mxu1 }
 0x5a2   : > { %3021 = vmax.xlane.f32.xlu0 %v3020_v11  ;;  %v2948_v62 = vpop.f32.mrb[110].mxu1 }
 0x5a3   : > { %v2967_v44 = vmul.f32 0.088388346, %v2948_v62  ;;  %v6399_v49 = vpop.f32.mrb[111].mxu1  ;;  %v8994_v33 = vadd.f32 %v10977_v58, %v2966_v45 }
 0x5a4   : > { %3024 = vmax.xlane.f32.xlu1 %v3023_v52 }
 0x5a5   : > { %v3026_v1 = vsel %vm2063_vm1, %v8994_v33, -inf  ;;  %v8999_v38 = vadd.f32 %v10977_v58, %v2967_v44 }
 0x5a6   : > { %3027 = vmax.xlane.f32.xlu0 %v3026_v1 }
 0x5a7   : > { %v3029_v63 = vsel %vm2063_vm1, %v8999_v38, -inf }
 0x5a8   : > { %3030 = vmax.xlane.f32.xlu1 %v3029_v63 }
 0x613   : > { %v2986_v3 = vpop.xlane.xlu0 %2985 }
 0x614   : > { %v3032_v13 = vsub.f32 %v8924_v40, %v2986_v3 }
 0x615   : > { %v2989_v26 = vpop.xlane.xlu1 %2988 }
 0x616   : > { %v3048_v29 = vmul.f32 1.442695, %v3032_v13  ;;  %v3033_v34 = vsub.f32 %v8929_v47, %v2989_v26 }
 0x618   : > { %6981 = vpow2.f32 %v3048_v29  ;;  %v3050_v46 = vmul.f32 1.442695, %v3033_v34 }
 0x61a   : > { %6983 = vpow2.f32 %v3050_v46 }
 0x61b   : > { %v2992_v9 = vpop.xlane.xlu0 %2991 }
 0x61c   : > { %v3034_v17 = vsub.f32 %v8934_v42, %v2992_v9 }
 0x61d   : > { %v2995_v43 = vpop.xlane.xlu1 %2994 }
 0x61e   : > { %v3052_v19 = vmul.f32 1.442695, %v3034_v17  ;;  %v3035_v45 = vsub.f32 %v8942_v16, %v2995_v43 }
 0x61f   : > { %v2998_v56 = vpop.xlane.xlu0 %2997 }
 0x620   : > { %6985 = vpow2.f32 %v3052_v19  ;;  %v3054_v11 = vmul.f32 1.442695, %v3035_v45  ;;  %v3036_v62 = vsub.f32 %v8937_v7, %v2998_v56 }
 0x621   : > { %v3001_v40 = vpop.xlane.xlu1 %3000 }
 0x622   : > { %v9008_v44 = vpop.eup %6981  ;;  %6987 = vpow2.f32 %v3054_v11  ;;  %v3056_v47 = vmul.f32 1.442695, %v3036_v62  ;;  %v3037_v49 = vsub.f32 %v8945_v18, %v3001_v40 }
 0x623   : > { %v3004_v52 = vpop.xlane.xlu0 %3003  ;;  %v3080_v42 = vsel %vm2063_vm1, %v9008_v44, 0.0 }
 0x624   : > { %v9013_v58 = vpop.eup %6983  ;;  %6989 = vpow2.f32 %v3056_v47  ;;  %v3058_v16 = vmul.f32 1.442695, %v3037_v49  ;;  %v3038_v1 = vsub.f32 %v8954_v41, %v3004_v52  ;;  %3081 = vadd.xlane.f32.xlu0 %v3080_v42 }
 0x625   : > { %v3007_v63 = vpop.xlane.xlu1 %3006  ;;  %v3083_v7 = vsel %vm2063_vm1, %v9013_v58, 0.0 }
 0x626   : > { %6991 = vpow2.f32 %v3058_v16  ;;  %v3060_v3 = vmul.f32 1.442695, %v3038_v1  ;;  %v3039_v13 = vsub.f32 %v8962_v10, %v3007_v63  ;;  %3084 = vadd.xlane.f32.xlu1 %v3083_v7 }
 0x627   : > { %v3010_v18 = vpop.xlane.xlu0 %3009 }
 0x628   : > { %6993 = vpow2.f32 %v3060_v3  ;;  %v3062_v26 = vmul.f32 1.442695, %v3039_v13  ;;  %v3040_v29 = vsub.f32 %v8957_v0, %v3010_v18 }
 0x629   : > { %v3013_v34 = vpop.xlane.xlu1 %3012 }
 0x62a   : > { %v9020_v46 = vpop.eup %6985  ;;  %6995 = vpow2.f32 %v3062_v26  ;;  %v3064_v41 = vmul.f32 1.442695, %v3040_v29  ;;  %v3041_v9 = vsub.f32 %v8965_v27, %v3013_v34 }
 0x62b   : > { %v3016_v17 = vpop.xlane.xlu0 %3015  ;;  %v3086_v43 = vsel %vm2063_vm1, %v9020_v46, 0.0 }
 0x62c   : > { %v9025_v19 = vpop.eup %6987  ;;  %6997 = vpow2.f32 %v3064_v41  ;;  %v3066_v10 = vmul.f32 1.442695, %v3041_v9  ;;  %v3042_v45 = vsub.f32 %v8974_v39, %v3016_v17  ;;  %3087 = vadd.xlane.f32.xlu0 %v3086_v43 }
 0x62d   : > { %v3019_v56 = vpop.xlane.xlu1 %3018  ;;  %v3089_v0 = vsel %vm2063_vm1, %v9025_v19, 0.0 }
 0x62e   : > { %v9030_v11 = vpop.eup %6989  ;;  %6999 = vpow2.f32 %v3066_v10  ;;  %v3068_v62 = vmul.f32 1.442695, %v3042_v45  ;;  %v3043_v27 = vsub.f32 %v8979_v12, %v3019_v56  ;;  %3090 = vadd.xlane.f32.xlu1 %v3089_v0 }
 0x62f   : > { %v3022_v40 = vpop.xlane.xlu0 %3021  ;;  %v3092_v47 = vsel %vm2063_vm1, %v9030_v11, 0.0 }
 0x630   : > { %v9035_v49 = vpop.eup %6991  ;;  %7001 = vpow2.f32 %v3068_v62  ;;  %v3070_v39 = vmul.f32 1.442695, %v3043_v27  ;;  %v3044_v52 = vsub.f32 %v8982_v23, %v3022_v40  ;;  %3093 = vadd.xlane.f32.xlu0 %v3092_v47 }
 0x631   : > { %v3025_v42 = vpop.xlane.xlu1 %3024  ;;  %v3095_v16 = vsel %vm2063_vm1, %v9035_v49, 0.0 }
 0x632   : > { %v9040_v1 = vpop.eup %6993  ;;  %7003 = vpow2.f32 %v3070_v39  ;;  %v3072_v12 = vmul.f32 1.442695, %v3044_v52  ;;  %v3045_v63 = vsub.f32 %v8987_v55, %v3025_v42  ;;  %3096 = vadd.xlane.f32.xlu1 %v3095_v16 }
 0x633   : > { %v3028_v7 = vpop.xlane.xlu0 %3027  ;;  %v3098_v3 = vsel %vm2063_vm1, %v9040_v1, 0.0 }
 0x634   : > { %v9045_v13 = vpop.eup %6995  ;;  %7005 = vpow2.f32 %v3072_v12  ;;  %v3074_v23 = vmul.f32 1.442695, %v3045_v63  ;;  %v3046_v18 = vsub.f32 %v8994_v33, %v3028_v7  ;;  %3099 = vadd.xlane.f32.xlu0 %v3098_v3 }
 0x635   : > { %v3031_v26 = vpop.xlane.xlu1 %3030  ;;  %v3101_v29 = vsel %vm2063_vm1, %v9045_v13, 0.0 }
 0x636   : > { %v9050_v34 = vpop.eup %6997  ;;  %7007 = vpow2.f32 %v3074_v23  ;;  %v3076_v55 = vmul.f32 1.442695, %v3046_v18  ;;  %v3047_v41 = vsub.f32 %v8999_v38, %v3031_v26  ;;  %3102 = vadd.xlane.f32.xlu1 %v3101_v29 }
 0x637   : > { %v3104_v9 = vsel %vm2063_vm1, %v9050_v34, 0.0 }
 0x638   : > { %v9055_v17 = vpop.eup %6999  ;;  %7009 = vpow2.f32 %v3076_v55  ;;  %v3078_v43 = vmul.f32 1.442695, %v3047_v41  ;;  %3105 = vadd.xlane.f32.xlu0 %v3104_v9 }
 0x639   : > { %v3107_v33 = vsel %vm2063_vm1, %v9055_v17, 0.0 }
 0x63a   : > { %v9059_v10 = vpop.eup %7001  ;;  %7011 = vpow2.f32 %v3078_v43  ;;  %3108 = vadd.xlane.f32.xlu1 %v3107_v33 }
 0x63b   : > { %v3110_v45 = vsel %vm2063_vm1, %v9059_v10, 0.0 }
 0x63c   : > { %v9063_v38 = vpop.eup %7003  ;;  %3111 = vadd.xlane.f32.xlu0 %v3110_v45  ;;  %v10978_v45 = vld [vmem:[#allocation70_spill] sm:$0xff] }
 0x63d   : > { %v3113_v56 = vsel %vm2063_vm1, %v9063_v38, 0.0 }
 0x63e   : > { %v9067_v0 = vpop.eup %7005  ;;  %3114 = vadd.xlane.f32.xlu1 %v3113_v56  ;;  %v10979_v56 = vld [vmem:[#allocation69_spill] sm:$0xff] }
 0x63f   : > { %v3116_v62 = vsel %vm2063_vm1, %v9067_v0, 0.0 }
 0x640   : > { %v9071_v27 = vpop.eup %7007  ;;  %3117 = vadd.xlane.f32.xlu0 %v3116_v62  ;;  %v10980_v62 = vpack.c.bf16 %v10978_v45, %v10979_v56 }
 0x641   : > { %v3119_v40 = vsel %vm2063_vm1, %v9071_v27, 0.0 }
 0x642   : > { %v9075_v47 = vpop.eup %7009  ;;  %3120 = vadd.xlane.f32.xlu1 %v3119_v40 }
 0x643   : > { %v3122_v39 = vsel %vm2063_vm1, %v9075_v47, 0.0 }
 0x644   : > { %v9079_v52 = vpop.eup %7011  ;;  %3123 = vadd.xlane.f32.xlu0 %v3122_v39 }
 0x645   : > { %v3125_v42 = vsel %vm2063_vm1, %v9079_v52, 0.0 }
 0x646   : > { %3126 = vadd.xlane.f32.xlu1 %v3125_v42 }
 0x6b1   : > { %v3082_v16 = vpop.xlane.xlu0 %3081 }
 0x6b2   : > { %7013 = vrcp.f32 %v3082_v16 }
 0x6b3   : > { %v3085_v12 = vpop.xlane.xlu1 %3084 }
 0x6b4   : > { %7015 = vrcp.f32 %v3085_v12 }
 0x6b9   : > { %v3088_v63 = vpop.xlane.xlu0 %3087 }
 0x6ba   : > { %7017 = vrcp.f32 %v3088_v63 }
 0x6bb   : > { %v3091_v7 = vpop.xlane.xlu1 %3090 }
 0x6bc   : > { %v7014_v3 = vpop.eup %7013  ;;  %7019 = vrcp.f32 %v3091_v7 }
 0x6bd   : > { %v3094_v23 = vpop.xlane.xlu0 %3093  ;;  %v3144_v26 = vmul.f32 %v7014_v3, %v9008_v44 }
 0x6be   : > { %v7016_v18 = vpop.eup %7015  ;;  %7021 = vrcp.f32 %v3094_v23 }
 0x6bf   : > { %v3145_v29 = vmul.f32 %v7016_v18, %v9013_v58  ;;  %v3097_v55 = vpop.xlane.xlu1 %3096 }
 0x6c0   : > { %7023 = vrcp.f32 %v3097_v55 }
 0x6c1   : > { %v3100_v41 = vpop.xlane.xlu0 %3099  ;;  %v3160_v9 = vpack.c.bf16 %v3145_v29, %v3144_v26 }
 0x6c2   : > { %7025 = vrcp.f32 %v3100_v41 }
 0x6c3   : > { %6403 = vmatmul.mubr.msk.bf16.vlgmr.msra.gmra.mrb[80].mxu0 %vm2063_vm1, %v3160_v9  ;;  %v3103_v43 = vpop.xlane.xlu1 %3102 }
 0x6c4   : > { %v7018_v33 = vpop.eup %7017  ;;  %6413 = vmatpush3.bf16.msra.mxu0 %v10980_v62  ;;  %7027 = vrcp.f32 %v3103_v43  ;;  %6414 = vmatprep.mubr.msk.bf16.mxu0 %vm7542_vm0, %v10930_v60  ;;  %v10984_v62 = vld [vmem:[#allocation54_spill] sm:$0xff] }
 0x6c5   : > { %v3106_v44 = vpop.xlane.xlu0 %3105  ;;  %6424 = vmatprep.subr.bf16.mxu0 %v10930_v60  ;;  %v3146_v40 = vmul.f32 %v7018_v33, %v9020_v46 }
 0x6c6   : > { %v7020_v58 = vpop.eup %7019  ;;  %7029 = vrcp.f32 %v3106_v44  ;;  %v10985_v44 = vld [vmem:[#allocation53_spill] sm:$0xff] }
 0x6c7   : > { %v3147_v39 = vmul.f32 %v7020_v58, %v9025_v19  ;;  %v3109_v42 = vpop.xlane.xlu1 %3108  ;;  %v10986_v58 = vpack.c.bf16 %v10984_v62, %v10985_v44  ;;  %v6799_v62 = vld [vmem:[%s8015_s28 + $0x84] ss:$8 sps:$4 sm:$0xff]   ;;  %v6797_v44 = vld [vmem:[%s8015_s28 + $0x80] ss:$8 sps:$4 sm:$0xff]  }
 0x6c8   : > { %v7022_v16 = vpop.eup %7021  ;;  %7031 = vrcp.f32 %v3109_v42 }
 0x6c9   : > { %v3112_v12 = vpop.xlane.xlu0 %3111  ;;  %v3161_v63 = vpack.c.bf16 %v3147_v39, %v3146_v40  ;;  %v3148_v3 = vmul.f32 %v7022_v16, %v9030_v11  ;;  %v6775_v39 = vld [vmem:[%s8015_s28 + $0x4] ss:$8 sps:$4 sm:$0xff]  }
 0x6ca   : > { %v7024_v7 = vpop.eup %7023  ;;  %7033 = vrcp.f32 %v3112_v12  ;;  %v10987_v12 = vld [vmem:[#allocation56_spill] sm:$0xff] }
 0x6cb   : > { %v3149_v23 = vmul.f32 %v7024_v7, %v9035_v49  ;;  %6409 = vmatmul.mubr.msk.bf16.vlgmr.msra.gmra.mrb[112].mxu1 %vm2063_vm1, %v3161_v63  ;;  %v3115_v18 = vpop.xlane.xlu1 %3114  ;;  %v10988_v63 = vld [vmem:[#allocation55_spill] sm:$0xff] }
 0x6cc   : > { %v7026_v26 = vpop.eup %7025  ;;  %6419 = vmatpush3.bf16.msra.mxu1 %v3171_v53  ;;  %7035 = vrcp.f32 %v3115_v18  ;;  %6420 = vmatprep.mubr.msk.bf16.mxu1 %vm7542_vm0, %v10930_v60  ;;  %v10983_v53 = vpack.c.bf16 %v10981_v37, %v10982_v15  ;;  %v10989_v7 = vpack.c.bf16 %v10987_v12, %v10988_v63  ;;  %v6779_v15 = vld [vmem:[%s8015_s28 + $0x20] ss:$8 sps:$4 sm:$0xff]   ;;  %v6814_v63 = vld [vmem:[%s8015_s28 + $0xd4] ss:$8 sps:$4 sm:$0xff]  }
 0x6cd   : > { %v3118_v46 = vpop.xlane.xlu0 %3117  ;;  %v3162_v19 = vpack.c.bf16 %v3149_v23, %v3148_v3  ;;  %6430 = vmatprep.subr.bf16.mxu1 %v10930_v60  ;;  %v3150_v11 = vmul.f32 %v7026_v26, %v9040_v1  ;;  %v10990_v26 = vld [vmem:[#allocation58_spill] sm:$0xff] }
 0x6ce   : > { %v7028_v29 = vpop.eup %7027  ;;  %7037 = vrcp.f32 %v3118_v46  ;;  %v10991_v46 = vld [vmem:[#allocation57_spill] sm:$0xff]  ;;  %v6809_v12 = vld [vmem:[%s8015_s28 + $0xc0] ss:$8 sps:$4 sm:$0xff]  }
 0x6cf   : > { %v3151_v49 = vmul.f32 %v7028_v29, %v9045_v13  ;;  %6415 = vmatmul.mubr.msk.bf16.vlgmr.msra.gmra.mrb[84].mxu0 %vm2063_vm1, %v3162_v19  ;;  %v3121_v55 = vpop.xlane.xlu1 %3120  ;;  %v10992_v19 = vpack.c.bf16 %v10990_v26, %v10991_v46  ;;  %v6773_v29 = vld [vmem:[%s8015_s28] ss:$8 sps:$4 sm:$0xff]  }
 0x6d0   : > { %v7030_v41 = vpop.eup %7029  ;;  %6425 = vmatpush3.bf16.msra.mxu0 %v10983_v53  ;;  %7039 = vrcp.f32 %v3121_v55  ;;  %6426 = vmatprep.mubr.msk.bf16.mxu0 %vm7542_vm0, %v10930_v60  ;;  %v6787_v53 = vld [vmem:[%s8015_s28 + $0x44] ss:$8 sps:$4 sm:$0xff]  }
 0x6d1   : > { %v3124_v9 = vpop.xlane.xlu0 %3123  ;;  %v3163_v43 = vpack.c.bf16 %v3151_v49, %v3150_v11  ;;  %6436 = vmatprep.subr.bf16.mxu0 %v10930_v60  ;;  %v3152_v13 = vmul.f32 %v7030_v41, %v9050_v34  ;;  %v6778_v49 = vld [vmem:[%s8015_s28 + $0x14] ss:$8 sps:$4 sm:$0xff]   ;;  %v6776_v41 = vld [vmem:[%s8015_s28 + $0x10] ss:$8 sps:$4 sm:$0xff]  }
 0x6d2   : > { %v7032_v1 = vpop.eup %7031  ;;  %7041 = vrcp.f32 %v3124_v9  ;;  %v6785_v9 = vld [vmem:[%s8015_s28 + $0x40] ss:$8 sps:$4 sm:$0xff]  }
 0x6d3   : > { %v3153_v33 = vmul.f32 %v7032_v1, %v9055_v17  ;;  %6421 = vmatmul.mubr.msk.bf16.vlgmr.msra.gmra.mrb[116].mxu1 %vm2063_vm1, %v3163_v43  ;;  %v3127_v45 = vpop.xlane.xlu1 %3126  ;;  %v6790_v43 = vld [vmem:[%s8015_s28 + $0x54] ss:$8 sps:$4 sm:$0xff]   ;;  %v6788_v1 = vld [vmem:[%s8015_s28 + $0x50] ss:$8 sps:$4 sm:$0xff]  }
 0x6d4   : > { %v7034_v56 = vpop.eup %7033  ;;  %6431 = vmatpush3.bf16.msra.mxu1 %v10986_v58  ;;  %7043 = vrcp.f32 %v3127_v45  ;;  %6432 = vmatprep.mubr.msk.bf16.mxu1 %vm7542_vm0, %v10930_v60  ;;  %v6796_v45 = vld [vmem:[%s8015_s28 + $0x74] ss:$8 sps:$4 sm:$0xff]  }
 0x6d5   : > { %v3164_v40 = vpack.c.bf16 %v3153_v33, %v3152_v13  ;;  %6442 = vmatprep.subr.bf16.mxu1 %v10930_v60  ;;  %v3154_v34 = vmul.f32 %v7034_v56, %v9059_v10  ;;  %v6793_v13 = vld [vmem:[%s8015_s28 + $0x64] ss:$8 sps:$4 sm:$0xff]   ;;  %v6791_v33 = vld [vmem:[%s8015_s28 + $0x60] ss:$8 sps:$4 sm:$0xff]   ;;  %v6794_v56 = vld [vmem:[%s8015_s28 + $0x70] ss:$8 sps:$4 sm:$0xff]  }
 0x6d6   : > { %v7036_v42 = vpop.eup %7035  ;;  %v6802_v58 = vld [vmem:[%s8015_s28 + $0x94] ss:$8 sps:$4 sm:$0xff]  }
 0x6d7   : > { %v3155_v17 = vmul.f32 %v7036_v42, %v9063_v38  ;;  %6427 = vmatmul.mubr.msk.bf16.vlgmr.msra.gmra.mrb[88].mxu0 %vm2063_vm1, %v3164_v40  ;;  %v6800_v40 = vld [vmem:[%s8015_s28 + $0x90] ss:$8 sps:$4 sm:$0xff]   ;;  %v6803_v42 = vld [vmem:[%s8015_s28 + $0xa0] ss:$8 sps:$4 sm:$0xff]  }
 0x6d8   : > { %v7038_v16 = vpop.eup %7037  ;;  %6437 = vmatpush3.bf16.msra.mxu0 %v10989_v7  ;;  %6438 = vmatprep.mubr.msk.bf16.mxu0 %vm7542_vm0, %v10930_v60  ;;  %v6812_v7 = vld [vmem:[%s8015_s28 + $0xd0] ss:$8 sps:$4 sm:$0xff]  }
 0x6d9   : > { %v3165_v3 = vpack.c.bf16 %v3155_v17, %v3154_v34  ;;  %3744 = vmatprep.subr.bf16.mxu0 %v6775_v39  ;;  %v3156_v18 = vmul.f32 %v7038_v16, %v9067_v0  ;;  %v6805_v39 = vld [vmem:[%s8015_s28 + $0xa4] ss:$8 sps:$4 sm:$0xff]   ;;  %v6808_v34 = vld [vmem:[%s8015_s28 + $0xb4] ss:$8 sps:$4 sm:$0xff]   ;;  %v6806_v17 = vld [vmem:[%s8015_s28 + $0xb0] ss:$8 sps:$4 sm:$0xff]  }
 0x6da   : > { %v7040_v23 = vpop.eup %7039  ;;  %v6811_v16 = vld [vmem:[%s8015_s28 + $0xc4] ss:$8 sps:$4 sm:$0xff]  }
 0x6db   : > { %v3157_v10 = vmul.f32 %v7040_v23, %v9071_v27  ;;  %6433 = vmatmul.mubr.msk.bf16.vlgmr.msra.gmra.mrb[120].mxu1 %vm2063_vm1, %v3165_v3  ;;  %v6817_v3 = vld [vmem:[%s8015_s28 + $0xe4] ss:$8 sps:$4 sm:$0xff]   ;;  %v6815_v23 = vld [vmem:[%s8015_s28 + $0xe0] ss:$8 sps:$4 sm:$0xff]  }
 0x6dc   : > { %v7042_v38 = vpop.eup %7041  ;;  %6443 = vmatpush3.bf16.msra.mxu1 %v10992_v19  ;;  %6444 = vmatprep.mubr.msk.bf16.mxu1 %vm7542_vm0, %v10930_v60  ;;  %v6781_v60 = vld [vmem:[%s8015_s28 + $0x24] ss:$8 sps:$4 sm:$0xff]  }
 0x6dd   : > { %v3166_v11 = vpack.c.bf16 %v3157_v10, %v3156_v18  ;;  %v3158_v27 = vmul.f32 %v7042_v38, %v9075_v47  ;;  %v6784_v47 = vld [vmem:[%s8015_s28 + $0x34] ss:$8 sps:$4 sm:$0xff]   ;;  %v6818_v10 = vld [vmem:[%s8015_s28 + $0xf0] ss:$8 sps:$4 sm:$0xff]  }
 0x6de   : > { %v7044_v0 = vpop.eup %7043  ;;  %v6820_v18 = vld [vmem:[%s8015_s28 + $0xf4] ss:$8 sps:$4 sm:$0xff]  }
 0x6df   : > { %v3159_v55 = vmul.f32 %v7044_v0, %v9079_v52  ;;  %6439 = vmatmul.mubr.msk.bf16.vlgmr.msra.gmra.mrb[92].mxu0 %vm2063_vm1, %v3166_v11  ;;  %v6782_v52 = vld [vmem:[%s8015_s28 + $0x30] ss:$8 sps:$4 sm:$0xff]  }
 0x6e0   : > { %3745 = vmatpush1.bf16.msra.mxu0 %v6773_v29 }
 0x6e1   : > { %v3167_v37 = vpack.c.bf16 %v3159_v55, %v3158_v27  ;;  %3746 = vmatprep.subr.bf16.mxu0 %v6778_v49 }
 0x6e3   : > { %6445 = vmatmul.mubr.msk.bf16.vlgmr.msra.gmra.mrb[124].mxu1 %vm2063_vm1, %v3167_v37 }
 0x6e4   : > { %3747 = vmatpush1.bf16.msra.mxu0 %v6776_v41 }
 0x6e5   : > { %3748 = vmatprep.subr.bf16.mxu0 %v6781_v60 }
 0x6e8   : > { %3749 = vmatpush1.bf16.msra.mxu0 %v6779_v15 }
 0x6e9   : > { %3750 = vmatprep.subr.bf16.mxu0 %v6784_v47 }
 0x6ec   : > { %3751 = vmatpush1.bf16.msra.mxu0 %v6782_v52 }
 0x6ed   : > { %3752 = vmatprep.subr.bf16.mxu0 %v6787_v53 }
 0x6f0   : > { %3753 = vmatpush1.bf16.msra.mxu0 %v6785_v9 }
 0x6f1   : > { %3754 = vmatprep.subr.bf16.mxu0 %v6790_v43 }
 0x6f4   : > { %3755 = vmatpush1.bf16.msra.mxu0 %v6788_v1 }
 0x6f5   : > { %3756 = vmatprep.subr.bf16.mxu0 %v6793_v13 }
 0x6f8   : > { %3757 = vmatpush1.bf16.msra.mxu0 %v6791_v33 }
 0x6f9   : > { %3758 = vmatprep.subr.bf16.mxu0 %v6796_v45 }
 0x6fc   : > { %3759 = vmatpush1.bf16.msra.mxu0 %v6794_v56 }
 0x6fd   : > { %3760 = vmatprep.subr.bf16.mxu0 %v6799_v62 }
 0x700   : > { %3761 = vmatpush1.bf16.msra.mxu0 %v6797_v44 }
 0x701   : > { %3762 = vmatprep.subr.bf16.mxu0 %v6802_v58 }
 0x704   : > { %3763 = vmatpush1.bf16.msra.mxu0 %v6800_v40 }
 0x705   : > { %3764 = vmatprep.subr.bf16.mxu0 %v6805_v39 }
 0x708   : > { %3765 = vmatpush1.bf16.msra.mxu0 %v6803_v42 }
 0x709   : > { %3766 = vmatprep.subr.bf16.mxu0 %v6808_v34 }
 0x70c   : > { %3767 = vmatpush1.bf16.msra.mxu0 %v6806_v17  ;;  %v7112_v17 = vld [vmem:[#allocation2 + $0x8] sm:$0xff] }
 0x70d   : > { %3768 = vmatprep.subr.bf16.mxu0 %v6811_v16 }
 0x710   : > { %3769 = vmatpush1.bf16.msra.mxu0 %v6809_v12 }
 0x711   : > { %3770 = vmatprep.subr.bf16.mxu0 %v6814_v63  ;;  %v7113_v63 = vld [vmem:[#allocation2 + $0x10] sm:$0xff] }
 0x714   : > { %3771 = vmatpush1.bf16.msra.mxu0 %v6812_v7 }
 0x715   : > { %3772 = vmatprep.subr.bf16.mxu0 %v6817_v3  ;;  %v7114_v3 = vld [vmem:[#allocation2 + $0x18] sm:$0xff] }
 0x718   : > { %3773 = vmatpush1.bf16.msra.mxu0 %v6815_v23 }
 0x719   : > { %3774 = vmatprep.subr.bf16.mxu0 %v6820_v18 }
 0x71c   : > { %3775 = vmatpush1.bf16.msra.mxu0 %v6818_v10 }
 0x796   : > { %v3213_v38 = vpop.f32.mrb[80].mxu0 }
 0x797   : > { %v6404_v26 = vpop.f32.mrb[81].mxu0 }
 0x798   : > { %v3216_v46 = vpop.f32.mrb[82].mxu0 }
 0x799   : > { %v3529_v19 = vpack.c.bf16 %v3216_v46, %v3213_v38  ;;  %v6405_v29 = vpop.f32.mrb[83].mxu0 }
 0x79b   : > { %3776 = vmatprep.mubr.bf16.mxu0 %v3529_v19 }
 0x79c   : > { %3777 = vmatmul.mubr.bf16.vlgmr.msra.gmra.mrb[96].mxu0 %v3528_v31 }
 0x79e   : > { %v3257_v11 = vpop.f32.mrb[112].mxu1 }
 0x79f   : > { %v6410_v49 = vpop.f32.mrb[113].mxu1 }
 0x7a0   : > { %v3260_v0 = vpop.f32.mrb[114].mxu1 }
 0x7a1   : > { %v3531_v27 = vpack.c.bf16 %v3260_v0, %v3257_v11  ;;  %v6411_v55 = vpop.f32.mrb[115].mxu1  ;;  %v7115_v11 = vld [vmem:[#allocation2 + $0x20] sm:$0xff] }
 0x7a2   : > { %v3301_v41 = vpop.f32.mrb[84].mxu0  ;;  %v7116_v55 = vld [vmem:[#allocation2 + $0x28] sm:$0xff] }
 0x7a3   : > { %v6416_v37 = vpop.f32.mrb[85].mxu0  ;;  %3786 = vmatprep.mubr.bf16.mxu0 %v3531_v27 }
 0x7a4   : > { %v3304_v60 = vpop.f32.mrb[86].mxu0  ;;  %3787 = vmatmul.mubr.bf16.gmra.mrb[100].mxu0 %v3530_v35 }
 0x7a5   : > { %v3533_v15 = vpack.c.bf16 %v3304_v60, %v3301_v41  ;;  %v6417_v47 = vpop.f32.mrb[87].mxu0  ;;  %v7117_v60 = vld [vmem:[#allocation2 + $0x30] sm:$0xff] }
 0x7a6   : > { %v3345_v52 = vpop.f32.mrb[116].mxu1  ;;  %v7118_v47 = vld [vmem:[#allocation2 + $0x38] sm:$0xff] }
 0x7a7   : > { %v6422_v53 = vpop.f32.mrb[117].mxu1  ;;  %3796 = vmatprep.mubr.bf16.mxu0 %v3533_v15 }
 0x7a8   : > { %v3348_v25 = vpop.f32.mrb[118].mxu1 }
 0x7a9   : > { %v3535_v5 = vpack.c.bf16 %v3348_v25, %v3345_v52  ;;  %v6423_v31 = vpop.f32.mrb[119].mxu1 }
 0x7aa   : > { %v3389_v9 = vpop.f32.mrb[88].mxu0 }
 0x7ab   : > { %v6428_v43 = vpop.f32.mrb[89].mxu0 }
 0x7ac   : > { %v3392_v1 = vpop.f32.mrb[90].mxu0  ;;  %3797 = vmatmul.mubr.bf16.gmra.mrb[104].mxu0 %v3532_v59 }
 0x7ad   : > { %v3537_v13 = vpack.c.bf16 %v3392_v1, %v3389_v9  ;;  %v6429_v33 = vpop.f32.mrb[91].mxu0  ;;  %3806 = vmatprep.mubr.bf16.mxu0 %v3535_v5 }
 0x7ae   : > { %v3433_v51 = vpop.f32.mrb[120].mxu1 }
 0x7af   : > { %v6434_v28 = vpop.f32.mrb[121].mxu1 }
 0x7b0   : > { %v3436_v35 = vpop.f32.mrb[122].mxu1 }
 0x7b1   : > { %v3539_v45 = vpack.c.bf16 %v3436_v35, %v3433_v51  ;;  %v6435_v56 = vpop.f32.mrb[123].mxu1  ;;  %v7120_v35 = vld [vmem:[#allocation2 + $0x48] sm:$0xff] }
 0x7b2   : > { %v3477_v62 = vpop.f32.mrb[92].mxu0 }
 0x7b3   : > { %v6440_v44 = vpop.f32.mrb[93].mxu0 }
 0x7b4   : > { %v3480_v58 = vpop.f32.mrb[94].mxu0  ;;  %3807 = vmatmul.mubr.bf16.gmra.mrb[108].mxu0 %v3534_v36  ;;  %v9201_v36 = vld [vmem:[%s8029_s5] sm:$0xff] }
 0x7b5   : > { %v3541_v40 = vpack.c.bf16 %v3480_v58, %v3477_v62  ;;  %v6441_v39 = vpop.f32.mrb[95].mxu0  ;;  %3816 = vmatprep.mubr.bf16.mxu0 %v3537_v13  ;;  %v9205_v14 = vrot.slane %v9201_v36, %v9198_v2  ;;  %v7119_v13 = vld [vmem:[#allocation2 + $0x40] sm:$0xff]  ;;  %v7121_v62 = vld [vmem:[#allocation2 + $0x50] sm:$0xff]  ;;  %v7122_v58 = vld [vmem:[#allocation2 + $0x58] sm:$0xff] }
 0x7b6   : > { %v3521_v50 = vpop.f32.mrb[124].mxu1 }
 0x7b7   : > { %v6446_v61 = vpop.f32.mrb[125].mxu1 }
 0x7b8   : > { %v3524_v59 = vpop.f32.mrb[126].mxu1 }
 0x7b9   : > { %v3543_v42 = vpack.c.bf16 %v3524_v59, %v3521_v50  ;;  %v6447_v34 = vpop.f32.mrb[127].mxu1 }
 0x7bc   : > { %3817 = vmatmul.mubr.bf16.gmra.mrb[112].mxu0 %v3536_v30  ;;  %v9212_v30 = vrot.slane %v9208_v22, %v9198_v2 }
 0x7bd   : > { %3826 = vmatprep.mubr.bf16.mxu0 %v3539_v45 }
 0x7c4   : > { %3827 = vmatmul.mubr.bf16.gmra.mrb[116].mxu0 %v3538_v6 }
 0x7c5   : > { %3836 = vmatprep.mubr.bf16.mxu0 %v3541_v40 }
 0x7cc   : > { %3837 = vmatmul.mubr.bf16.gmra.mrb[120].mxu0 %v3540_v8  ;;  %v7111_v8 = vld [vmem:[#allocation2] sm:$0xff] }
 0x7cd   : > { %3846 = vmatprep.mubr.bf16.mxu0 %v3543_v42 }
 0x7d4   : > { %3847 = vmatmul.mubr.bf16.gmra.mrb[124].mxu0 %v3542_v57 }
 0x86f   : > { %v3778_v54 = vpop.f32.mrb[96].mxu0 }
 0x870   : > { %v3779_v20 = vadd.f32 %v3778_v54, %v9205_v14  ;;  %v3780_v6 = vpop.f32.mrb[97].mxu0 }
 0x871   : > { %v3781_v21 = vadd.f32 %v3780_v6, %v9212_v30  ;;  %v3782_v4 = vpop.f32.mrb[98].mxu0 }
 0x872   : > { %v9216_v24 = vadd.f32 %v7111_v8, %v3779_v20  ;;  %v3783_v48 = vadd.f32 %v3782_v4, %v9205_v14  ;;  %v3784_v57 = vpop.f32.mrb[99].mxu0  ;;  %v7123_v20 = vld [vmem:[#allocation2 + $0x60] sm:$0xff]  ;;  %v7124_v8 = vld [vmem:[#allocation2 + $0x68] sm:$0xff] }
 0x873   : > { %v9219_v16 = vadd.f32 %v7112_v17, %v3781_v21  ;;  %v3785_v12 = vadd.f32 %v3784_v57, %v9212_v30  ;;  %v7125_v17 = vld [vmem:[#allocation2 + $0x70] sm:$0xff] }
 0x874   : > { %v9222_v7 = vadd.f32 %v7113_v63, %v3783_v48  ;;  %v7126_v63 = vld [vmem:[#allocation2 + $0x78] sm:$0xff] }
 0x875   : > { %v9224_v23 = vadd.f32 %v7114_v3, %v3785_v12  ;;  %v3889_v18 = vadd.f32 %v9219_v16, %v9216_v24 }
 0x877   : > { %3890 = vadd.xlane.f32.xlu0 %v3889_v18  ;;  %v3788_v10 = vpop.f32.mrb[100].mxu0  ;;  %v3892_v38 = vadd.f32 %v9224_v23, %v9222_v7 }
 0x878   : > { %v3789_v26 = vadd.f32 %v3788_v10, %v9205_v14  ;;  %v3790_v46 = vpop.f32.mrb[101].mxu0 }
 0x879   : > { %v3791_v19 = vadd.f32 %v3790_v46, %v9212_v30  ;;  %3893 = vadd.xlane.f32.xlu1 %v3892_v38  ;;  %v3792_v29 = vpop.f32.mrb[102].mxu0 }
 0x87a   : > { %v9232_v49 = vadd.f32 %v7115_v11, %v3789_v26  ;;  %v3793_v0 = vadd.f32 %v3792_v29, %v9205_v14  ;;  %v3794_v27 = vpop.f32.mrb[103].mxu0  ;;  %v7127_v11 = vld [vmem:[#allocation2 + $0x80] sm:$0xff] }
 0x87b   : > { %v9235_v41 = vadd.f32 %v7116_v55, %v3791_v19  ;;  %v3795_v37 = vadd.f32 %v3794_v27, %v9212_v30 }
 0x87c   : > { %v9238_v15 = vadd.f32 %v7117_v60, %v3793_v0 }
 0x87d   : > { %v9240_v52 = vadd.f32 %v7118_v47, %v3795_v37  ;;  %v3895_v53 = vadd.f32 %v9235_v41, %v9232_v49  ;;  %v7128_v37 = vld [vmem:[#allocation2 + $0x88] sm:$0xff] }
 0x87f   : > { %v3798_v25 = vpop.f32.mrb[104].mxu0  ;;  %3896 = vadd.xlane.f32.xlu0 %v3895_v53  ;;  %v3898_v5 = vadd.f32 %v9240_v52, %v9238_v15  ;;  %v7129_v53 = vld [vmem:[#allocation2 + $0x90] sm:$0xff] }
 0x880   : > { %v3799_v31 = vadd.f32 %v3798_v25, %v9205_v14  ;;  %v3800_v9 = vpop.f32.mrb[105].mxu0 }
 0x881   : > { %v3801_v43 = vadd.f32 %v3800_v9, %v9212_v30  ;;  %v3802_v1 = vpop.f32.mrb[106].mxu0  ;;  %3899 = vadd.xlane.f32.xlu1 %v3898_v5  ;;  %v7130_v5 = vld [vmem:[#allocation2 + $0x98] sm:$0xff] }
 0x882   : > { %v9248_v33 = vadd.f32 %v7119_v13, %v3799_v31  ;;  %v3803_v51 = vadd.f32 %v3802_v1, %v9205_v14  ;;  %v3804_v28 = vpop.f32.mrb[107].mxu0 }
 0x883   : > { %v9251_v45 = vadd.f32 %v7120_v35, %v3801_v43  ;;  %v3805_v56 = vadd.f32 %v3804_v28, %v9212_v30 }
 0x884   : > { %v9254_v44 = vadd.f32 %v7121_v62, %v3803_v51 }
 0x885   : > { %v9256_v40 = vadd.f32 %v7122_v58, %v3805_v56  ;;  %v3901_v39 = vadd.f32 %v9251_v45, %v9248_v33  ;;  %v7131_v56 = vld [vmem:[#allocation2 + $0xa0] sm:$0xff] }
 0x887   : > { %3902 = vadd.xlane.f32.xlu0 %v3901_v39  ;;  %v3808_v50 = vpop.f32.mrb[108].mxu0  ;;  %v3904_v61 = vadd.f32 %v9256_v40, %v9254_v44 }
 0x888   : > { %v3809_v59 = vadd.f32 %v3808_v50, %v9205_v14  ;;  %v3810_v42 = vpop.f32.mrb[109].mxu0  ;;  %v7132_v50 = vld [vmem:[#allocation2 + $0xa8] sm:$0xff] }
 0x889   : > { %v3811_v34 = vadd.f32 %v3810_v42, %v9212_v30  ;;  %3905 = vadd.xlane.f32.xlu1 %v3904_v61  ;;  %v3812_v54 = vpop.f32.mrb[110].mxu0  ;;  %v7133_v42 = vld [vmem:[#allocation2 + $0xb0] sm:$0xff] }
 0x88a   : > { %v9264_v6 = vadd.f32 %v7123_v20, %v3809_v59  ;;  %v3813_v21 = vadd.f32 %v3812_v54, %v9205_v14  ;;  %v3814_v4 = vpop.f32.mrb[111].mxu0  ;;  %v7134_v54 = vld [vmem:[#allocation2 + $0xb8] sm:$0xff] }
 0x88b   : > { %v9267_v48 = vadd.f32 %v7124_v8, %v3811_v34  ;;  %v3815_v57 = vadd.f32 %v3814_v4, %v9212_v30 }
 0x88c   : > { %v9270_v12 = vadd.f32 %v7125_v17, %v3813_v21 }
 0x88d   : > { %v9272_v3 = vadd.f32 %v7126_v63, %v3815_v57  ;;  %v3907_v18 = vadd.f32 %v9267_v48, %v9264_v6 }
 0x88f   : > { %v3818_v10 = vpop.f32.mrb[112].mxu0  ;;  %3908 = vadd.xlane.f32.xlu0 %v3907_v18  ;;  %v3910_v38 = vadd.f32 %v9272_v3, %v9270_v12 }
 0x890   : > { %v3819_v26 = vadd.f32 %v3818_v10, %v9205_v14  ;;  %v3820_v46 = vpop.f32.mrb[113].mxu0  ;;  %v7135_v10 = vld [vmem:[#allocation2 + $0xc0] sm:$0xff] }
 0x891   : > { %v3821_v19 = vadd.f32 %v3820_v46, %v9212_v30  ;;  %v3822_v29 = vpop.f32.mrb[114].mxu0  ;;  %3911 = vadd.xlane.f32.xlu1 %v3910_v38 }
 0x892   : > { %v9280_v0 = vadd.f32 %v7127_v11, %v3819_v26  ;;  %v3823_v27 = vadd.f32 %v3822_v29, %v9205_v14  ;;  %v3824_v55 = vpop.f32.mrb[115].mxu0 }
 0x893   : > { %v9283_v60 = vadd.f32 %v7128_v37, %v3821_v19  ;;  %v3825_v47 = vadd.f32 %v3824_v55, %v9212_v30  ;;  %v7136_v19 = vld [vmem:[#allocation2 + $0xc8] sm:$0xff]  ;;  %v7138_v37 = vld [vmem:[#allocation2 + $0xd8] sm:$0xff] }
 0x894   : > { %v9286_v25 = vadd.f32 %v7129_v53, %v3823_v27  ;;  %v7137_v27 = vld [vmem:[#allocation2 + $0xd0] sm:$0xff] }
 0x895   : > { %v9288_v31 = vadd.f32 %v7130_v5, %v3825_v47  ;;  %v3913_v9 = vadd.f32 %v9283_v60, %v9280_v0 }
 0x897   : > { %3914 = vadd.xlane.f32.xlu0 %v3913_v9  ;;  %v3828_v43 = vpop.f32.mrb[116].mxu0  ;;  %v3916_v1 = vadd.f32 %v9288_v31, %v9286_v25 }
 0x898   : > { %v3829_v13 = vadd.f32 %v3828_v43, %v9205_v14  ;;  %v3830_v51 = vpop.f32.mrb[117].mxu0 }
 0x899   : > { %v3831_v28 = vadd.f32 %v3830_v51, %v9212_v30  ;;  %3917 = vadd.xlane.f32.xlu1 %v3916_v1  ;;  %v3832_v35 = vpop.f32.mrb[118].mxu0 }
 0x89a   : > { %v9296_v62 = vadd.f32 %v7131_v56, %v3829_v13  ;;  %v3833_v58 = vadd.f32 %v3832_v35, %v9205_v14  ;;  %v3834_v39 = vpop.f32.mrb[119].mxu0 }
 0x89b   : > { %v9299_v61 = vadd.f32 %v7132_v50, %v3831_v28  ;;  %v3835_v59 = vadd.f32 %v3834_v39, %v9212_v30  ;;  %v7139_v28 = vld [vmem:[#allocation2 + $0xe0] sm:$0xff]  ;;  %v7140_v39 = vld [vmem:[#allocation2 + $0xe8] sm:$0xff] }
 0x89c   : > { %v9302_v34 = vadd.f32 %v7133_v42, %v3833_v58  ;;  %v7141_v42 = vld [vmem:[#allocation2 + $0xf0] sm:$0xff] }
 0x89d   : > { %v9304_v20 = vadd.f32 %v7134_v54, %v3835_v59  ;;  %v3919_v21 = vadd.f32 %v9299_v61, %v9296_v62 }
 0x89f   : > { %v3838_v4 = vpop.f32.mrb[120].mxu0  ;;  %3920 = vadd.xlane.f32.xlu0 %v3919_v21  ;;  %v3922_v8 = vadd.f32 %v9304_v20, %v9302_v34  ;;  %v7142_v21 = vld [vmem:[#allocation2 + $0xf8] sm:$0xff] }
 0x8a0   : > { %v3839_v57 = vadd.f32 %v3838_v4, %v9205_v14  ;;  %v3840_v17 = vpop.f32.mrb[121].mxu0 }
 0x8a1   : > { %v3841_v63 = vadd.f32 %v3840_v17, %v9212_v30  ;;  %v3842_v18 = vpop.f32.mrb[122].mxu0  ;;  %3923 = vadd.xlane.f32.xlu1 %v3922_v8  ;;  %v6826_v17 = vld [vmem:[%s8021_s3 + $0x14] ss:$8 sps:$4 sm:$0xff]  }
 0x8a2   : > { %v9312_v38 = vadd.f32 %v7135_v10, %v3839_v57  ;;  %v3843_v26 = vadd.f32 %v3842_v18, %v9205_v14  ;;  %v3844_v46 = vpop.f32.mrb[123].mxu0  ;;  %v6823_v57 = vld [vmem:[%s8021_s3 + $0x4] ss:$8 sps:$4 sm:$0xff]   ;;  %v6827_v10 = vld [vmem:[%s8021_s3 + $0x20] ss:$8 sps:$4 sm:$0xff]  }
 0x8a3   : > { %v9315_v29 = vadd.f32 %v7136_v19, %v3841_v63  ;;  %v3845_v11 = vadd.f32 %v3844_v46, %v9212_v30  ;;  %4442 = vmatprep.subr.bf16.mxu1 %v6823_v57  ;;  %v6824_v63 = vld [vmem:[%s8021_s3 + $0x10] ss:$8 sps:$4 sm:$0xff]   ;;  %v6829_v18 = vld [vmem:[%s8021_s3 + $0x24] ss:$8 sps:$4 sm:$0xff]  }
 0x8a4   : > { %v9318_v55 = vadd.f32 %v7137_v27, %v3843_v26  ;;  %v6832_v26 = vld [vmem:[%s8021_s3 + $0x34] ss:$8 sps:$4 sm:$0xff]   ;;  %v6830_v46 = vld [vmem:[%s8021_s3 + $0x30] ss:$8 sps:$4 sm:$0xff]   ;;  %v6835_v19 = vld [vmem:[%s8021_s3 + $0x44] ss:$8 sps:$4 sm:$0xff]  }
 0x8a5   : > { %v9320_v47 = vadd.f32 %v7138_v37, %v3845_v11  ;;  %v3925_v53 = vadd.f32 %v9315_v29, %v9312_v38  ;;  %v6833_v11 = vld [vmem:[%s8021_s3 + $0x40] ss:$8 sps:$4 sm:$0xff]   ;;  %v6838_v27 = vld [vmem:[%s8021_s3 + $0x54] ss:$8 sps:$4 sm:$0xff]   ;;  %v6836_v37 = vld [vmem:[%s8021_s3 + $0x50] ss:$8 sps:$4 sm:$0xff]  }
 0x8a7   : > { %3926 = vadd.xlane.f32.xlu0 %v3925_v53  ;;  %v3848_v5 = vpop.f32.mrb[124].mxu0  ;;  %v3928_v9 = vadd.f32 %v9320_v47, %v9318_v55  ;;  %v6841_v53 = vld [vmem:[%s8021_s3 + $0x64] ss:$8 sps:$4 sm:$0xff]  }
 0x8a8   : > { %v3849_v43 = vadd.f32 %v3848_v5, %v9205_v14  ;;  %v3850_v1 = vpop.f32.mrb[125].mxu0  ;;  %v6839_v5 = vld [vmem:[%s8021_s3 + $0x60] ss:$8 sps:$4 sm:$0xff]  }
 0x8a9   : > { %v3851_v13 = vadd.f32 %v3850_v1, %v9212_v30  ;;  %3929 = vadd.xlane.f32.xlu1 %v3928_v9  ;;  %v3852_v51 = vpop.f32.mrb[126].mxu0  ;;  %v6844_v9 = vld [vmem:[%s8021_s3 + $0x74] ss:$8 sps:$4 sm:$0xff]   ;;  %v6847_v1 = vld [vmem:[%s8021_s3 + $0x84] ss:$8 sps:$4 sm:$0xff]  }
 0x8aa   : > { %v9328_v35 = vadd.f32 %v7139_v28, %v3849_v43  ;;  %v3853_v56 = vadd.f32 %v3852_v51, %v9205_v14  ;;  %v3854_v58 = vpop.f32.mrb[127].mxu0  ;;  %v6842_v43 = vld [vmem:[%s8021_s3 + $0x70] ss:$8 sps:$4 sm:$0xff]   ;;  %v6850_v51 = vld [vmem:[%s8021_s3 + $0x94] ss:$8 sps:$4 sm:$0xff]  }
 0x8ab   : > { %v9331_v50 = vadd.f32 %v7140_v39, %v3851_v13  ;;  %v3855_v59 = vadd.f32 %v3854_v58, %v9212_v30  ;;  %v6821_v30 = vld [vmem:[%s8021_s3] ss:$8 sps:$4 sm:$0xff]   ;;  %v6848_v28 = vld [vmem:[%s8021_s3 + $0x90] ss:$8 sps:$4 sm:$0xff]  }
 0x8ac   : > { %v9334_v54 = vadd.f32 %v7141_v42, %v3853_v56  ;;  %4443 = vmatpush1.bf16.msra.mxu1 %v6821_v30  ;;  %v6845_v13 = vld [vmem:[%s8021_s3 + $0x80] ss:$8 sps:$4 sm:$0xff]  }
 0x8ad   : > { %v9336_v4 = vadd.f32 %v7142_v21, %v3855_v59  ;;  %v3931_v8 = vadd.f32 %v9331_v50, %v9328_v35  ;;  %4444 = vmatprep.subr.bf16.mxu1 %v6826_v17 }
 0x8af   : > { %3932 = vadd.xlane.f32.xlu0 %v3931_v8  ;;  %v3934_v14 = vadd.f32 %v9336_v4, %v9334_v54 }
 0x8b0   : > { %4445 = vmatpush1.bf16.msra.mxu1 %v6824_v63 }
 0x8b1   : > { %3935 = vadd.xlane.f32.xlu1 %v3934_v14  ;;  %4446 = vmatprep.subr.bf16.mxu1 %v6829_v18 }
 0x8b4   : > { %4447 = vmatpush1.bf16.msra.mxu1 %v6827_v10 }
 0x8b5   : > { %4448 = vmatprep.subr.bf16.mxu1 %v6832_v26 }
 0x8b8   : > { %4449 = vmatpush1.bf16.msra.mxu1 %v6830_v46 }
 0x8b9   : > { %4450 = vmatprep.subr.bf16.mxu1 %v6835_v19 }
 0x8bc   : > { %4451 = vmatpush1.bf16.msra.mxu1 %v6833_v11 }
 0x8bd   : > { %4452 = vmatprep.subr.bf16.mxu1 %v6838_v27 }
 0x8c0   : > { %4453 = vmatpush1.bf16.msra.mxu1 %v6836_v37 }
 0x8c1   : > { %4454 = vmatprep.subr.bf16.mxu1 %v6841_v53 }
 0x8c4   : > { %4455 = vmatpush1.bf16.msra.mxu1 %v6839_v5 }
 0x8c5   : > { %4456 = vmatprep.subr.bf16.mxu1 %v6844_v9 }
 0x8c8   : > { %4457 = vmatpush1.bf16.msra.mxu1 %v6842_v43 }
 0x8c9   : > { %4458 = vmatprep.subr.bf16.mxu1 %v6847_v1 }
 0x8cc   : > { %4459 = vmatpush1.bf16.msra.mxu1 %v6845_v13 }
 0x8cd   : > { %4460 = vmatprep.subr.bf16.mxu1 %v6850_v51 }
 0x8d0   : > { %4461 = vmatpush1.bf16.msra.mxu1 %v6848_v28 }
 0x904   : > { %v3891_v56 = vpop.xlane.xlu0 %3890 }
 0x905   : > { %v3938_v58 = vmul.f32 0.00390625, %v3891_v56 }
 0x906   : > { %v3894_v39 = vpop.xlane.xlu1 %3893 }
 0x907   : > { %v9363_v59 = vsub.f32 %v9216_v24, %v3938_v58  ;;  %v9366_v42 = vsub.f32 %v9219_v16, %v3938_v58  ;;  %v3939_v21 = vmul.f32 0.00390625, %v3894_v39 }
 0x909   : > { %v9369_v8 = vsub.f32 %v9222_v7, %v3939_v21  ;;  %v9372_v14 = vsub.f32 %v9224_v23, %v3939_v21  ;;  %v3986_v30 = vmul.f32 %v9363_v59, %v9363_v59  ;;  %v3987_v57 = vmul.f32 %v9366_v42, %v9366_v42 }
 0x90b   : > { %v4018_v17 = vadd.f32 %v3987_v57, %v3986_v30  ;;  %v3988_v24 = vmul.f32 %v9369_v8, %v9369_v8  ;;  %v3989_v16 = vmul.f32 %v9372_v14, %v9372_v14  ;;  %v6851_v57 = vld [vmem:[%s8021_s3 + $0xa0] ss:$8 sps:$4 sm:$0xff]  }
 0x90c   : > { %v3897_v63 = vpop.xlane.xlu0 %3896 }
 0x90d   : > { %v3940_v18 = vmul.f32 0.00390625, %v3897_v63  ;;  %4019 = vadd.xlane.f32.xlu0 %v4018_v17  ;;  %v4021_v7 = vadd.f32 %v3989_v16, %v3988_v24 }
 0x90e   : > { %v3900_v10 = vpop.xlane.xlu1 %3899 }
 0x90f   : > { %v9383_v23 = vsub.f32 %v9232_v49, %v3940_v18  ;;  %v9386_v26 = vsub.f32 %v9235_v41, %v3940_v18  ;;  %v3941_v46 = vmul.f32 0.00390625, %v3900_v10  ;;  %4022 = vadd.xlane.f32.xlu1 %v4021_v7  ;;  %v6856_v18 = vld [vmem:[%s8021_s3 + $0xb4] ss:$8 sps:$4 sm:$0xff]  }
 0x911   : > { %v9389_v19 = vsub.f32 %v9238_v15, %v3941_v46  ;;  %v9392_v11 = vsub.f32 %v9240_v52, %v3941_v46  ;;  %v3990_v27 = vmul.f32 %v9383_v23, %v9383_v23  ;;  %v3991_v37 = vmul.f32 %v9386_v26, %v9386_v26 }
 0x913   : > { %v4024_v53 = vadd.f32 %v3991_v37, %v3990_v27  ;;  %v3992_v49 = vmul.f32 %v9389_v19, %v9389_v19  ;;  %v3993_v41 = vmul.f32 %v9392_v11, %v9392_v11 }
 0x914   : > { %v3903_v5 = vpop.xlane.xlu0 %3902 }
 0x915   : > { %v3942_v9 = vmul.f32 0.00390625, %v3903_v5  ;;  %4025 = vadd.xlane.f32.xlu0 %v4024_v53  ;;  %v4027_v15 = vadd.f32 %v3993_v41, %v3992_v49  ;;  %v6857_v5 = vld [vmem:[%s8021_s3 + $0xc0] ss:$8 sps:$4 sm:$0xff]  }
 0x916   : > { %v3906_v52 = vpop.xlane.xlu1 %3905 }
 0x917   : > { %v9403_v43 = vsub.f32 %v9248_v33, %v3942_v9  ;;  %v9406_v1 = vsub.f32 %v9251_v45, %v3942_v9  ;;  %v3943_v13 = vmul.f32 0.00390625, %v3906_v52  ;;  %4028 = vadd.xlane.f32.xlu1 %v4027_v15 }
 0x919   : > { %v9409_v51 = vsub.f32 %v9254_v44, %v3943_v13  ;;  %v9412_v28 = vsub.f32 %v9256_v40, %v3943_v13  ;;  %v3994_v56 = vmul.f32 %v9403_v43, %v9403_v43  ;;  %v3995_v58 = vmul.f32 %v9406_v1, %v9406_v1  ;;  %v6853_v44 = vld [vmem:[%s8021_s3 + $0xa4] ss:$8 sps:$4 sm:$0xff]  }
 0x91a   : > { %4462 = vmatprep.subr.bf16.mxu1 %v6853_v44 }
 0x91b   : > { %v4030_v33 = vadd.f32 %v3995_v58, %v3994_v56  ;;  %v3996_v45 = vmul.f32 %v9409_v51, %v9409_v51  ;;  %v3997_v39 = vmul.f32 %v9412_v28, %v9412_v28  ;;  %4463 = vmatpush1.bf16.msra.mxu1 %v6851_v57  ;;  %v6862_v56 = vld [vmem:[%s8021_s3 + $0xd4] ss:$8 sps:$4 sm:$0xff]   ;;  %v6863_v57 = vld [vmem:[%s8021_s3 + $0xe0] ss:$8 sps:$4 sm:$0xff]  }
 0x91c   : > { %v3909_v21 = vpop.xlane.xlu0 %3908  ;;  %4464 = vmatprep.subr.bf16.mxu1 %v6856_v18 }
 0x91d   : > { %v3944_v30 = vmul.f32 0.00390625, %v3909_v21  ;;  %4031 = vadd.xlane.f32.xlu0 %v4030_v33  ;;  %v4033_v40 = vadd.f32 %v3997_v39, %v3996_v45 }
 0x91e   : > { %v3912_v17 = vpop.xlane.xlu1 %3911 }
 0x91f   : > { %v9425_v24 = vsub.f32 %v9264_v6, %v3944_v30  ;;  %v9428_v16 = vsub.f32 %v9267_v48, %v3944_v30  ;;  %v3945_v63 = vmul.f32 0.00390625, %v3912_v17  ;;  %4034 = vadd.xlane.f32.xlu1 %v4033_v40  ;;  %v6854_v48 = vld [vmem:[%s8021_s3 + $0xb0] ss:$8 sps:$4 sm:$0xff]  }
 0x920   : > { %4465 = vmatpush1.bf16.msra.mxu1 %v6854_v48 }
 0x921   : > { %v9432_v7 = vsub.f32 %v9270_v12, %v3945_v63  ;;  %v9435_v10 = vsub.f32 %v9272_v3, %v3945_v63  ;;  %v3998_v46 = vmul.f32 %v9425_v24, %v9425_v24  ;;  %v3999_v6 = vmul.f32 %v9428_v16, %v9428_v16  ;;  %v6859_v3 = vld [vmem:[%s8021_s3 + $0xc4] ss:$8 sps:$4 sm:$0xff]  }
 0x922   : > { %4466 = vmatprep.subr.bf16.mxu1 %v6859_v3 }
 0x923   : > { %v4036_v27 = vadd.f32 %v3999_v6, %v3998_v46  ;;  %v4000_v37 = vmul.f32 %v9432_v7, %v9432_v7  ;;  %v4001_v12 = vmul.f32 %v9435_v10, %v9435_v10  ;;  %v6868_v6 = vld [vmem:[%s8021_s3 + $0xf4] ss:$8 sps:$4 sm:$0xff]  }
 0x924   : > { %v3915_v53 = vpop.xlane.xlu0 %3914  ;;  %4467 = vmatpush1.bf16.msra.mxu1 %v6857_v5 }
 0x925   : > { %v3946_v49 = vmul.f32 0.00390625, %v3915_v53  ;;  %4037 = vadd.xlane.f32.xlu0 %v4036_v27  ;;  %v4039_v41 = vadd.f32 %v4001_v12, %v4000_v37  ;;  %4468 = vmatprep.subr.bf16.mxu1 %v6862_v56  ;;  %v6866_v12 = vld [vmem:[%s8021_s3 + $0xf0] ss:$8 sps:$4 sm:$0xff]  }
 0x926   : > { %v3918_v9 = vpop.xlane.xlu1 %3917 }
 0x927   : > { %v9449_v15 = vsub.f32 %v9280_v0, %v3946_v49  ;;  %v9452_v52 = vsub.f32 %v9283_v60, %v3946_v49  ;;  %v3947_v13 = vmul.f32 0.00390625, %v3918_v9  ;;  %4040 = vadd.xlane.f32.xlu1 %v4039_v41  ;;  %v6860_v60 = vld [vmem:[%s8021_s3 + $0xd0] ss:$8 sps:$4 sm:$0xff]  }
 0x928   : > { %4469 = vmatpush1.bf16.msra.mxu1 %v6860_v60 }
 0x929   : > { %v9456_v58 = vsub.f32 %v9286_v25, %v3947_v13  ;;  %v9459_v33 = vsub.f32 %v9288_v31, %v3947_v13  ;;  %v4002_v45 = vmul.f32 %v9449_v15, %v9449_v15  ;;  %v4003_v0 = vmul.f32 %v9452_v52, %v9452_v52  ;;  %v6865_v31 = vld [vmem:[%s8021_s3 + $0xe4] ss:$8 sps:$4 sm:$0xff]  }
 0x92a   : > { %4470 = vmatprep.subr.bf16.mxu1 %v6865_v31 }
 0x92b   : > { %v4042_v39 = vadd.f32 %v4003_v0, %v4002_v45  ;;  %v4004_v21 = vmul.f32 %v9456_v58, %v9456_v58  ;;  %v4005_v25 = vmul.f32 %v9459_v33, %v9459_v33 }
 0x92c   : > { %v3921_v44 = vpop.xlane.xlu0 %3920  ;;  %4471 = vmatpush1.bf16.msra.mxu1 %v6863_v57 }
 0x92d   : > { %v3948_v30 = vmul.f32 0.00390625, %v3921_v44  ;;  %4043 = vadd.xlane.f32.xlu0 %v4042_v39  ;;  %v4045_v40 = vadd.f32 %v4005_v25, %v4004_v21  ;;  %4472 = vmatprep.subr.bf16.mxu1 %v6868_v6  ;;  %v6869_v6 = vld [vmem:[%s8023_s26] ss:$8 sps:$4 sm:$0xff]  }
 0x92e   : > { %v3924_v17 = vpop.xlane.xlu1 %3923 }
 0x92f   : > { %v9473_v63 = vsub.f32 %v9296_v62, %v3948_v30  ;;  %v9476_v18 = vsub.f32 %v9299_v61, %v3948_v30  ;;  %v3949_v46 = vmul.f32 0.00390625, %v3924_v17  ;;  %4046 = vadd.xlane.f32.xlu1 %v4045_v40 }
 0x930   : > { %4473 = vmatpush1.bf16.msra.mxu1 %v6866_v12  ;;  %v6872_v12 = vld [vmem:[%s8023_s26 + $0x10] ss:$8 sps:$4 sm:$0xff]  }
 0x931   : > { %v9480_v48 = vsub.f32 %v9302_v34, %v3949_v46  ;;  %v9483_v27 = vsub.f32 %v9304_v20, %v3949_v46  ;;  %v4006_v37 = vmul.f32 %v9473_v63, %v9473_v63  ;;  %v4007_v62 = vmul.f32 %v9476_v18, %v9476_v18 }
 0x933   : > { %v4048_v61 = vadd.f32 %v4007_v62, %v4006_v37  ;;  %v4008_v53 = vmul.f32 %v9480_v48, %v9480_v48  ;;  %v4009_v3 = vmul.f32 %v9483_v27, %v9483_v27  ;;  %v6871_v37 = vld [vmem:[%s8023_s26 + $0x4] ss:$8 sps:$4 sm:$0xff]   ;;  %v6874_v62 = vld [vmem:[%s8023_s26 + $0x14] ss:$8 sps:$4 sm:$0xff]  }
 0x934   : > { %v3927_v34 = vpop.xlane.xlu0 %3926  ;;  %4803 = vmatprep.subr.bf16.mxu0 %v6871_v37 }
 0x935   : > { %v3950_v49 = vmul.f32 0.00390625, %v3927_v34  ;;  %4049 = vadd.xlane.f32.xlu0 %v4048_v61  ;;  %v4051_v20 = vadd.f32 %v4009_v3, %v4008_v53  ;;  %4804 = vmatpush1.bf16.msra.mxu0 %v6869_v6  ;;  %v6877_v61 = vld [vmem:[%s8023_s26 + $0x24] ss:$8 sps:$4 sm:$0xff]   ;;  %v6875_v53 = vld [vmem:[%s8023_s26 + $0x20] ss:$8 sps:$4 sm:$0xff]  }
 0x936   : > { %v3930_v41 = vpop.xlane.xlu1 %3929  ;;  %4805 = vmatprep.subr.bf16.mxu0 %v6874_v62  ;;  %v6880_v3 = vld [vmem:[%s8023_s26 + $0x34] ss:$8 sps:$4 sm:$0xff]   ;;  %v6878_v34 = vld [vmem:[%s8023_s26 + $0x30] ss:$8 sps:$4 sm:$0xff]   ;;  %v6905_v6 = vld [vmem:[%s8023_s26 + $0xc0] ss:$8 sps:$4 sm:$0xff]  }
 0x937   : > { %v9495_v5 = vsub.f32 %v9312_v38, %v3950_v49  ;;  %v9498_v9 = vsub.f32 %v9315_v29, %v3950_v49  ;;  %v3951_v13 = vmul.f32 0.00390625, %v3930_v41  ;;  %4052 = vadd.xlane.f32.xlu1 %v4051_v20  ;;  %v6883_v49 = vld [vmem:[%s8023_s26 + $0x44] ss:$8 sps:$4 sm:$0xff]   ;;  %v6881_v20 = vld [vmem:[%s8023_s26 + $0x40] ss:$8 sps:$4 sm:$0xff]  }
 0x938   : > { %v6886_v41 = vld [vmem:[%s8023_s26 + $0x54] ss:$8 sps:$4 sm:$0xff]  }
 0x939   : > { %v9501_v56 = vsub.f32 %v9318_v55, %v3951_v13  ;;  %v9504_v45 = vsub.f32 %v9320_v47, %v3951_v13  ;;  %v4010_v0 = vmul.f32 %v9495_v5, %v9495_v5  ;;  %v4011_v60 = vmul.f32 %v9498_v9, %v9498_v9  ;;  %4806 = vmatpush1.bf16.msra.mxu0 %v6872_v12  ;;  %v6884_v13 = vld [vmem:[%s8023_s26 + $0x50] ss:$8 sps:$4 sm:$0xff]   ;;  %v6910_v12 = vld [vmem:[%s8023_s26 + $0xd4] ss:$8 sps:$4 sm:$0xff]  }
 0x93a   : > { %4807 = vmatprep.subr.bf16.mxu0 %v6877_v61 }
 0x93b   : > { %v4054_v39 = vadd.f32 %v4011_v60, %v4010_v0  ;;  %v4012_v38 = vmul.f32 %v9501_v56, %v9501_v56  ;;  %v4013_v29 = vmul.f32 %v9504_v45, %v9504_v45  ;;  %v6889_v0 = vld [vmem:[%s8023_s26 + $0x64] ss:$8 sps:$4 sm:$0xff]   ;;  %v6887_v60 = vld [vmem:[%s8023_s26 + $0x60] ss:$8 sps:$4 sm:$0xff]  }
 0x93c   : > { %v3933_v21 = vpop.xlane.xlu0 %3932 }
 0x93d   : > { %v3952_v25 = vmul.f32 0.00390625, %v3933_v21  ;;  %4055 = vadd.xlane.f32.xlu0 %v4054_v39  ;;  %v4057_v55 = vadd.f32 %v4013_v29, %v4012_v38  ;;  %4808 = vmatpush1.bf16.msra.mxu0 %v6875_v53  ;;  %v6892_v39 = vld [vmem:[%s8023_s26 + $0x74] ss:$8 sps:$4 sm:$0xff]   ;;  %v6890_v38 = vld [vmem:[%s8023_s26 + $0x70] ss:$8 sps:$4 sm:$0xff]  }
 0x93e   : > { %v3936_v47 = vpop.xlane.xlu1 %3935  ;;  %4809 = vmatprep.subr.bf16.mxu0 %v6880_v3  ;;  %v6895_v29 = vld [vmem:[%s8023_s26 + $0x84] ss:$8 sps:$4 sm:$0xff]   ;;  %v6893_v21 = vld [vmem:[%s8023_s26 + $0x80] ss:$8 sps:$4 sm:$0xff]   ;;  %v6908_v53 = vld [vmem:[%s8023_s26 + $0xd0] ss:$8 sps:$4 sm:$0xff]  }
 0x93f   : > { %v9515_v44 = vsub.f32 %v9328_v35, %v3952_v25  ;;  %v9518_v31 = vsub.f32 %v9331_v50, %v3952_v25  ;;  %v3953_v30 = vmul.f32 0.00390625, %v3936_v47  ;;  %4058 = vadd.xlane.f32.xlu1 %v4057_v55  ;;  %v6898_v25 = vld [vmem:[%s8023_s26 + $0x94] ss:$8 sps:$4 sm:$0xff]   ;;  %v6896_v55 = vld [vmem:[%s8023_s26 + $0x90] ss:$8 sps:$4 sm:$0xff]  }
 0x940   : > { %v6901_v47 = vld [vmem:[%s8023_s26 + $0xa4] ss:$8 sps:$4 sm:$0xff]  }
 0x941   : > { %v9521_v40 = vsub.f32 %v9334_v54, %v3953_v30  ;;  %v9524_v57 = vsub.f32 %v9336_v4, %v3953_v30  ;;  %v4014_v17 = vmul.f32 %v9515_v44, %v9515_v44  ;;  %v4015_v35 = vmul.f32 %v9518_v31, %v9518_v31  ;;  %4810 = vmatpush1.bf16.msra.mxu0 %v6878_v34  ;;  %v6899_v30 = vld [vmem:[%s8023_s26 + $0xa0] ss:$8 sps:$4 sm:$0xff]  }
 0x942   : > { %4811 = vmatprep.subr.bf16.mxu0 %v6883_v49 }
 0x943   : > { %v4060_v46 = vadd.f32 %v4015_v35, %v4014_v17  ;;  %v4016_v50 = vmul.f32 %v9521_v40, %v9521_v40  ;;  %v4017_v54 = vmul.f32 %v9524_v57, %v9524_v57  ;;  %v6904_v17 = vld [vmem:[%s8023_s26 + $0xb4] ss:$8 sps:$4 sm:$0xff]   ;;  %v6902_v35 = vld [vmem:[%s8023_s26 + $0xb0] ss:$8 sps:$4 sm:$0xff]  }
 0x945   : > { %4061 = vadd.xlane.f32.xlu0 %v4060_v46  ;;  %v4063_v4 = vadd.f32 %v4017_v54, %v4016_v50  ;;  %4812 = vmatpush1.bf16.msra.mxu0 %v6881_v20  ;;  %v6907_v46 = vld [vmem:[%s8023_s26 + $0xc4] ss:$8 sps:$4 sm:$0xff]   ;;  %v4148_v20 = vsub.s32 4, %v10993_v32 }
 0x946   : > { %4813 = vmatprep.subr.bf16.mxu0 %v6886_v41 }
 0x947   : > { %4064 = vadd.xlane.f32.xlu1 %v4063_v4 }
 0x949   : > { %4814 = vmatpush1.bf16.msra.mxu0 %v6884_v13 }
 0x94a   : > { %4815 = vmatprep.subr.bf16.mxu0 %v6889_v0 }
 0x94d   : > { %4816 = vmatpush1.bf16.msra.mxu0 %v6887_v60  ;;  %v4188_v60 = vsub.s32 5, %v10993_v32 }
 0x94e   : > { %4817 = vmatprep.subr.bf16.mxu0 %v6892_v39  ;;  %v9565_v39 = vrot.slane %v9208_v22, %v4148_v20 }
 0x951   : > { %4818 = vmatpush1.bf16.msra.mxu0 %v6890_v38  ;;  %v9568_v38 = vrot.slane %v9201_v36, %v4148_v20 }
 0x952   : > { %4819 = vmatprep.subr.bf16.mxu0 %v6895_v29 }
 0x955   : > { %4820 = vmatpush1.bf16.msra.mxu0 %v6893_v21 }
 0x956   : > { %4821 = vmatprep.subr.bf16.mxu0 %v6898_v25 }
 0x959   : > { %4822 = vmatpush1.bf16.msra.mxu0 %v6896_v55 }
 0x95a   : > { %4823 = vmatprep.subr.bf16.mxu0 %v6901_v47 }
 0x95d   : > { %4824 = vmatpush1.bf16.msra.mxu0 %v6899_v30 }
 0x95e   : > { %4825 = vmatprep.subr.bf16.mxu0 %v6904_v17  ;;  %v9573_v17 = vrot.slane %v9208_v22, %v4188_v60 }
 0x961   : > { %4826 = vmatpush1.bf16.msra.mxu0 %v6902_v35  ;;  %v9576_v35 = vrot.slane %v9201_v36, %v4188_v60 }
 0x962   : > { %4827 = vmatprep.subr.bf16.mxu0 %v6907_v46 }
 0x965   : > { %4828 = vmatpush1.bf16.msra.mxu0 %v6905_v6 }
 0x966   : > { %4829 = vmatprep.subr.bf16.mxu0 %v6910_v12 }
 0x969   : > { %4830 = vmatpush1.bf16.msra.mxu0 %v6908_v53 }
 0x99a   : > { %v4020_v50 = vpop.xlane.xlu0 %4019 }
 0x99b   : > { %v4066_v54 = vmul.f32 0.00390625, %v4020_v50 }
 0x99c   : > { %v4023_v4 = vpop.xlane.xlu1 %4022 }
 0x99d   : > { %v4082_v37 = vadd.f32 1e-06, %v4066_v54  ;;  %v4067_v62 = vmul.f32 0.00390625, %v4023_v4 }
 0x99f   : > { %7045 = vrsqrt.f32 %v4082_v37  ;;  %v4083_v61 = vadd.f32 1e-06, %v4067_v62 }
 0x9a1   : > { %7047 = vrsqrt.f32 %v4083_v61 }
 0x9a2   : > { %v4026_v3 = vpop.xlane.xlu0 %4025 }
 0x9a3   : > { %v4068_v34 = vmul.f32 0.00390625, %v4026_v3 }
 0x9a4   : > { %v4029_v49 = vpop.xlane.xlu1 %4028 }
 0x9a5   : > { %v4084_v41 = vadd.f32 1e-06, %v4068_v34  ;;  %v4069_v13 = vmul.f32 0.00390625, %v4029_v49 }
 0x9a7   : > { %7049 = vrsqrt.f32 %v4084_v41  ;;  %v4085_v0 = vadd.f32 1e-06, %v4069_v13 }
 0x9a9   : > { %v7046_v29 = vpop.eup %7045  ;;  %7051 = vrsqrt.f32 %v4085_v0 }
 0x9aa   : > { %v4114_v21 = vmul.f32 %v7046_v29, %v9363_v59  ;;  %v4032_v25 = vpop.xlane.xlu0 %4031  ;;  %v4115_v55 = vmul.f32 %v7046_v29, %v9366_v42 }
 0x9ab   : > { %v7048_v47 = vpop.eup %7047  ;;  %v4070_v30 = vmul.f32 0.00390625, %v4032_v25 }
 0x9ac   : > { %v4116_v46 = vmul.f32 %v7048_v47, %v9369_v8  ;;  %v4035_v50 = vpop.xlane.xlu1 %4034  ;;  %v4117_v54 = vmul.f32 %v7048_v47, %v9372_v14  ;;  %v4155_v4 = vmul.f32 %v9565_v39, %v4115_v55  ;;  %v4154_v59 = vmul.f32 %v9568_v38, %v4114_v21 }
 0x9ad   : > { %v4086_v6 = vadd.f32 1e-06, %v4070_v30  ;;  %v4071_v37 = vmul.f32 0.00390625, %v4035_v50 }
 0x9ae   : > { %v4157_v42 = vmul.f32 %v9565_v39, %v4117_v54  ;;  %v4156_v62 = vmul.f32 %v9568_v38, %v4116_v46  ;;  %v9585_v36 = vadd.f32 %v9573_v17, %v4155_v4  ;;  %v9591_v14 = vadd.f32 %v9576_v35, %v4154_v59 }
 0x9af   : > { %7053 = vrsqrt.f32 %v4086_v6  ;;  %v4087_v22 = vadd.f32 1e-06, %v4071_v37 }
 0x9b0   : > { %v9588_v8 = vadd.f32 %v9573_v17, %v4157_v42  ;;  %v9594_v12 = vadd.f32 %v9576_v35, %v4156_v62 }
 0x9b1   : > { %v7050_v61 = vpop.eup %7049  ;;  %7055 = vrsqrt.f32 %v4087_v22 }
 0x9b2   : > { %v4038_v53 = vpop.xlane.xlu0 %4037  ;;  %v4227_v3 = vpack.c.bf16 %v9588_v8, %v9585_v36  ;;  %v4226_v34 = vpack.c.bf16 %v9594_v12, %v9591_v14  ;;  %v4119_v49 = vmul.f32 %v7050_v61, %v9386_v26  ;;  %v4118_v20 = vmul.f32 %v7050_v61, %v9383_v23 }
 0x9b3   : > { %v7052_v41 = vpop.eup %7051  ;;  %v4072_v13 = vmul.f32 0.00390625, %v4038_v53 }
 0x9b4   : > { %v4041_v0 = vpop.xlane.xlu1 %4040  ;;  %4474 = vmatprep.mubr.bf16.mxu1 %v4227_v3  ;;  %v4121_v60 = vmul.f32 %v7052_v41, %v9392_v11  ;;  %v4159_v29 = vmul.f32 %v9565_v39, %v4119_v49  ;;  %v4120_v21 = vmul.f32 %v7052_v41, %v9389_v19  ;;  %v4158_v25 = vmul.f32 %v9568_v38, %v4118_v20 }
 0x9b5   : > { %v4088_v55 = vadd.f32 1e-06, %v4072_v13  ;;  %v4073_v47 = vmul.f32 0.00390625, %v4041_v0  ;;  %4475 = vmatmul.mubr.bf16.vlgmr.msra.gmra.mrb[128].mxu1 %v4226_v34 }
 0x9b6   : > { %v4161_v30 = vmul.f32 %v9565_v39, %v4121_v60  ;;  %v4160_v26 = vmul.f32 %v9568_v38, %v4120_v21  ;;  %v9609_v46 = vadd.f32 %v9573_v17, %v4159_v29  ;;  %v9615_v50 = vadd.f32 %v9576_v35, %v4158_v25 }
 0x9b7   : > { %7057 = vrsqrt.f32 %v4088_v55  ;;  %v4089_v23 = vadd.f32 1e-06, %v4073_v47 }
 0x9b8   : > { %v9612_v11 = vadd.f32 %v9573_v17, %v4161_v30  ;;  %v9618_v19 = vadd.f32 %v9576_v35, %v4160_v26 }
 0x9b9   : > { %v7054_v54 = vpop.eup %7053  ;;  %7059 = vrsqrt.f32 %v4089_v23 }
 0x9ba   : > { %v4044_v4 = vpop.xlane.xlu0 %4043  ;;  %v4229_v59 = vpack.c.bf16 %v9612_v11, %v9609_v46  ;;  %v4228_v6 = vpack.c.bf16 %v9618_v19, %v9615_v50  ;;  %v4123_v37 = vmul.f32 %v7054_v54, %v9406_v1  ;;  %v4122_v42 = vmul.f32 %v7054_v54, %v9403_v43 }
 0x9bb   : > { %v7056_v62 = vpop.eup %7055  ;;  %v4074_v22 = vmul.f32 0.00390625, %v4044_v4 }
 0x9bc   : > { %v4047_v61 = vpop.xlane.xlu1 %4046  ;;  %4484 = vmatprep.mubr.bf16.mxu1 %v4229_v59  ;;  %v4125_v53 = vmul.f32 %v7056_v62, %v9412_v28  ;;  %v4163_v3 = vmul.f32 %v9565_v39, %v4123_v37  ;;  %v4124_v34 = vmul.f32 %v7056_v62, %v9409_v51  ;;  %v4162_v49 = vmul.f32 %v9568_v38, %v4122_v42 }
 0x9bd   : > { %v4090_v20 = vadd.f32 1e-06, %v4074_v22  ;;  %v4075_v41 = vmul.f32 0.00390625, %v4047_v61  ;;  %4485 = vmatmul.mubr.bf16.gmra.mrb[132].mxu1 %v4228_v6 }
 0x9be   : > { %v4165_v13 = vmul.f32 %v9565_v39, %v4125_v53  ;;  %v4164_v1 = vmul.f32 %v9568_v38, %v4124_v34  ;;  %v9633_v0 = vadd.f32 %v9573_v17, %v4163_v3  ;;  %v9639_v60 = vadd.f32 %v9576_v35, %v4162_v49 }
 0x9bf   : > { %7061 = vrsqrt.f32 %v4090_v20  ;;  %v4091_v43 = vadd.f32 1e-06, %v4075_v41 }
 0x9c0   : > { %v9636_v28 = vadd.f32 %v9573_v17, %v4165_v13  ;;  %v9642_v51 = vadd.f32 %v9576_v35, %v4164_v1 }
 0x9c1   : > { %v7058_v29 = vpop.eup %7057  ;;  %7063 = vrsqrt.f32 %v4091_v43 }
 0x9c2   : > { %v4050_v21 = vpop.xlane.xlu0 %4049  ;;  %v4231_v25 = vpack.c.bf16 %v9636_v28, %v9633_v0  ;;  %v4230_v55 = vpack.c.bf16 %v9642_v51, %v9639_v60  ;;  %v4127_v47 = vmul.f32 %v7058_v29, %v9428_v16  ;;  %v4126_v30 = vmul.f32 %v7058_v29, %v9425_v24 }
 0x9c3   : > { %v7060_v26 = vpop.eup %7059  ;;  %v4076_v23 = vmul.f32 0.00390625, %v4050_v21 }
 0x9c4   : > { %v4053_v54 = vpop.xlane.xlu1 %4052  ;;  %4494 = vmatprep.mubr.bf16.mxu1 %v4231_v25  ;;  %v4129_v4 = vmul.f32 %v7060_v26, %v9435_v10  ;;  %v4167_v59 = vmul.f32 %v9565_v39, %v4127_v47  ;;  %v4128_v6 = vmul.f32 %v7060_v26, %v9432_v7  ;;  %v4166_v37 = vmul.f32 %v9568_v38, %v4126_v30 }
 0x9c5   : > { %v4092_v42 = vadd.f32 1e-06, %v4076_v23  ;;  %v4077_v62 = vmul.f32 0.00390625, %v4053_v54  ;;  %4495 = vmatmul.mubr.bf16.gmra.mrb[136].mxu1 %v4230_v55 }
 0x9c6   : > { %v4169_v22 = vmul.f32 %v9565_v39, %v4129_v4  ;;  %v4168_v16 = vmul.f32 %v9568_v38, %v4128_v6  ;;  %v9657_v61 = vadd.f32 %v9573_v17, %v4167_v59  ;;  %v9663_v53 = vadd.f32 %v9576_v35, %v4166_v37 }
 0x9c7   : > { %7065 = vrsqrt.f32 %v4092_v42  ;;  %v4093_v24 = vadd.f32 1e-06, %v4077_v62 }
 0x9c8   : > { %v9660_v10 = vadd.f32 %v9573_v17, %v4169_v22  ;;  %v9666_v7 = vadd.f32 %v9576_v35, %v4168_v16 }
 0x9c9   : > { %v7062_v3 = vpop.eup %7061  ;;  %7067 = vrsqrt.f32 %v4093_v24 }
 0x9ca   : > { %v4056_v34 = vpop.xlane.xlu0 %4055  ;;  %v4233_v49 = vpack.c.bf16 %v9660_v10, %v9657_v61  ;;  %v4232_v20 = vpack.c.bf16 %v9666_v7, %v9663_v53  ;;  %v4131_v41 = vmul.f32 %v7062_v3, %v9452_v52  ;;  %v4130_v13 = vmul.f32 %v7062_v3, %v9449_v15 }
 0x9cb   : > { %v7064_v1 = vpop.eup %7063  ;;  %v4078_v43 = vmul.f32 0.00390625, %v4056_v34 }
 0x9cc   : > { %v4059_v29 = vpop.xlane.xlu1 %4058  ;;  %4504 = vmatprep.mubr.bf16.mxu1 %v4233_v49  ;;  %v4133_v21 = vmul.f32 %v7064_v1, %v9459_v33  ;;  %v4171_v25 = vmul.f32 %v9565_v39, %v4131_v41  ;;  %v4132_v55 = vmul.f32 %v7064_v1, %v9456_v58  ;;  %v4170_v47 = vmul.f32 %v9568_v38, %v4130_v13 }
 0x9cd   : > { %v4094_v30 = vadd.f32 1e-06, %v4078_v43  ;;  %v4079_v26 = vmul.f32 0.00390625, %v4059_v29  ;;  %4505 = vmatmul.mubr.bf16.gmra.mrb[140].mxu1 %v4232_v20 }
 0x9ce   : > { %v4173_v23 = vmul.f32 %v9565_v39, %v4133_v21  ;;  %v4172_v52 = vmul.f32 %v9568_v38, %v4132_v55  ;;  %v9681_v54 = vadd.f32 %v9573_v17, %v4171_v25  ;;  %v9687_v4 = vadd.f32 %v9576_v35, %v4170_v47 }
 0x9cf   : > { %7069 = vrsqrt.f32 %v4094_v30  ;;  %v4095_v15 = vadd.f32 1e-06, %v4079_v26 }
 0x9d0   : > { %v9684_v33 = vadd.f32 %v9573_v17, %v4173_v23  ;;  %v9690_v58 = vadd.f32 %v9576_v35, %v4172_v52 }
 0x9d1   : > { %v7066_v59 = vpop.eup %7065  ;;  %7071 = vrsqrt.f32 %v4095_v15 }
 0x9d2   : > { %v4062_v6 = vpop.xlane.xlu0 %4061  ;;  %v4235_v37 = vpack.c.bf16 %v9684_v33, %v9681_v54  ;;  %v4234_v42 = vpack.c.bf16 %v9690_v58, %v9687_v4  ;;  %v4135_v62 = vmul.f32 %v7066_v59, %v9476_v18  ;;  %v4134_v22 = vmul.f32 %v7066_v59, %v9473_v63 }
 0x9d3   : > { %v7068_v16 = vpop.eup %7067  ;;  %v4080_v24 = vmul.f32 0.00390625, %v4062_v6 }
 0x9d4   : > { %v4065_v3 = vpop.xlane.xlu1 %4064  ;;  %4514 = vmatprep.mubr.bf16.mxu1 %v4235_v37  ;;  %v4137_v34 = vmul.f32 %v7068_v16, %v9483_v27  ;;  %v4175_v49 = vmul.f32 %v9565_v39, %v4135_v62  ;;  %v4136_v20 = vmul.f32 %v7068_v16, %v9480_v48  ;;  %v4174_v41 = vmul.f32 %v9568_v38, %v4134_v22 }
 0x9d5   : > { %v4096_v13 = vadd.f32 1e-06, %v4080_v24  ;;  %v4081_v1 = vmul.f32 0.00390625, %v4065_v3  ;;  %4515 = vmatmul.mubr.bf16.gmra.mrb[144].mxu1 %v4234_v42 }
 0x9d6   : > { %v4177_v43 = vmul.f32 %v9565_v39, %v4137_v34  ;;  %v4176_v18 = vmul.f32 %v9568_v38, %v4136_v20  ;;  %v9705_v29 = vadd.f32 %v9573_v17, %v4175_v49  ;;  %v9711_v21 = vadd.f32 %v9576_v35, %v4174_v41 }
 0x9d7   : > { %7073 = vrsqrt.f32 %v4096_v13  ;;  %v4097_v63 = vadd.f32 1e-06, %v4081_v1 }
 0x9d8   : > { %v9708_v27 = vadd.f32 %v9573_v17, %v4177_v43  ;;  %v9714_v48 = vadd.f32 %v9576_v35, %v4176_v18 }
 0x9d9   : > { %v7070_v25 = vpop.eup %7069  ;;  %7075 = vrsqrt.f32 %v4097_v63  ;;  %v6911_v63 = vld [vmem:[%s8023_s26 + $0xe0] ss:$8 sps:$4 sm:$0xff]  }
 0x9da   : > { %v4237_v55 = vpack.c.bf16 %v9708_v27, %v9705_v29  ;;  %v4236_v47 = vpack.c.bf16 %v9714_v48, %v9711_v21  ;;  %v4139_v30 = vmul.f32 %v7070_v25, %v9498_v9  ;;  %v4138_v26 = vmul.f32 %v7070_v25, %v9495_v5  ;;  %v6914_v25 = vld [vmem:[%s8023_s26 + $0xf0] ss:$8 sps:$4 sm:$0xff]  }
 0x9db   : > { %v7072_v23 = vpop.eup %7071 }
 0x9dc   : > { %4524 = vmatprep.mubr.bf16.mxu1 %v4237_v55  ;;  %v4141_v52 = vmul.f32 %v7072_v23, %v9504_v45  ;;  %v4179_v15 = vmul.f32 %v9565_v39, %v4139_v30  ;;  %v4140_v59 = vmul.f32 %v7072_v23, %v9501_v56  ;;  %v4178_v6 = vmul.f32 %v9568_v38, %v4138_v26  ;;  %v9774_v55 = vld [vmem:[%s8029_s5] sm:$0xff]  ;;  %v9780_v30 = vld [vmem:[%s8029_s5 + $0x8] sm:$0xff] }
 0x9dd   : > { %4525 = vmatmul.mubr.bf16.gmra.mrb[148].mxu1 %v4236_v47 }
 0x9de   : > { %v4181_v37 = vmul.f32 %v9565_v39, %v4141_v52  ;;  %v4180_v42 = vmul.f32 %v9568_v38, %v4140_v59  ;;  %v9729_v62 = vadd.f32 %v9573_v17, %v4179_v15  ;;  %v9735_v9 = vadd.f32 %v9576_v35, %v4178_v6 }
 0x9e0   : > { %v9732_v5 = vadd.f32 %v9573_v17, %v4181_v37  ;;  %v9738_v45 = vadd.f32 %v9576_v35, %v4180_v42 }
 0x9e1   : > { %v7074_v56 = vpop.eup %7073 }
 0x9e2   : > { %v4239_v22 = vpack.c.bf16 %v9732_v5, %v9729_v62  ;;  %v4238_v16 = vpack.c.bf16 %v9738_v45, %v9735_v9  ;;  %v4143_v24 = vmul.f32 %v7074_v56, %v9518_v31  ;;  %v4142_v3 = vmul.f32 %v7074_v56, %v9515_v44 }
 0x9e3   : > { %v7076_v34 = vpop.eup %7075 }
 0x9e4   : > { %4534 = vmatprep.mubr.bf16.mxu1 %v4239_v22  ;;  %v4145_v49 = vmul.f32 %v7076_v34, %v9524_v57  ;;  %v4183_v20 = vmul.f32 %v9565_v39, %v4143_v24  ;;  %v4144_v41 = vmul.f32 %v7076_v34, %v9521_v40  ;;  %v4182_v13 = vmul.f32 %v9568_v38, %v4142_v3 }
 0x9e5   : > { %4535 = vmatmul.mubr.bf16.gmra.mrb[152].mxu1 %v4238_v16 }
 0x9e6   : > { %v4185_v1 = vmul.f32 %v9565_v39, %v4145_v49  ;;  %v4184_v31 = vmul.f32 %v9568_v38, %v4144_v41  ;;  %v9753_v44 = vadd.f32 %v9573_v17, %v4183_v20  ;;  %v9759_v57 = vadd.f32 %v9576_v35, %v4182_v13  ;;  %v6913_v38 = vld [vmem:[%s8023_s26 + $0xe4] ss:$8 sps:$4 sm:$0xff]  }
 0x9e7   : > { %4831 = vmatprep.subr.bf16.mxu0 %v6913_v38 }
 0x9e8   : > { %v9756_v43 = vadd.f32 %v9573_v17, %v4185_v1  ;;  %v9762_v40 = vadd.f32 %v9576_v35, %v4184_v31  ;;  %4832 = vmatpush1.bf16.msra.mxu0 %v6911_v63  ;;  %v6916_v17 = vld [vmem:[%s8023_s26 + $0xf4] ss:$8 sps:$4 sm:$0xff]   ;;  %v4276_v35 = vsub.s32 2, %v10993_v32 }
 0x9e9   : > { %4833 = vmatprep.subr.bf16.mxu0 %v6916_v17 }
 0x9ea   : > { %v4241_v18 = vpack.c.bf16 %v9756_v43, %v9753_v44  ;;  %v4240_v39 = vpack.c.bf16 %v9762_v40, %v9759_v57  ;;  %v9777_v47 = vrot.slane %v9774_v55, %v4276_v35  ;;  %v9783_v26 = vrot.slane %v9780_v30, %v4276_v35 }
 0x9ec   : > { %4544 = vmatprep.mubr.bf16.mxu1 %v4241_v18  ;;  %4834 = vmatpush1.bf16.msra.mxu0 %v6914_v25 }
 0x9ed   : > { %4545 = vmatmul.mubr.bf16.gmra.mrb[156].mxu1 %v4240_v39 }
 0xa88   : > { %v4476_v23 = vpop.f32.mrb[128].mxu1 }
 0xa89   : > { %v4477_v52 = vadd.f32 %v4476_v23, %v9777_v47  ;;  %v4478_v15 = vpop.f32.mrb[129].mxu1 }
 0xa8a   : > { %v4479_v59 = vadd.f32 %v4478_v15, %v9783_v26  ;;  %v4480_v6 = vpop.f32.mrb[130].mxu1 }
 0xa8b   : > { %v4481_v37 = vadd.f32 %v4480_v6, %v9777_v47  ;;  %v4482_v42 = vpop.f32.mrb[131].mxu1  ;;  %v4555_v22 = vmax.f32 %v4477_v52, 0.0 }
 0xa8c   : > { %v4483_v56 = vadd.f32 %v4482_v42, %v9783_v26  ;;  %v4556_v24 = vmax.f32 %v4479_v59, 0.0 }
 0xa8d   : > { %v4557_v16 = vmax.f32 %v4481_v37, 0.0 }
 0xa8e   : > { %v4558_v3 = vmax.f32 %v4483_v56, 0.0 }
 0xa8f   : > { %v4587_v34 = vpack.c.bf16 %v4557_v16, %v4555_v22 }
 0xa90   : > { %v4588_v49 = vpack.c.bf16 %v4558_v3, %v4556_v24  ;;  %v4486_v20 = vpop.f32.mrb[132].mxu1 }
 0xa91   : > { %v4487_v41 = vadd.f32 %v4486_v20, %v9777_v47  ;;  %v4488_v13 = vpop.f32.mrb[133].mxu1 }
 0xa92   : > { %v4489_v1 = vadd.f32 %v4488_v13, %v9783_v26  ;;  %v4490_v31 = vpop.f32.mrb[134].mxu1  ;;  %4835 = vmatprep.mubr.bf16.mxu0 %v4588_v49 }
 0xa93   : > { %v4491_v18 = vadd.f32 %v4490_v31, %v9777_v47  ;;  %v4492_v39 = vpop.f32.mrb[135].mxu1  ;;  %4836 = vmatmul.mubr.bf16.vlgmr.msra.gmra.mrb[128].mxu0 %v4587_v34  ;;  %v4559_v63 = vmax.f32 %v4487_v41, 0.0 }
 0xa94   : > { %v4493_v38 = vadd.f32 %v4492_v39, %v9783_v26  ;;  %v4560_v25 = vmax.f32 %v4489_v1, 0.0 }
 0xa95   : > { %v4561_v17 = vmax.f32 %v4491_v18, 0.0 }
 0xa96   : > { %v4562_v35 = vmax.f32 %v4493_v38, 0.0 }
 0xa97   : > { %v4589_v23 = vpack.c.bf16 %v4561_v17, %v4559_v63 }
 0xa98   : > { %v4590_v52 = vpack.c.bf16 %v4562_v35, %v4560_v25  ;;  %v4496_v15 = vpop.f32.mrb[136].mxu1 }
 0xa99   : > { %v4497_v59 = vadd.f32 %v4496_v15, %v9777_v47  ;;  %v4498_v6 = vpop.f32.mrb[137].mxu1 }
 0xa9a   : > { %v4499_v37 = vadd.f32 %v4498_v6, %v9783_v26  ;;  %v4500_v42 = vpop.f32.mrb[138].mxu1  ;;  %4845 = vmatprep.mubr.bf16.mxu0 %v4590_v52 }
 0xa9b   : > { %v4501_v56 = vadd.f32 %v4500_v42, %v9777_v47  ;;  %v4502_v22 = vpop.f32.mrb[139].mxu1  ;;  %4846 = vmatmul.mubr.bf16.gmra.mrb[132].mxu0 %v4589_v23  ;;  %v4563_v24 = vmax.f32 %v4497_v59, 0.0 }
 0xa9c   : > { %v4503_v16 = vadd.f32 %v4502_v22, %v9783_v26  ;;  %v4564_v34 = vmax.f32 %v4499_v37, 0.0 }
 0xa9d   : > { %v4565_v3 = vmax.f32 %v4501_v56, 0.0 }
 0xa9e   : > { %v4566_v49 = vmax.f32 %v4503_v16, 0.0 }
 0xa9f   : > { %v4591_v20 = vpack.c.bf16 %v4565_v3, %v4563_v24 }
 0xaa0   : > { %v4592_v41 = vpack.c.bf16 %v4566_v49, %v4564_v34  ;;  %v4506_v13 = vpop.f32.mrb[140].mxu1 }
 0xaa1   : > { %v4507_v1 = vadd.f32 %v4506_v13, %v9777_v47  ;;  %v4508_v31 = vpop.f32.mrb[141].mxu1 }
 0xaa2   : > { %v4509_v18 = vadd.f32 %v4508_v31, %v9783_v26  ;;  %v4510_v39 = vpop.f32.mrb[142].mxu1  ;;  %4855 = vmatprep.mubr.bf16.mxu0 %v4592_v41 }
 0xaa3   : > { %v4511_v38 = vadd.f32 %v4510_v39, %v9777_v47  ;;  %v4512_v63 = vpop.f32.mrb[143].mxu1  ;;  %4856 = vmatmul.mubr.bf16.gmra.mrb[136].mxu0 %v4591_v20  ;;  %v4567_v25 = vmax.f32 %v4507_v1, 0.0 }
 0xaa4   : > { %v4513_v17 = vadd.f32 %v4512_v63, %v9783_v26  ;;  %v4568_v23 = vmax.f32 %v4509_v18, 0.0 }
 0xaa5   : > { %v4569_v35 = vmax.f32 %v4511_v38, 0.0 }
 0xaa6   : > { %v4570_v52 = vmax.f32 %v4513_v17, 0.0 }
 0xaa7   : > { %v4593_v15 = vpack.c.bf16 %v4569_v35, %v4567_v25 }
 0xaa8   : > { %v4594_v59 = vpack.c.bf16 %v4570_v52, %v4568_v23  ;;  %v4516_v6 = vpop.f32.mrb[144].mxu1 }
 0xaa9   : > { %v4517_v37 = vadd.f32 %v4516_v6, %v9777_v47  ;;  %v4518_v42 = vpop.f32.mrb[145].mxu1 }
 0xaaa   : > { %v4519_v56 = vadd.f32 %v4518_v42, %v9783_v26  ;;  %v4520_v22 = vpop.f32.mrb[146].mxu1  ;;  %4865 = vmatprep.mubr.bf16.mxu0 %v4594_v59 }
 0xaab   : > { %v4521_v16 = vadd.f32 %v4520_v22, %v9777_v47  ;;  %v4522_v24 = vpop.f32.mrb[147].mxu1  ;;  %4866 = vmatmul.mubr.bf16.gmra.mrb[140].mxu0 %v4593_v15  ;;  %v4571_v34 = vmax.f32 %v4517_v37, 0.0 }
 0xaac   : > { %v4523_v3 = vadd.f32 %v4522_v24, %v9783_v26  ;;  %v4572_v20 = vmax.f32 %v4519_v56, 0.0 }
 0xaad   : > { %v4573_v49 = vmax.f32 %v4521_v16, 0.0 }
 0xaae   : > { %v4574_v41 = vmax.f32 %v4523_v3, 0.0 }
 0xaaf   : > { %v4595_v13 = vpack.c.bf16 %v4573_v49, %v4571_v34 }
 0xab0   : > { %v4596_v1 = vpack.c.bf16 %v4574_v41, %v4572_v20  ;;  %v4526_v31 = vpop.f32.mrb[148].mxu1 }
 0xab1   : > { %v4527_v18 = vadd.f32 %v4526_v31, %v9777_v47  ;;  %v4528_v39 = vpop.f32.mrb[149].mxu1 }
 0xab2   : > { %v4529_v38 = vadd.f32 %v4528_v39, %v9783_v26  ;;  %v4530_v63 = vpop.f32.mrb[150].mxu1  ;;  %4875 = vmatprep.mubr.bf16.mxu0 %v4596_v1 }
 0xab3   : > { %v4531_v17 = vadd.f32 %v4530_v63, %v9777_v47  ;;  %v4532_v25 = vpop.f32.mrb[151].mxu1  ;;  %4876 = vmatmul.mubr.bf16.gmra.mrb[144].mxu0 %v4595_v13  ;;  %v4575_v23 = vmax.f32 %v4527_v18, 0.0 }
 0xab4   : > { %v4533_v35 = vadd.f32 %v4532_v25, %v9783_v26  ;;  %v4576_v15 = vmax.f32 %v4529_v38, 0.0 }
 0xab5   : > { %v4577_v52 = vmax.f32 %v4531_v17, 0.0 }
 0xab6   : > { %v4578_v59 = vmax.f32 %v4533_v35, 0.0 }
 0xab7   : > { %v4597_v6 = vpack.c.bf16 %v4577_v52, %v4575_v23 }
 0xab8   : > { %v4598_v37 = vpack.c.bf16 %v4578_v59, %v4576_v15  ;;  %v4536_v42 = vpop.f32.mrb[152].mxu1 }
 0xab9   : > { %v4537_v56 = vadd.f32 %v4536_v42, %v9777_v47  ;;  %v4538_v22 = vpop.f32.mrb[153].mxu1 }
 0xaba   : > { %v4539_v16 = vadd.f32 %v4538_v22, %v9783_v26  ;;  %v4540_v24 = vpop.f32.mrb[154].mxu1  ;;  %4885 = vmatprep.mubr.bf16.mxu0 %v4598_v37  ;;  %v4637_v22 = vsub.s32 3, %v10993_v32 }
 0xabb   : > { %v4541_v3 = vadd.f32 %v4540_v24, %v9777_v47  ;;  %v4542_v34 = vpop.f32.mrb[155].mxu1  ;;  %4886 = vmatmul.mubr.bf16.gmra.mrb[148].mxu0 %v4597_v6  ;;  %v4579_v20 = vmax.f32 %v4537_v56, 0.0 }
 0xabc   : > { %v4543_v49 = vadd.f32 %v4542_v34, %v9783_v26  ;;  %v4580_v13 = vmax.f32 %v4539_v16, 0.0  ;;  %v9819_v16 = vrot.slane %v9774_v55, %v4637_v22  ;;  %v9822_v24 = vrot.slane %v9780_v30, %v4637_v22 }
 0xabd   : > { %v4581_v41 = vmax.f32 %v4541_v3, 0.0 }
 0xabe   : > { %v4582_v1 = vmax.f32 %v4543_v49, 0.0 }
 0xabf   : > { %v4599_v31 = vpack.c.bf16 %v4581_v41, %v4579_v20 }
 0xac0   : > { %v4600_v18 = vpack.c.bf16 %v4582_v1, %v4580_v13  ;;  %v4546_v39 = vpop.f32.mrb[156].mxu1 }
 0xac1   : > { %v4547_v38 = vadd.f32 %v4546_v39, %v9777_v47  ;;  %v4548_v63 = vpop.f32.mrb[157].mxu1 }
 0xac2   : > { %v4549_v17 = vadd.f32 %v4548_v63, %v9783_v26  ;;  %v4550_v25 = vpop.f32.mrb[158].mxu1  ;;  %4895 = vmatprep.mubr.bf16.mxu0 %v4600_v18 }
 0xac3   : > { %v4551_v35 = vadd.f32 %v4550_v25, %v9777_v47  ;;  %v4552_v23 = vpop.f32.mrb[159].mxu1  ;;  %4896 = vmatmul.mubr.bf16.gmra.mrb[152].mxu0 %v4599_v31  ;;  %v4583_v15 = vmax.f32 %v4547_v38, 0.0 }
 0xac4   : > { %v4553_v52 = vadd.f32 %v4552_v23, %v9783_v26  ;;  %v4584_v6 = vmax.f32 %v4549_v17, 0.0 }
 0xac5   : > { %v4585_v59 = vmax.f32 %v4551_v35, 0.0 }
 0xac6   : > { %v4586_v37 = vmax.f32 %v4553_v52, 0.0 }
 0xac7   : > { %v4601_v42 = vpack.c.bf16 %v4585_v59, %v4583_v15 }
 0xac8   : > { %v4602_v56 = vpack.c.bf16 %v4586_v37, %v4584_v6 }
 0xaca   : > { %4905 = vmatprep.mubr.bf16.mxu0 %v4602_v56 }
 0xacb   : > { %4906 = vmatmul.mubr.bf16.gmra.mrb[156].mxu0 %v4601_v42 }
 0xb66   : > { %v4837_v47 = vpop.f32.mrb[128].mxu0 }
 0xb67   : > { %v4838_v3 = vadd.f32 %v4837_v47, %v9819_v16  ;;  %v4839_v26 = vpop.f32.mrb[129].mxu0 }
 0xb68   : > { %v4840_v34 = vadd.f32 %v4839_v26, %v9822_v24  ;;  %v4841_v49 = vpop.f32.mrb[130].mxu0 }
 0xb69   : > { %v9827_v20 = vadd.f32 %v4838_v3, %v9591_v14  ;;  %v4842_v41 = vadd.f32 %v4841_v49, %v9819_v16  ;;  %v4843_v13 = vpop.f32.mrb[131].mxu0 }
 0xb6a   : > { %v9831_v1 = vadd.f32 %v4840_v34, %v9585_v36  ;;  %v4844_v31 = vadd.f32 %v4843_v13, %v9822_v24 }
 0xb6b   : > { %v9835_v18 = vadd.f32 %v4842_v41, %v9594_v12 }
 0xb6c   : > { %v9838_v39 = vadd.f32 %v4844_v31, %v9588_v8  ;;  %v4948_v38 = vadd.f32 %v9831_v1, %v9827_v20 }
 0xb6e   : > { %v4847_v63 = vpop.f32.mrb[132].mxu0  ;;  %4949 = vadd.xlane.f32.xlu0 %v4948_v38  ;;  %v4951_v14 = vadd.f32 %v9838_v39, %v9835_v18 }
 0xb6f   : > { %v4848_v17 = vadd.f32 %v4847_v63, %v9819_v16  ;;  %v4849_v36 = vpop.f32.mrb[133].mxu0 }
 0xb70   : > { %v4850_v25 = vadd.f32 %v4849_v36, %v9822_v24  ;;  %v4851_v35 = vpop.f32.mrb[134].mxu0  ;;  %4952 = vadd.xlane.f32.xlu1 %v4951_v14 }
 0xb71   : > { %v9847_v12 = vadd.f32 %v4848_v17, %v9615_v50  ;;  %v4852_v8 = vadd.f32 %v4851_v35, %v9819_v16  ;;  %v4853_v23 = vpop.f32.mrb[135].mxu0 }
 0xb72   : > { %v9851_v52 = vadd.f32 %v4850_v25, %v9609_v46  ;;  %v4854_v15 = vadd.f32 %v4853_v23, %v9822_v24 }
 0xb73   : > { %v9855_v59 = vadd.f32 %v4852_v8, %v9618_v19 }
 0xb74   : > { %v9858_v6 = vadd.f32 %v4854_v15, %v9612_v11  ;;  %v4954_v37 = vadd.f32 %v9851_v52, %v9847_v12 }
 0xb76   : > { %v4857_v42 = vpop.f32.mrb[136].mxu0  ;;  %4955 = vadd.xlane.f32.xlu0 %v4954_v37  ;;  %v4957_v50 = vadd.f32 %v9858_v6, %v9855_v59 }
 0xb77   : > { %v4858_v56 = vadd.f32 %v4857_v42, %v9819_v16  ;;  %v4859_v46 = vpop.f32.mrb[137].mxu0 }
 0xb78   : > { %v4860_v22 = vadd.f32 %v4859_v46, %v9822_v24  ;;  %v4861_v47 = vpop.f32.mrb[138].mxu0  ;;  %4958 = vadd.xlane.f32.xlu1 %v4957_v50 }
 0xb79   : > { %v9867_v19 = vadd.f32 %v4858_v56, %v9639_v60  ;;  %v4862_v11 = vadd.f32 %v4861_v47, %v9819_v16  ;;  %v4863_v3 = vpop.f32.mrb[139].mxu0 }
 0xb7a   : > { %v9871_v26 = vadd.f32 %v4860_v22, %v9633_v0  ;;  %v4864_v34 = vadd.f32 %v4863_v3, %v9822_v24 }
 0xb7b   : > { %v9875_v49 = vadd.f32 %v4862_v11, %v9642_v51 }
 0xb7c   : > { %v9878_v41 = vadd.f32 %v4864_v34, %v9636_v28  ;;  %v4960_v13 = vadd.f32 %v9871_v26, %v9867_v19 }
 0xb7e   : > { %v4867_v31 = vpop.f32.mrb[140].mxu0  ;;  %4961 = vadd.xlane.f32.xlu0 %v4960_v13  ;;  %v4963_v60 = vadd.f32 %v9878_v41, %v9875_v49 }
 0xb7f   : > { %v4868_v38 = vadd.f32 %v4867_v31, %v9819_v16  ;;  %v4869_v0 = vpop.f32.mrb[141].mxu0 }
 0xb80   : > { %v4870_v63 = vadd.f32 %v4869_v0, %v9822_v24  ;;  %v4871_v14 = vpop.f32.mrb[142].mxu0  ;;  %4964 = vadd.xlane.f32.xlu1 %v4963_v60 }
 0xb81   : > { %v9887_v51 = vadd.f32 %v4868_v38, %v9663_v53  ;;  %v4872_v28 = vadd.f32 %v4871_v14, %v9819_v16  ;;  %v4873_v17 = vpop.f32.mrb[143].mxu0 }
 0xb82   : > { %v9891_v36 = vadd.f32 %v4870_v63, %v9657_v61  ;;  %v4874_v25 = vadd.f32 %v4873_v17, %v9822_v24 }
 0xb83   : > { %v9895_v35 = vadd.f32 %v4872_v28, %v9666_v7 }
 0xb84   : > { %v9898_v8 = vadd.f32 %v4874_v25, %v9660_v10  ;;  %v4966_v23 = vadd.f32 %v9891_v36, %v9887_v51 }
 0xb86   : > { %v4877_v15 = vpop.f32.mrb[144].mxu0  ;;  %4967 = vadd.xlane.f32.xlu0 %v4966_v23  ;;  %v4969_v53 = vadd.f32 %v9898_v8, %v9895_v35 }
 0xb87   : > { %v4878_v37 = vadd.f32 %v4877_v15, %v9819_v16  ;;  %v4879_v61 = vpop.f32.mrb[145].mxu0 }
 0xb88   : > { %v4880_v42 = vadd.f32 %v4879_v61, %v9822_v24  ;;  %v4881_v50 = vpop.f32.mrb[146].mxu0  ;;  %4970 = vadd.xlane.f32.xlu1 %v4969_v53 }
 0xb89   : > { %v9907_v7 = vadd.f32 %v4878_v37, %v9687_v4  ;;  %v4882_v10 = vadd.f32 %v4881_v50, %v9819_v16  ;;  %v4883_v56 = vpop.f32.mrb[147].mxu0 }
 0xb8a   : > { %v9911_v46 = vadd.f32 %v4880_v42, %v9681_v54  ;;  %v4884_v22 = vadd.f32 %v4883_v56, %v9822_v24 }
 0xb8b   : > { %v9915_v47 = vadd.f32 %v4882_v10, %v9690_v58 }
 0xb8c   : > { %v9918_v11 = vadd.f32 %v4884_v22, %v9684_v33  ;;  %v4972_v3 = vadd.f32 %v9911_v46, %v9907_v7 }
 0xb8e   : > { %v4887_v34 = vpop.f32.mrb[148].mxu0  ;;  %4973 = vadd.xlane.f32.xlu0 %v4972_v3  ;;  %v4975_v4 = vadd.f32 %v9918_v11, %v9915_v47 }
 0xb8f   : > { %v4888_v13 = vadd.f32 %v4887_v34, %v9819_v16  ;;  %v4889_v54 = vpop.f32.mrb[149].mxu0 }
 0xb90   : > { %v4890_v31 = vadd.f32 %v4889_v54, %v9822_v24  ;;  %v4891_v60 = vpop.f32.mrb[150].mxu0  ;;  %4976 = vadd.xlane.f32.xlu1 %v4975_v4 }
 0xb91   : > { %v9927_v58 = vadd.f32 %v4888_v13, %v9711_v21  ;;  %v4892_v33 = vadd.f32 %v4891_v60, %v9819_v16  ;;  %v4893_v38 = vpop.f32.mrb[151].mxu0 }
 0xb92   : > { %v9931_v0 = vadd.f32 %v4890_v31, %v9705_v29  ;;  %v4894_v63 = vadd.f32 %v4893_v38, %v9822_v24 }
 0xb93   : > { %v9935_v14 = vadd.f32 %v4892_v33, %v9714_v48 }
 0xb94   : > { %v9938_v28 = vadd.f32 %v4894_v63, %v9708_v27  ;;  %v4978_v17 = vadd.f32 %v9931_v0, %v9927_v58 }
 0xb96   : > { %v4897_v25 = vpop.f32.mrb[152].mxu0  ;;  %4979 = vadd.xlane.f32.xlu0 %v4978_v17  ;;  %v4981_v21 = vadd.f32 %v9938_v28, %v9935_v14 }
 0xb97   : > { %v4898_v23 = vadd.f32 %v4897_v25, %v9819_v16  ;;  %v4899_v29 = vpop.f32.mrb[153].mxu0 }
 0xb98   : > { %v4900_v15 = vadd.f32 %v4899_v29, %v9822_v24  ;;  %v4901_v53 = vpop.f32.mrb[154].mxu0  ;;  %4982 = vadd.xlane.f32.xlu1 %v4981_v21 }
 0xb99   : > { %v9947_v48 = vadd.f32 %v4898_v23, %v9735_v9  ;;  %v4902_v27 = vadd.f32 %v4901_v53, %v9819_v16  ;;  %v4903_v37 = vpop.f32.mrb[155].mxu0 }
 0xb9a   : > { %v9951_v61 = vadd.f32 %v4900_v15, %v9729_v62  ;;  %v4904_v42 = vadd.f32 %v4903_v37, %v9822_v24 }
 0xb9b   : > { %v9955_v50 = vadd.f32 %v4902_v27, %v9738_v45 }
 0xb9c   : > { %v9958_v10 = vadd.f32 %v4904_v42, %v9732_v5  ;;  %v4984_v56 = vadd.f32 %v9951_v61, %v9947_v48 }
 0xb9e   : > { %v4907_v22 = vpop.f32.mrb[156].mxu0  ;;  %4985 = vadd.xlane.f32.xlu0 %v4984_v56  ;;  %v4987_v9 = vadd.f32 %v9958_v10, %v9955_v50 }
 0xb9f   : > { %v4908_v3 = vadd.f32 %v4907_v22, %v9819_v16  ;;  %v4909_v62 = vpop.f32.mrb[157].mxu0 }
 0xba0   : > { %v4910_v34 = vadd.f32 %v4909_v62, %v9822_v24  ;;  %v4911_v4 = vpop.f32.mrb[158].mxu0  ;;  %4988 = vadd.xlane.f32.xlu1 %v4987_v9 }
 0xba1   : > { %v9967_v45 = vadd.f32 %v4908_v3, %v9759_v57  ;;  %v4912_v5 = vadd.f32 %v4911_v4, %v9819_v16  ;;  %v4913_v13 = vpop.f32.mrb[159].mxu0 }
 0xba2   : > { %v9971_v54 = vadd.f32 %v4910_v34, %v9753_v44  ;;  %v4914_v31 = vadd.f32 %v4913_v13, %v9822_v24 }
 0xba3   : > { %v9975_v60 = vadd.f32 %v4912_v5, %v9762_v40 }
 0xba4   : > { %v9978_v33 = vadd.f32 %v4914_v31, %v9756_v43  ;;  %v4990_v38 = vadd.f32 %v9971_v54, %v9967_v45 }
 0xba6   : > { %4991 = vadd.xlane.f32.xlu0 %v4990_v38  ;;  %v4993_v57 = vadd.f32 %v9978_v33, %v9975_v60 }
 0xba8   : > { %4994 = vadd.xlane.f32.xlu1 %v4993_v57 }
 0xbfb   : > { %v4950_v16 = vpop.xlane.xlu0 %4949 }
 0xbfc   : > { %v4996_v63 = vmul.f32 0.00390625, %v4950_v16 }
 0xbfd   : > { %v4953_v44 = vpop.xlane.xlu1 %4952 }
 0xbfe   : > { %v9985_v17 = vsub.f32 %v9827_v20, %v4996_v63  ;;  %v9988_v40 = vsub.f32 %v9831_v1, %v4996_v63  ;;  %v4997_v24 = vmul.f32 0.00390625, %v4953_v44 }
 0xc00   : > { %v5044_v43 = vmul.f32 %v9985_v17, %v9985_v17  ;;  %v5045_v25 = vmul.f32 %v9988_v40, %v9988_v40  ;;  %v9995_v21 = vsub.f32 %v9835_v18, %v4997_v24  ;;  %v9998_v23 = vsub.f32 %v9838_v39, %v4997_v24 }
 0xc02   : > { %v5046_v20 = vmul.f32 %v9995_v21, %v9995_v21  ;;  %v5047_v1 = vmul.f32 %v9998_v23, %v9998_v23  ;;  %v5076_v29 = vadd.f32 %v5045_v25, %v5044_v43 }
 0xc03   : > { %v4956_v15 = vpop.xlane.xlu0 %4955 }
 0xc04   : > { %v4998_v53 = vmul.f32 0.00390625, %v4956_v15  ;;  %5077 = vadd.xlane.f32.xlu0 %v5076_v29  ;;  %v5079_v27 = vadd.f32 %v5047_v1, %v5046_v20 }
 0xc05   : > { %v4959_v37 = vpop.xlane.xlu1 %4958 }
 0xc06   : > { %v10005_v42 = vsub.f32 %v9847_v12, %v4998_v53  ;;  %v10008_v18 = vsub.f32 %v9851_v52, %v4998_v53  ;;  %v4999_v39 = vmul.f32 0.00390625, %v4959_v37  ;;  %5080 = vadd.xlane.f32.xlu1 %v5079_v27 }
 0xc08   : > { %v5048_v56 = vmul.f32 %v10005_v42, %v10005_v42  ;;  %v5049_v22 = vmul.f32 %v10008_v18, %v10008_v18  ;;  %v10015_v9 = vsub.f32 %v9855_v59, %v4999_v39  ;;  %v10018_v3 = vsub.f32 %v9858_v6, %v4999_v39 }
 0xc0a   : > { %v5050_v12 = vmul.f32 %v10015_v9, %v10015_v9  ;;  %v5051_v52 = vmul.f32 %v10018_v3, %v10018_v3  ;;  %v5082_v62 = vadd.f32 %v5049_v22, %v5048_v56 }
 0xc0b   : > { %v4962_v34 = vpop.xlane.xlu0 %4961 }
 0xc0c   : > { %v5000_v4 = vmul.f32 0.00390625, %v4962_v34  ;;  %5083 = vadd.xlane.f32.xlu0 %v5082_v62  ;;  %v5085_v5 = vadd.f32 %v5051_v52, %v5050_v12 }
 0xc0d   : > { %v4965_v13 = vpop.xlane.xlu1 %4964 }
 0xc0e   : > { %v10025_v31 = vsub.f32 %v9867_v19, %v5000_v4  ;;  %v10028_v59 = vsub.f32 %v9871_v26, %v5000_v4  ;;  %v5001_v6 = vmul.f32 0.00390625, %v4965_v13  ;;  %5086 = vadd.xlane.f32.xlu1 %v5085_v5 }
 0xc10   : > { %v5052_v38 = vmul.f32 %v10025_v31, %v10025_v31  ;;  %v5053_v57 = vmul.f32 %v10028_v59, %v10028_v59  ;;  %v10035_v16 = vsub.f32 %v9875_v49, %v5001_v6  ;;  %v10038_v63 = vsub.f32 %v9878_v41, %v5001_v6 }
 0xc12   : > { %v5054_v19 = vmul.f32 %v10035_v16, %v10035_v16  ;;  %v5055_v26 = vmul.f32 %v10038_v63, %v10038_v63  ;;  %v5088_v44 = vadd.f32 %v5053_v57, %v5052_v38 }
 0xc13   : > { %v4968_v24 = vpop.xlane.xlu0 %4967 }
 0xc14   : > { %v5002_v43 = vmul.f32 0.00390625, %v4968_v24  ;;  %5089 = vadd.xlane.f32.xlu0 %v5088_v44  ;;  %v5091_v25 = vadd.f32 %v5055_v26, %v5054_v19 }
 0xc15   : > { %v4971_v20 = vpop.xlane.xlu1 %4970 }
 0xc16   : > { %v10045_v1 = vsub.f32 %v9887_v51, %v5002_v43  ;;  %v10048_v49 = vsub.f32 %v9891_v36, %v5002_v43  ;;  %v5003_v41 = vmul.f32 0.00390625, %v4971_v20  ;;  %5092 = vadd.xlane.f32.xlu1 %v5091_v25 }
 0xc18   : > { %v5056_v29 = vmul.f32 %v10045_v1, %v10045_v1  ;;  %v5057_v15 = vmul.f32 %v10048_v49, %v10048_v49  ;;  %v10055_v53 = vsub.f32 %v9895_v35, %v5003_v41  ;;  %v10058_v27 = vsub.f32 %v9898_v8, %v5003_v41 }
 0xc1a   : > { %v5058_v51 = vmul.f32 %v10055_v53, %v10055_v53  ;;  %v5059_v36 = vmul.f32 %v10058_v27, %v10058_v27  ;;  %v5094_v37 = vadd.f32 %v5057_v15, %v5056_v29 }
 0xc1b   : > { %v4974_v39 = vpop.xlane.xlu0 %4973 }
 0xc1c   : > { %v5004_v56 = vmul.f32 0.00390625, %v4974_v39  ;;  %5095 = vadd.xlane.f32.xlu0 %v5094_v37  ;;  %v5097_v22 = vadd.f32 %v5059_v36, %v5058_v51 }
 0xc1d   : > { %v4977_v12 = vpop.xlane.xlu1 %4976 }
 0xc1e   : > { %v10065_v52 = vsub.f32 %v9907_v7, %v5004_v56  ;;  %v10068_v35 = vsub.f32 %v9911_v46, %v5004_v56  ;;  %v5005_v8 = vmul.f32 0.00390625, %v4977_v12  ;;  %5098 = vadd.xlane.f32.xlu1 %v5097_v22 }
 0xc20   : > { %v5060_v62 = vmul.f32 %v10065_v52, %v10065_v52  ;;  %v5061_v34 = vmul.f32 %v10068_v35, %v10068_v35  ;;  %v10075_v4 = vsub.f32 %v9915_v47, %v5005_v8  ;;  %v10078_v5 = vsub.f32 %v9918_v11, %v5005_v8 }
 0xc22   : > { %v5062_v7 = vmul.f32 %v10075_v4, %v10075_v4  ;;  %v5063_v46 = vmul.f32 %v10078_v5, %v10078_v5  ;;  %v5100_v13 = vadd.f32 %v5061_v34, %v5060_v62 }
 0xc23   : > { %v4980_v6 = vpop.xlane.xlu0 %4979 }
 0xc24   : > { %v5006_v38 = vmul.f32 0.00390625, %v4980_v6  ;;  %5101 = vadd.xlane.f32.xlu0 %v5100_v13  ;;  %v5103_v57 = vadd.f32 %v5063_v46, %v5062_v7 }
 0xc25   : > { %v4983_v19 = vpop.xlane.xlu1 %4982 }
 0xc26   : > { %v10085_v26 = vsub.f32 %v9927_v58, %v5006_v38  ;;  %v10088_v47 = vsub.f32 %v9931_v0, %v5006_v38  ;;  %v5007_v11 = vmul.f32 0.00390625, %v4983_v19  ;;  %5104 = vadd.xlane.f32.xlu1 %v5103_v57 }
 0xc28   : > { %v5064_v44 = vmul.f32 %v10085_v26, %v10085_v26  ;;  %v5065_v24 = vmul.f32 %v10088_v47, %v10088_v47  ;;  %v10095_v43 = vsub.f32 %v9935_v14, %v5007_v11  ;;  %v10098_v25 = vsub.f32 %v9938_v28, %v5007_v11 }
 0xc2a   : > { %v5066_v58 = vmul.f32 %v10095_v43, %v10095_v43  ;;  %v5067_v0 = vmul.f32 %v10098_v25, %v10098_v25  ;;  %v5106_v20 = vadd.f32 %v5065_v24, %v5064_v44 }
 0xc2b   : > { %v4986_v41 = vpop.xlane.xlu0 %4985 }
 0xc2c   : > { %v5008_v29 = vmul.f32 0.00390625, %v4986_v41  ;;  %5107 = vadd.xlane.f32.xlu0 %v5106_v20  ;;  %v5109_v15 = vadd.f32 %v5067_v0, %v5066_v58 }
 0xc2d   : > { %v4989_v51 = vpop.xlane.xlu1 %4988 }
 0xc2e   : > { %v10105_v36 = vsub.f32 %v9947_v48, %v5008_v29  ;;  %v10108_v14 = vsub.f32 %v9951_v61, %v5008_v29  ;;  %v5009_v28 = vmul.f32 0.00390625, %v4989_v51  ;;  %5110 = vadd.xlane.f32.xlu1 %v5109_v15  ;;  %v5206_v29 = vsub.s32 6, %v10993_v32 }
 0xc30   : > { %v5068_v37 = vmul.f32 %v10105_v36, %v10105_v36  ;;  %v5069_v39 = vmul.f32 %v10108_v14, %v10108_v14  ;;  %v10115_v56 = vsub.f32 %v9955_v50, %v5009_v28  ;;  %v10118_v22 = vsub.f32 %v9958_v10, %v5009_v28 }
 0xc32   : > { %v5070_v48 = vmul.f32 %v10115_v56, %v10115_v56  ;;  %v5071_v61 = vmul.f32 %v10118_v22, %v10118_v22  ;;  %v5112_v12 = vadd.f32 %v5069_v39, %v5068_v37  ;;  %v5246_v37 = vsub.s32 7, %v10993_v32 }
 0xc33   : > { %v4992_v8 = vpop.xlane.xlu0 %4991 }
 0xc34   : > { %v5010_v62 = vmul.f32 0.00390625, %v4992_v8  ;;  %5113 = vadd.xlane.f32.xlu0 %v5112_v12  ;;  %v5115_v34 = vadd.f32 %v5071_v61, %v5070_v48  ;;  %v10147_v48 = vrot.slane %v9774_v55, %v5206_v29  ;;  %v10150_v61 = vrot.slane %v9780_v30, %v5206_v29 }
 0xc35   : > { %v4995_v7 = vpop.xlane.xlu1 %4994  ;;  %v10153_v8 = vrot.slane %v9774_v55, %v5246_v37 }
 0xc36   : > { %v10125_v46 = vsub.f32 %v9967_v45, %v5010_v62  ;;  %v10128_v50 = vsub.f32 %v9971_v54, %v5010_v62  ;;  %v5011_v10 = vmul.f32 0.00390625, %v4995_v7  ;;  %5116 = vadd.xlane.f32.xlu1 %v5115_v34  ;;  %v10156_v62 = vrot.slane %v9780_v30, %v5246_v37 }
 0xc38   : > { %v5072_v13 = vmul.f32 %v10125_v46, %v10125_v46  ;;  %v5073_v6 = vmul.f32 %v10128_v50, %v10128_v50  ;;  %v10135_v38 = vsub.f32 %v9975_v60, %v5011_v10  ;;  %v10138_v57 = vsub.f32 %v9978_v33, %v5011_v10 }
 0xc3a   : > { %v5074_v45 = vmul.f32 %v10135_v38, %v10135_v38  ;;  %v5075_v54 = vmul.f32 %v10138_v57, %v10138_v57  ;;  %v5118_v19 = vadd.f32 %v5073_v6, %v5072_v13 }
 0xc3c   : > { %5119 = vadd.xlane.f32.xlu0 %v5118_v19  ;;  %v5121_v11 = vadd.f32 %v5075_v54, %v5074_v45 }
 0xc3e   : > { %5122 = vadd.xlane.f32.xlu1 %v5121_v11 }
 0xc91   : > { %v5078_v44 = vpop.xlane.xlu0 %5077 }
 0xc92   : > { %v5124_v24 = vmul.f32 0.00390625, %v5078_v44 }
 0xc93   : > { %v5081_v58 = vpop.xlane.xlu1 %5080 }
 0xc94   : > { %v5140_v0 = vadd.f32 1e-06, %v5124_v24  ;;  %v5125_v20 = vmul.f32 0.00390625, %v5081_v58 }
 0xc96   : > { %7077 = vrsqrt.f32 %v5140_v0  ;;  %v5141_v60 = vadd.f32 1e-06, %v5125_v20 }
 0xc98   : > { %7079 = vrsqrt.f32 %v5141_v60 }
 0xc99   : > { %v5084_v33 = vpop.xlane.xlu0 %5083 }
 0xc9a   : > { %v5126_v41 = vmul.f32 0.00390625, %v5084_v33 }
 0xc9b   : > { %v5087_v15 = vpop.xlane.xlu1 %5086 }
 0xc9c   : > { %v5142_v51 = vadd.f32 1e-06, %v5126_v41  ;;  %v5127_v28 = vmul.f32 0.00390625, %v5087_v15 }
 0xc9e   : > { %7081 = vrsqrt.f32 %v5142_v51  ;;  %v5143_v39 = vadd.f32 1e-06, %v5127_v28 }
 0xca0   : > { %v7078_v12 = vpop.eup %7077  ;;  %7083 = vrsqrt.f32 %v5143_v39 }
 0xca1   : > { %v5172_v34 = vmul.f32 %v7078_v12, %v9985_v17  ;;  %v5173_v32 = vmul.f32 %v7078_v12, %v9988_v40  ;;  %v5090_v7 = vpop.xlane.xlu0 %5089 }
 0xca2   : > { %v7080_v10 = vpop.eup %7079  ;;  %v5128_v13 = vmul.f32 0.00390625, %v5090_v7 }
 0xca3   : > { %v5212_v6 = vmul.f32 %v10147_v48, %v5172_v34  ;;  %v5213_v45 = vmul.f32 %v10150_v61, %v5173_v32  ;;  %v5174_v54 = vmul.f32 %v7080_v10, %v9995_v21  ;;  %v5175_v19 = vmul.f32 %v7080_v10, %v9998_v23  ;;  %v5093_v55 = vpop.xlane.xlu1 %5092 }
 0xca4   : > { %v5144_v11 = vadd.f32 1e-06, %v5128_v13  ;;  %v5129_v44 = vmul.f32 0.00390625, %v5093_v55 }
 0xca5   : > { %v10165_v30 = vadd.f32 %v10153_v8, %v5212_v6  ;;  %v10168_v17 = vadd.f32 %v10156_v62, %v5213_v45  ;;  %v5214_v40 = vmul.f32 %v10147_v48, %v5174_v54  ;;  %v5215_v24 = vmul.f32 %v10150_v61, %v5175_v19 }
 0xca6   : > { %7085 = vrsqrt.f32 %v5144_v11  ;;  %v5145_v58 = vadd.f32 1e-06, %v5129_v44 }
 0xca7   : > { %v10173_v0 = vadd.f32 %v10153_v8, %v5214_v40  ;;  %v10176_v21 = vadd.f32 %v10156_v62, %v5215_v24  ;;  %5288 = vst [vmem:[#allocation2] sm:$0xff] (!%p6175_p12), %v10165_v30  ;;  %5289 = vst [vmem:[#allocation2 + $0x8] sm:$0xff] (!%p6175_p12), %v10168_v17 }
 0xca8   : > { %v7082_v23 = vpop.eup %7081  ;;  %7087 = vrsqrt.f32 %v5145_v58 }
 0xca9   : > { %v5176_v20 = vmul.f32 %v7082_v23, %v10005_v42  ;;  %v5177_v60 = vmul.f32 %v7082_v23, %v10008_v18  ;;  %v5096_v33 = vpop.xlane.xlu0 %5095  ;;  %5290 = vst [vmem:[#allocation2 + $0x10] sm:$0xff] (!%p6175_p12), %v10173_v0  ;;  %5291 = vst [vmem:[#allocation2 + $0x18] sm:$0xff] (!%p6175_p12), %v10176_v21 }
 0xcaa   : > { %v7084_v41 = vpop.eup %7083  ;;  %v5130_v29 = vmul.f32 0.00390625, %v5096_v33 }
 0xcab   : > { %v5216_v15 = vmul.f32 %v10147_v48, %v5176_v20  ;;  %v5217_v51 = vmul.f32 %v10150_v61, %v5177_v60  ;;  %v5178_v28 = vmul.f32 %v7084_v41, %v10015_v9  ;;  %v5179_v37 = vmul.f32 %v7084_v41, %v10018_v3  ;;  %v5099_v39 = vpop.xlane.xlu1 %5098 }
 0xcac   : > { %v5146_v12 = vadd.f32 1e-06, %v5130_v29  ;;  %v5131_v34 = vmul.f32 0.00390625, %v5099_v39 }
 0xcad   : > { %v10185_v32 = vadd.f32 %v10153_v8, %v5216_v15  ;;  %v10188_v42 = vadd.f32 %v10156_v62, %v5217_v51  ;;  %v5218_v18 = vmul.f32 %v10147_v48, %v5178_v28  ;;  %v5219_v7 = vmul.f32 %v10150_v61, %v5179_v37 }
 0xcae   : > { %7089 = vrsqrt.f32 %v5146_v12  ;;  %v5147_v10 = vadd.f32 1e-06, %v5131_v34 }
 0xcaf   : > { %v10193_v13 = vadd.f32 %v10153_v8, %v5218_v18  ;;  %v10196_v9 = vadd.f32 %v10156_v62, %v5219_v7  ;;  %5292 = vst [vmem:[#allocation2 + $0x20] sm:$0xff] (!%p6175_p12), %v10185_v32  ;;  %5293 = vst [vmem:[#allocation2 + $0x28] sm:$0xff] (!%p6175_p12), %v10188_v42 }
 0xcb0   : > { %v7086_v3 = vpop.eup %7085  ;;  %7091 = vrsqrt.f32 %v5147_v10 }
 0xcb1   : > { %v5180_v6 = vmul.f32 %v7086_v3, %v10025_v31  ;;  %v5181_v45 = vmul.f32 %v7086_v3, %v10028_v59  ;;  %v5102_v54 = vpop.xlane.xlu0 %5101  ;;  %5294 = vst [vmem:[#allocation2 + $0x30] sm:$0xff] (!%p6175_p12), %v10193_v13  ;;  %5295 = vst [vmem:[#allocation2 + $0x38] sm:$0xff] (!%p6175_p12), %v10196_v9 }
 0xcb2   : > { %v7088_v19 = vpop.eup %7087  ;;  %v5132_v55 = vmul.f32 0.00390625, %v5102_v54 }
 0xcb3   : > { %v5220_v11 = vmul.f32 %v10147_v48, %v5180_v6  ;;  %v5221_v44 = vmul.f32 %v10150_v61, %v5181_v45  ;;  %v5182_v40 = vmul.f32 %v7088_v19, %v10035_v16  ;;  %v5183_v24 = vmul.f32 %v7088_v19, %v10038_v63  ;;  %v5105_v58 = vpop.xlane.xlu1 %5104 }
 0xcb4   : > { %v5148_v23 = vadd.f32 1e-06, %v5132_v55  ;;  %v5133_v20 = vmul.f32 0.00390625, %v5105_v58 }
 0xcb5   : > { %v10205_v60 = vadd.f32 %v10153_v8, %v5220_v11  ;;  %v10208_v31 = vadd.f32 %v10156_v62, %v5221_v44  ;;  %v5222_v59 = vmul.f32 %v10147_v48, %v5182_v40  ;;  %v5223_v33 = vmul.f32 %v10150_v61, %v5183_v24 }
 0xcb6   : > { %7093 = vrsqrt.f32 %v5148_v23  ;;  %v5149_v41 = vadd.f32 1e-06, %v5133_v20 }
 0xcb7   : > { %v10213_v29 = vadd.f32 %v10153_v8, %v5222_v59  ;;  %v10216_v16 = vadd.f32 %v10156_v62, %v5223_v33  ;;  %5296 = vst [vmem:[#allocation2 + $0x40] sm:$0xff] (!%p6175_p12), %v10205_v60  ;;  %5297 = vst [vmem:[#allocation2 + $0x48] sm:$0xff] (!%p6175_p12), %v10208_v31 }
 0xcb8   : > { %v7090_v63 = vpop.eup %7089  ;;  %7095 = vrsqrt.f32 %v5149_v41 }
 0xcb9   : > { %v5184_v15 = vmul.f32 %v7090_v63, %v10045_v1  ;;  %v5185_v51 = vmul.f32 %v7090_v63, %v10048_v49  ;;  %v5108_v28 = vpop.xlane.xlu0 %5107  ;;  %5298 = vst [vmem:[#allocation2 + $0x50] sm:$0xff] (!%p6175_p12), %v10213_v29  ;;  %5299 = vst [vmem:[#allocation2 + $0x58] sm:$0xff] (!%p6175_p12), %v10216_v16 }
 0xcba   : > { %v7092_v37 = vpop.eup %7091  ;;  %v5134_v39 = vmul.f32 0.00390625, %v5108_v28 }
 0xcbb   : > { %v5224_v12 = vmul.f32 %v10147_v48, %v5184_v15  ;;  %v5225_v34 = vmul.f32 %v10150_v61, %v5185_v51  ;;  %v5186_v18 = vmul.f32 %v7092_v37, %v10055_v53  ;;  %v5187_v7 = vmul.f32 %v7092_v37, %v10058_v27  ;;  %v5111_v10 = vpop.xlane.xlu1 %5110 }
 0xcbc   : > { %v5150_v3 = vadd.f32 1e-06, %v5134_v39  ;;  %v5135_v6 = vmul.f32 0.00390625, %v5111_v10 }
 0xcbd   : > { %v10225_v45 = vadd.f32 %v10153_v8, %v5224_v12  ;;  %v10228_v1 = vadd.f32 %v10156_v62, %v5225_v34  ;;  %v5226_v49 = vmul.f32 %v10147_v48, %v5186_v18  ;;  %v5227_v54 = vmul.f32 %v10150_v61, %v5187_v7 }
 0xcbe   : > { %7097 = vrsqrt.f32 %v5150_v3  ;;  %v5151_v19 = vadd.f32 1e-06, %v5135_v6 }
 0xcbf   : > { %v10233_v55 = vadd.f32 %v10153_v8, %v5226_v49  ;;  %v10236_v53 = vadd.f32 %v10156_v62, %v5227_v54  ;;  %5300 = vst [vmem:[#allocation2 + $0x60] sm:$0xff] (!%p6175_p12), %v10225_v45  ;;  %5301 = vst [vmem:[#allocation2 + $0x68] sm:$0xff] (!%p6175_p12), %v10228_v1 }
 0xcc0   : > { %v7094_v27 = vpop.eup %7093  ;;  %7099 = vrsqrt.f32 %v5151_v19 }
 0xcc1   : > { %v5188_v11 = vmul.f32 %v7094_v27, %v10065_v52  ;;  %v5189_v44 = vmul.f32 %v7094_v27, %v10068_v35  ;;  %v5114_v40 = vpop.xlane.xlu0 %5113  ;;  %5302 = vst [vmem:[#allocation2 + $0x70] sm:$0xff] (!%p6175_p12), %v10233_v55  ;;  %5303 = vst [vmem:[#allocation2 + $0x78] sm:$0xff] (!%p6175_p12), %v10236_v53 }
 0xcc2   : > { %v7096_v24 = vpop.eup %7095  ;;  %v5136_v58 = vmul.f32 0.00390625, %v5114_v40 }
 0xcc3   : > { %v5228_v23 = vmul.f32 %v10147_v48, %v5188_v11  ;;  %v5229_v20 = vmul.f32 %v10150_v61, %v5189_v44  ;;  %v5190_v59 = vmul.f32 %v7096_v24, %v10075_v4  ;;  %v5191_v33 = vmul.f32 %v7096_v24, %v10078_v5  ;;  %v5117_v41 = vpop.xlane.xlu1 %5116 }
 0xcc4   : > { %v5152_v63 = vadd.f32 1e-06, %v5136_v58  ;;  %v5137_v15 = vmul.f32 0.00390625, %v5117_v41 }
 0xcc5   : > { %v10245_v51 = vadd.f32 %v10153_v8, %v5228_v23  ;;  %v10248_v52 = vadd.f32 %v10156_v62, %v5229_v20  ;;  %v5230_v35 = vmul.f32 %v10147_v48, %v5190_v59  ;;  %v5231_v28 = vmul.f32 %v10150_v61, %v5191_v33 }
 0xcc6   : > { %7101 = vrsqrt.f32 %v5152_v63  ;;  %v5153_v37 = vadd.f32 1e-06, %v5137_v15 }
 0xcc7   : > { %v10253_v39 = vadd.f32 %v10153_v8, %v5230_v35  ;;  %v10256_v4 = vadd.f32 %v10156_v62, %v5231_v28  ;;  %5304 = vst [vmem:[#allocation2 + $0x80] sm:$0xff] (!%p6175_p12), %v10245_v51  ;;  %5305 = vst [vmem:[#allocation2 + $0x88] sm:$0xff] (!%p6175_p12), %v10248_v52 }
 0xcc8   : > { %v7098_v5 = vpop.eup %7097  ;;  %7103 = vrsqrt.f32 %v5153_v37 }
 0xcc9   : > { %v5192_v12 = vmul.f32 %v7098_v5, %v10085_v26  ;;  %v5193_v34 = vmul.f32 %v7098_v5, %v10088_v47  ;;  %v5120_v18 = vpop.xlane.xlu0 %5119  ;;  %5306 = vst [vmem:[#allocation2 + $0x90] sm:$0xff] (!%p6175_p12), %v10253_v39  ;;  %5307 = vst [vmem:[#allocation2 + $0x98] sm:$0xff] (!%p6175_p12), %v10256_v4 }
 0xcca   : > { %v7100_v7 = vpop.eup %7099  ;;  %v5138_v10 = vmul.f32 0.00390625, %v5120_v18 }
 0xccb   : > { %v5232_v3 = vmul.f32 %v10147_v48, %v5192_v12  ;;  %v5233_v6 = vmul.f32 %v10150_v61, %v5193_v34  ;;  %v5194_v49 = vmul.f32 %v7100_v7, %v10095_v43  ;;  %v5195_v54 = vmul.f32 %v7100_v7, %v10098_v25  ;;  %v5123_v19 = vpop.xlane.xlu1 %5122 }
 0xccc   : > { %v5154_v27 = vadd.f32 1e-06, %v5138_v10  ;;  %v5139_v11 = vmul.f32 0.00390625, %v5123_v19 }
 0xccd   : > { %v10265_v44 = vadd.f32 %v10153_v8, %v5232_v3  ;;  %v10268_v26 = vadd.f32 %v10156_v62, %v5233_v6  ;;  %v5234_v47 = vmul.f32 %v10147_v48, %v5194_v49  ;;  %v5235_v40 = vmul.f32 %v10150_v61, %v5195_v54 }
 0xcce   : > { %7105 = vrsqrt.f32 %v5154_v27  ;;  %v5155_v24 = vadd.f32 1e-06, %v5139_v11 }
 0xccf   : > { %v10273_v58 = vadd.f32 %v10153_v8, %v5234_v47  ;;  %v10276_v43 = vadd.f32 %v10156_v62, %v5235_v40  ;;  %5308 = vst [vmem:[#allocation2 + $0xa0] sm:$0xff] (!%p6175_p12), %v10265_v44  ;;  %5309 = vst [vmem:[#allocation2 + $0xa8] sm:$0xff] (!%p6175_p12), %v10268_v26 }
 0xcd0   : > { %v7102_v25 = vpop.eup %7101  ;;  %7107 = vrsqrt.f32 %v5155_v24 }
 0xcd1   : > { %v5196_v23 = vmul.f32 %v7102_v25, %v10105_v36  ;;  %v5197_v20 = vmul.f32 %v7102_v25, %v10108_v14  ;;  %5310 = vst [vmem:[#allocation2 + $0xb0] sm:$0xff] (!%p6175_p12), %v10273_v58  ;;  %5311 = vst [vmem:[#allocation2 + $0xb8] sm:$0xff] (!%p6175_p12), %v10276_v43 }
 0xcd2   : > { %v7104_v59 = vpop.eup %7103 }
 0xcd3   : > { %v5236_v33 = vmul.f32 %v10147_v48, %v5196_v23  ;;  %v5237_v41 = vmul.f32 %v10150_v61, %v5197_v20  ;;  %v5198_v63 = vmul.f32 %v7104_v59, %v10115_v56  ;;  %v5199_v15 = vmul.f32 %v7104_v59, %v10118_v22 }
 0xcd5   : > { %v10285_v35 = vadd.f32 %v10153_v8, %v5236_v33  ;;  %v10288_v28 = vadd.f32 %v10156_v62, %v5237_v41  ;;  %v5238_v37 = vmul.f32 %v10147_v48, %v5198_v63  ;;  %v5239_v36 = vmul.f32 %v10150_v61, %v5199_v15 }
 0xcd7   : > { %v10293_v14 = vadd.f32 %v10153_v8, %v5238_v37  ;;  %v10296_v5 = vadd.f32 %v10156_v62, %v5239_v36  ;;  %5312 = vst [vmem:[#allocation2 + $0xc0] sm:$0xff] (!%p6175_p12), %v10285_v35  ;;  %5313 = vst [vmem:[#allocation2 + $0xc8] sm:$0xff] (!%p6175_p12), %v10288_v28 }
 0xcd8   : > { %v7106_v12 = vpop.eup %7105 }
 0xcd9   : > { %v5200_v56 = vmul.f32 %v7106_v12, %v10125_v46  ;;  %v5201_v22 = vmul.f32 %v7106_v12, %v10128_v50  ;;  %5287 = sbr.rel (%p6175_p12) target bundleno = 3298 (0xce2), region = 88  ;;  %5314 = vst [vmem:[#allocation2 + $0xd0] sm:$0xff] (!%p6175_p12), %v10293_v14  ;;  %5315 = vst [vmem:[#allocation2 + $0xd8] sm:$0xff] (!%p6175_p12), %v10296_v5 }
 0xcda   : > { %v7108_v34 = vpop.eup %7107 }
 0xcdb   : > { %v5240_v18 = vmul.f32 %v10147_v48, %v5200_v56  ;;  %v5241_v7 = vmul.f32 %v10150_v61, %v5201_v22  ;;  %v5202_v10 = vmul.f32 %v7108_v34, %v10135_v38  ;;  %v5203_v3 = vmul.f32 %v7108_v34, %v10138_v57 }
 0xcdd   : > { %v10305_v6 = vadd.f32 %v10153_v8, %v5240_v18  ;;  %v10308_v49 = vadd.f32 %v10156_v62, %v5241_v7  ;;  %v5242_v54 = vmul.f32 %v10147_v48, %v5202_v10  ;;  %v5243_v46 = vmul.f32 %v10150_v61, %v5203_v3 }
 0xcdf   : > { %v10313_v50 = vadd.f32 %v10153_v8, %v5242_v54  ;;  %v10316_v19 = vadd.f32 %v10156_v62, %v5243_v46  ;;  %5316 = vst [vmem:[#allocation2 + $0xe0] sm:$0xff] (!%p6175_p12), %v10305_v6  ;;  %5317 = vst [vmem:[#allocation2 + $0xe8] sm:$0xff] (!%p6175_p12), %v10308_v49 }
 0xce1   : > { %5318 = vst [vmem:[#allocation2 + $0xf0] sm:$0xff] %v10313_v50  ;;  %5319 = vst [vmem:[#allocation2 + $0xf8] sm:$0xff] %v10316_v19 }
 0xce2 PF: > { %s10995_s16 = sld [smem:[#allocation26_spill]] }
 0xce8   : > { %p6176_p6 = scmp.ne.s32.totalorder %s10995_s16, 1 }
 0xce9   : > { %v5327_v38 = vadd.f32 (!%p6176_p6), %v10168_v17, %v10165_v30  ;;  %v5333_v57 = vadd.f32 (!%p6176_p6), %v10188_v42, %v10185_v32  ;;  %v5330_v48 = vadd.f32 (!%p6176_p6), %v10176_v21, %v10173_v0  ;;  %v5336_v61 = vadd.f32 (!%p6176_p6), %v10196_v9, %v10193_v13  ;;  %s10996_s29 = sld [smem:[#allocation74_spill]] (!%p6176_p6) }
 0xcea   : > { %5323 = sbr.rel (%p6176_p6) target bundleno = 3659 (0xe4b), region = 92  ;;  %v5339_v8 = vadd.f32 (!%p6176_p6), %v10208_v31, %v10205_v60  ;;  %v5342_v62 = vadd.f32 (!%p6176_p6), %v10216_v16, %v10213_v29  ;;  %v5345_v27 = vadd.f32 (!%p6176_p6), %v10228_v1, %v10225_v45  ;;  %v5348_v11 = vadd.f32 (!%p6176_p6), %v10236_v53, %v10233_v55 }
 0xceb   : > { %5328 = vadd.xlane.f32.xlu0 (!%p6176_p6), %v5327_v38  ;;  %5334 = vadd.xlane.f32.xlu1 (!%p6176_p6), %v5333_v57  ;;  %v5351_v47 = vadd.f32 (!%p6176_p6), %v10248_v52, %v10245_v51  ;;  %v5354_v40 = vadd.f32 (!%p6176_p6), %v10256_v4, %v10253_v39  ;;  %v5357_v24 = vadd.f32 (!%p6176_p6), %v10268_v26, %v10265_v44 }
 0xcec   : > { %v5360_v25 = vadd.f32 (!%p6176_p6), %v10276_v43, %v10273_v58  ;;  %v5363_v23 = vadd.f32 (!%p6176_p6), %v10288_v28, %v10285_v35  ;;  %v5366_v20 = vadd.f32 (!%p6176_p6), %v10296_v5, %v10293_v14  ;;  %v5369_v59 = vadd.f32 (!%p6176_p6), %v10308_v49, %v10305_v6 }
 0xced   : > { %v5372_v33 = vadd.f32 (!%p6176_p6), %v10316_v19, %v10313_v50 }
 0xcef   : > { %5331 = vadd.xlane.f32.xlu0 (!%p6176_p6), %v5330_v48  ;;  %5337 = vadd.xlane.f32.xlu1 (!%p6176_p6), %v5336_v61  ;;  %s10997_s17 = smov (!%p6176_p6), %s10996_s29 }
 0xcf3   : > { %5340 = vadd.xlane.f32.xlu0 %v5339_v8  ;;  %5343 = vadd.xlane.f32.xlu1 %v5342_v62 }
 0xcf7   : > { %5346 = vadd.xlane.f32.xlu0 %v5345_v27  ;;  %5349 = vadd.xlane.f32.xlu1 %v5348_v11 }
 0xcfb   : > { %5352 = vadd.xlane.f32.xlu0 %v5351_v47  ;;  %5355 = vadd.xlane.f32.xlu1 %v5354_v40 }
 0xcff   : > { %5358 = vadd.xlane.f32.xlu0 %v5357_v24  ;;  %5361 = vadd.xlane.f32.xlu1 %v5360_v25 }
 0xd03   : > { %5364 = vadd.xlane.f32.xlu0 %v5363_v23  ;;  %5367 = vadd.xlane.f32.xlu1 %v5366_v20 }
 0xd07   : > { %5370 = vadd.xlane.f32.xlu0 %v5369_v59  ;;  %5373 = vadd.xlane.f32.xlu1 %v5372_v33 }
 0xd78   : > { %v5329_v41 = vpop.xlane.xlu0 %5328  ;;  %v5335_v63 = vpop.xlane.xlu1 %5334 }
 0xd79   : > { %v5375_v15 = vmul.f32 0.00390625, %v5329_v41  ;;  %v5377_v37 = vmul.f32 0.00390625, %v5335_v63 }
 0xd7b   : > { %v10385_v36 = vsub.f32 %v10165_v30, %v5375_v15  ;;  %v10388_v12 = vsub.f32 %v10168_v17, %v5375_v15  ;;  %v10391_v56 = vsub.f32 %v10185_v32, %v5377_v37  ;;  %v10394_v22 = vsub.f32 %v10188_v42, %v5377_v37 }
 0xd7c   : > { %v5332_v34 = vpop.xlane.xlu0 %5331  ;;  %v5338_v18 = vpop.xlane.xlu1 %5337 }
 0xd7d   : > { %v5376_v7 = vmul.f32 0.00390625, %v5332_v34  ;;  %v5378_v10 = vmul.f32 0.00390625, %v5338_v18  ;;  %v5423_v3 = vmul.f32 %v10385_v36, %v10385_v36  ;;  %v5424_v30 = vmul.f32 %v10388_v12, %v10388_v12 }
 0xd7e   : > { %v5427_v17 = vmul.f32 %v10391_v56, %v10391_v56  ;;  %v5428_v32 = vmul.f32 %v10394_v22, %v10394_v22 }
 0xd7f   : > { %v10405_v54 = vsub.f32 %v10173_v0, %v5376_v7  ;;  %v10408_v42 = vsub.f32 %v10176_v21, %v5376_v7  ;;  %v10411_v46 = vsub.f32 %v10193_v13, %v5378_v10  ;;  %v10414_v38 = vsub.f32 %v10196_v9, %v5378_v10 }
 0xd80   : > { %v5341_v57 = vpop.xlane.xlu0 %5340  ;;  %v5455_v48 = vadd.f32 %v5424_v30, %v5423_v3  ;;  %v5344_v61 = vpop.xlane.xlu1 %5343  ;;  %v5461_v21 = vadd.f32 %v5428_v32, %v5427_v17 }
 0xd81   : > { %v5379_v8 = vmul.f32 0.00390625, %v5341_v57  ;;  %v5380_v62 = vmul.f32 0.00390625, %v5344_v61  ;;  %v5425_v27 = vmul.f32 %v10405_v54, %v10405_v54  ;;  %v5426_v0 = vmul.f32 %v10408_v42, %v10408_v42 }
 0xd82   : > { %5456 = vadd.xlane.f32.xlu0 %v5455_v48  ;;  %v5429_v13 = vmul.f32 %v10411_v46, %v10411_v46  ;;  %v5430_v9 = vmul.f32 %v10414_v38, %v10414_v38 }
 0xd83   : > { %v10425_v11 = vsub.f32 %v10205_v60, %v5379_v8  ;;  %v10428_v47 = vsub.f32 %v10208_v31, %v5379_v8  ;;  %v10431_v40 = vsub.f32 %v10213_v29, %v5380_v62  ;;  %v10434_v24 = vsub.f32 %v10216_v16, %v5380_v62 }
 0xd84   : > { %v5347_v25 = vpop.xlane.xlu0 %5346  ;;  %v5458_v23 = vadd.f32 %v5426_v0, %v5425_v27  ;;  %v5350_v20 = vpop.xlane.xlu1 %5349  ;;  %v5464_v31 = vadd.f32 %v5430_v9, %v5429_v13 }
 0xd85   : > { %v5381_v59 = vmul.f32 0.00390625, %v5347_v25  ;;  %v5382_v33 = vmul.f32 0.00390625, %v5350_v20  ;;  %v5431_v41 = vmul.f32 %v10425_v11, %v10425_v11  ;;  %v5432_v60 = vmul.f32 %v10428_v47, %v10428_v47 }
 0xd86   : > { %5462 = vadd.xlane.f32.xlu0 %v5461_v21  ;;  %5459 = vadd.xlane.f32.xlu1 %v5458_v23  ;;  %v5433_v29 = vmul.f32 %v10431_v40, %v10431_v40  ;;  %v5434_v16 = vmul.f32 %v10434_v24, %v10434_v24 }
 0xd87   : > { %v10445_v63 = vsub.f32 %v10225_v45, %v5381_v59  ;;  %v10448_v15 = vsub.f32 %v10228_v1, %v5381_v59  ;;  %v10451_v37 = vsub.f32 %v10233_v55, %v5382_v33  ;;  %v10454_v34 = vsub.f32 %v10236_v53, %v5382_v33 }
 0xd88   : > { %v5353_v18 = vpop.xlane.xlu0 %5352  ;;  %v5467_v7 = vadd.f32 %v5432_v60, %v5431_v41  ;;  %v5356_v10 = vpop.xlane.xlu1 %5355  ;;  %v5470_v1 = vadd.f32 %v5434_v16, %v5433_v29 }
 0xd89   : > { %v5383_v3 = vmul.f32 0.00390625, %v5353_v18  ;;  %v5384_v30 = vmul.f32 0.00390625, %v5356_v10  ;;  %v5435_v17 = vmul.f32 %v10445_v63, %v10445_v63  ;;  %v5436_v45 = vmul.f32 %v10448_v15, %v10448_v15 }
 0xd8a   : > { %5465 = vadd.xlane.f32.xlu1 %v5464_v31  ;;  %5468 = vadd.xlane.f32.xlu0 %v5467_v7  ;;  %v5437_v55 = vmul.f32 %v10451_v37, %v10451_v37  ;;  %v5438_v53 = vmul.f32 %v10454_v34, %v10454_v34 }
 0xd8b   : > { %v10465_v32 = vsub.f32 %v10245_v51, %v5383_v3  ;;  %v10468_v57 = vsub.f32 %v10248_v52, %v5383_v3  ;;  %v10471_v48 = vsub.f32 %v10253_v39, %v5384_v30  ;;  %v10474_v61 = vsub.f32 %v10256_v4, %v5384_v30 }
 0xd8c   : > { %v5359_v8 = vpop.xlane.xlu0 %5358  ;;  %v5473_v62 = vadd.f32 %v5436_v45, %v5435_v17  ;;  %v5362_v27 = vpop.xlane.xlu1 %5361  ;;  %v5476_v52 = vadd.f32 %v5438_v53, %v5437_v55 }
 0xd8d   : > { %v5385_v0 = vmul.f32 0.00390625, %v5359_v8  ;;  %v5386_v21 = vmul.f32 0.00390625, %v5362_v27  ;;  %v5439_v13 = vmul.f32 %v10465_v32, %v10465_v32  ;;  %v5440_v51 = vmul.f32 %v10468_v57, %v10468_v57 }
 0xd8e   : > { %5471 = vadd.xlane.f32.xlu1 %v5470_v1  ;;  %5474 = vadd.xlane.f32.xlu0 %v5473_v62  ;;  %v5441_v39 = vmul.f32 %v10471_v48, %v10471_v48  ;;  %v5442_v4 = vmul.f32 %v10474_v61, %v10474_v61 }
 0xd8f   : > { %v10485_v9 = vsub.f32 %v10265_v44, %v5385_v0  ;;  %v10488_v25 = vsub.f32 %v10268_v26, %v5385_v0  ;;  %v10491_v23 = vsub.f32 %v10273_v58, %v5386_v21  ;;  %v10494_v20 = vsub.f32 %v10276_v43, %v5386_v21 }
 0xd90   : > { %v5365_v59 = vpop.xlane.xlu0 %5364  ;;  %v5479_v33 = vadd.f32 %v5440_v51, %v5439_v13  ;;  %v5368_v41 = vpop.xlane.xlu1 %5367  ;;  %v5482_v26 = vadd.f32 %v5442_v4, %v5441_v39 }
 0xd91   : > { %v5387_v60 = vmul.f32 0.00390625, %v5365_v59  ;;  %v5388_v31 = vmul.f32 0.00390625, %v5368_v41  ;;  %v5443_v29 = vmul.f32 %v10485_v9, %v10485_v9  ;;  %v5444_v44 = vmul.f32 %v10488_v25, %v10488_v25 }
 0xd92   : > { %5477 = vadd.xlane.f32.xlu1 %v5476_v52  ;;  %5480 = vadd.xlane.f32.xlu0 %v5479_v33  ;;  %v5445_v58 = vmul.f32 %v10491_v23, %v10491_v23  ;;  %v5446_v43 = vmul.f32 %v10494_v20, %v10494_v20 }
 0xd93   : > { %v10505_v16 = vsub.f32 %v10285_v35, %v5387_v60  ;;  %v10508_v18 = vsub.f32 %v10288_v28, %v5387_v60  ;;  %v10511_v7 = vsub.f32 %v10293_v14, %v5388_v31  ;;  %v10514_v10 = vsub.f32 %v10296_v5, %v5388_v31 }
 0xd94   : > { %v5371_v3 = vpop.xlane.xlu0 %5370  ;;  %v5485_v30 = vadd.f32 %v5444_v44, %v5443_v29  ;;  %v5374_v17 = vpop.xlane.xlu1 %5373  ;;  %v5488_v28 = vadd.f32 %v5446_v43, %v5445_v58 }
 0xd95   : > { %v5389_v45 = vmul.f32 0.00390625, %v5371_v3  ;;  %v5390_v1 = vmul.f32 0.00390625, %v5374_v17  ;;  %v5447_v55 = vmul.f32 %v10505_v16, %v10505_v16  ;;  %v5448_v35 = vmul.f32 %v10508_v18, %v10508_v18  ;;  %v5324_v3 = vld [vmem:[%s10996_s29] ss:$2 sm:$0x3] }
 0xd96   : > { %5483 = vadd.xlane.f32.xlu1 %v5482_v26  ;;  %5486 = vadd.xlane.f32.xlu0 %v5485_v30  ;;  %v5449_v14 = vmul.f32 %v10511_v7, %v10511_v7  ;;  %v5450_v5 = vmul.f32 %v10514_v10, %v10514_v10 }
 0xd97   : > { %v10525_v53 = vsub.f32 %v10305_v6, %v5389_v45  ;;  %v10528_v8 = vsub.f32 %v10308_v49, %v5389_v45  ;;  %v10531_v62 = vsub.f32 %v10313_v50, %v5390_v1  ;;  %v10534_v27 = vsub.f32 %v10316_v19, %v5390_v1 }
 0xd98   : > { %v5491_v0 = vadd.f32 %v5448_v35, %v5447_v55  ;;  %v5494_v6 = vadd.f32 %v5450_v5, %v5449_v14  ;;  %v6177_v55 = vld [vmem:[%s10997_s17 + $0x1] ss:$2 sm:$0x3]  ;;  %v10998_v14 = vld [vmem:[#allocation39_spill] sm:$0xff] }
 0xd99   : > { %v5451_v21 = vmul.f32 %v10525_v53, %v10525_v53  ;;  %v5452_v13 = vmul.f32 %v10528_v8, %v10528_v8  ;;  %v5453_v49 = vmul.f32 %v10531_v62, %v10531_v62  ;;  %v5454_v50 = vmul.f32 %v10534_v27, %v10534_v27 }
 0xd9a   : > { %5489 = vadd.xlane.f32.xlu1 %v5488_v28  ;;  %5492 = vadd.xlane.f32.xlu0 %v5491_v0  ;;  %v10551_v5 = vrot.slane %v5324_v3, %v10998_v14  ;;  %v10554_v0 = vrot.slane %v5324_v3, %v9198_v2 }
 0xd9b   : > { %v5497_v51 = vadd.f32 %v5452_v13, %v5451_v21  ;;  %v5500_v19 = vadd.f32 %v5454_v50, %v5453_v49 }
 0xd9e   : > { %5495 = vadd.xlane.f32.xlu1 %v5494_v6  ;;  %5498 = vadd.xlane.f32.xlu0 %v5497_v51  ;;  %v10559_v51 = vrot.slane %v6177_v55, %v10998_v14 }
 0xda2   : > { %5501 = vadd.xlane.f32.xlu1 %v5500_v19  ;;  %v10562_v19 = vrot.slane %v6177_v55, %v9198_v2 }
 0xe0f   : > { %v5457_v52 = vpop.xlane.xlu0 %5456 }
 0xe10   : > { %v5503_v39 = vmul.f32 0.00390625, %v5457_v52 }
 0xe12   : > { %v5519_v4 = vadd.f32 1e-06, %v5503_v39 }
 0xe13   : > { %v5460_v59 = vpop.xlane.xlu1 %5459  ;;  %v5463_v33 = vpop.xlane.xlu0 %5462 }
 0xe14   : > { %7145 = vrsqrt.f32 %v5519_v4  ;;  %v5504_v41 = vmul.f32 0.00390625, %v5460_v59  ;;  %v5505_v60 = vmul.f32 0.00390625, %v5463_v33 }
 0xe16   : > { %v5520_v31 = vadd.f32 1e-06, %v5504_v41  ;;  %v5521_v29 = vadd.f32 1e-06, %v5505_v60 }
 0xe17   : > { %v5466_v44 = vpop.xlane.xlu1 %5465  ;;  %v5469_v26 = vpop.xlane.xlu0 %5468 }
 0xe18   : > { %7147 = vrsqrt.f32 %v5520_v31  ;;  %v5506_v58 = vmul.f32 0.00390625, %v5466_v44  ;;  %v5507_v43 = vmul.f32 0.00390625, %v5469_v26 }
 0xe19   : > { %7149 = vrsqrt.f32 %v5521_v29 }
 0xe1a   : > { %v5522_v30 = vadd.f32 1e-06, %v5506_v58  ;;  %v5523_v17 = vadd.f32 1e-06, %v5507_v43 }
 0xe1b   : > { %v5472_v45 = vpop.xlane.xlu1 %5471  ;;  %v5475_v1 = vpop.xlane.xlu0 %5474 }
 0xe1c   : > { %7151 = vrsqrt.f32 %v5522_v30  ;;  %v5508_v35 = vmul.f32 0.00390625, %v5472_v45  ;;  %v5509_v28 = vmul.f32 0.00390625, %v5475_v1 }
 0xe1d   : > { %7153 = vrsqrt.f32 %v5523_v17 }
 0xe1e   : > { %v7146_v21 = vpop.eup %7145  ;;  %v5524_v13 = vadd.f32 1e-06, %v5508_v35  ;;  %v5525_v6 = vadd.f32 1e-06, %v5509_v28 }
 0xe1f   : > { %v5551_v49 = vmul.f32 %v7146_v21, %v10385_v36  ;;  %v5552_v50 = vmul.f32 %v7146_v21, %v10388_v12  ;;  %v5478_v52 = vpop.xlane.xlu1 %5477  ;;  %v5481_v39 = vpop.xlane.xlu0 %5480 }
 0xe20   : > { %7155 = vrsqrt.f32 %v5524_v13  ;;  %v5510_v4 = vmul.f32 0.00390625, %v5478_v52  ;;  %v5511_v59 = vmul.f32 0.00390625, %v5481_v39 }
 0xe21   : > { %v5594_v33 = vmul.f32 %v10551_v5, %v5551_v49  ;;  %v5595_v41 = vmul.f32 %v10554_v0, %v5552_v50  ;;  %7157 = vrsqrt.f32 %v5525_v6 }
 0xe22   : > { %v7148_v36 = vpop.eup %7147  ;;  %v5526_v12 = vadd.f32 1e-06, %v5510_v4  ;;  %v5527_v60 = vadd.f32 1e-06, %v5511_v59 }
 0xe23   : > { %v7150_v31 = vpop.eup %7149  ;;  %v5637_v29 = vadd.f32 %v10559_v51, %v5594_v33  ;;  %v5638_v2 = vadd.f32 %v10562_v19, %v5595_v41  ;;  %v5553_v44 = vmul.f32 %v7148_v36, %v10405_v54  ;;  %v5554_v26 = vmul.f32 %v7148_v36, %v10408_v42  ;;  %v5484_v58 = vpop.xlane.xlu1 %5483 }
 0xe24   : > { %v5487_v43 = vpop.xlane.xlu0 %5486  ;;  %v5555_v3 = vmul.f32 %v7150_v31, %v10391_v56  ;;  %v5556_v30 = vmul.f32 %v7150_v31, %v10394_v22  ;;  %7159 = vrsqrt.f32 %v5526_v12  ;;  %v5512_v17 = vmul.f32 0.00390625, %v5484_v58 }
 0xe25   : > { %5669 = vst [vmem:[%s8031_s8] sm:$0xff] %v5637_v29  ;;  %5670 = vst [vmem:[%s8031_s8 + $0x8] sm:$0xff] %v5638_v2  ;;  %v5596_v45 = vmul.f32 %v10551_v5, %v5553_v44  ;;  %v5597_v1 = vmul.f32 %v10554_v0, %v5554_v26  ;;  %7161 = vrsqrt.f32 %v5527_v60  ;;  %v5513_v55 = vmul.f32 0.00390625, %v5487_v43 }
 0xe26   : > { %v7152_v54 = vpop.eup %7151  ;;  %v5598_v42 = vmul.f32 %v10551_v5, %v5555_v3  ;;  %v5599_v35 = vmul.f32 %v10554_v0, %v5556_v30  ;;  %v5528_v56 = vadd.f32 1e-06, %v5512_v17 }
 0xe27   : > { %v7154_v28 = vpop.eup %7153  ;;  %v5639_v22 = vadd.f32 %v10559_v51, %v5596_v45  ;;  %v5640_v14 = vadd.f32 %v10562_v19, %v5597_v1  ;;  %v5557_v21 = vmul.f32 %v7152_v54, %v10411_v46  ;;  %v5558_v13 = vmul.f32 %v7152_v54, %v10414_v38  ;;  %v5490_v6 = vpop.xlane.xlu1 %5489 }
 0xe28   : > { %v5493_v49 = vpop.xlane.xlu0 %5492  ;;  %v5641_v50 = vadd.f32 %v10559_v51, %v5598_v42  ;;  %v5642_v52 = vadd.f32 %v10562_v19, %v5599_v35  ;;  %v5559_v39 = vmul.f32 %v7154_v28, %v10425_v11  ;;  %v5560_v4 = vmul.f32 %v7154_v28, %v10428_v47 }
 0xe29   : > { %5671 = vst [vmem:[%s8031_s8 + $0x10] sm:$0xff] %v5639_v22  ;;  %5672 = vst [vmem:[%s8031_s8 + $0x18] sm:$0xff] %v5640_v14  ;;  %v5600_v59 = vmul.f32 %v10551_v5, %v5557_v21  ;;  %v5601_v33 = vmul.f32 %v10554_v0, %v5558_v13  ;;  %7163 = vrsqrt.f32 %v5528_v56  ;;  %v5529_v46 = vadd.f32 1e-06, %v5513_v55 }
 0xe2a   : > { %v7156_v41 = vpop.eup %7155  ;;  %5673 = vst [vmem:[%s8031_s8 + $0x20] sm:$0xff] %v5641_v50  ;;  %5674 = vst [vmem:[%s8031_s8 + $0x28] sm:$0xff] %v5642_v52  ;;  %v5602_v38 = vmul.f32 %v10551_v5, %v5559_v39  ;;  %v5603_v36 = vmul.f32 %v10554_v0, %v5560_v4  ;;  %v5514_v11 = vmul.f32 0.00390625, %v5490_v6  ;;  %v5515_v12 = vmul.f32 0.00390625, %v5493_v49 }
 0xe2b   : > { %v7158_v47 = vpop.eup %7157  ;;  %v5643_v60 = vadd.f32 %v10559_v51, %v5600_v59  ;;  %v5644_v31 = vadd.f32 %v10562_v19, %v5601_v33  ;;  %v5561_v29 = vmul.f32 %v7156_v41, %v10431_v40  ;;  %v5562_v2 = vmul.f32 %v7156_v41, %v10434_v24  ;;  %v5496_v44 = vpop.xlane.xlu1 %5495 }
 0xe2c   : > { %v5645_v26 = vadd.f32 %v10559_v51, %v5602_v38  ;;  %v5646_v58 = vadd.f32 %v10562_v19, %v5603_v36  ;;  %v5563_v43 = vmul.f32 %v7158_v47, %v10445_v63  ;;  %v5564_v3 = vmul.f32 %v7158_v47, %v10448_v15  ;;  %v5499_v28 = vpop.xlane.xlu0 %5498 }
 0xe2d   : > { %5675 = vst [vmem:[%s8031_s8 + $0x30] sm:$0xff] %v5643_v60  ;;  %5676 = vst [vmem:[%s8031_s8 + $0x38] sm:$0xff] %v5644_v31  ;;  %v5604_v30 = vmul.f32 %v10551_v5, %v5561_v29  ;;  %v5605_v17 = vmul.f32 %v10554_v0, %v5562_v2  ;;  %7165 = vrsqrt.f32 %v5529_v46  ;;  %v5530_v45 = vadd.f32 1e-06, %v5514_v11 }
 0xe2e   : > { %v7160_v40 = vpop.eup %7159  ;;  %5677 = vst [vmem:[%s8031_s8 + $0x40] sm:$0xff] %v5645_v26  ;;  %5678 = vst [vmem:[%s8031_s8 + $0x48] sm:$0xff] %v5646_v58  ;;  %v5606_v24 = vmul.f32 %v10551_v5, %v5563_v43  ;;  %v5607_v1 = vmul.f32 %v10554_v0, %v5564_v3  ;;  %v5531_v63 = vadd.f32 1e-06, %v5515_v12  ;;  %v5516_v55 = vmul.f32 0.00390625, %v5496_v44 }
 0xe2f   : > { %v7162_v15 = vpop.eup %7161  ;;  %v5647_v54 = vadd.f32 %v10559_v51, %v5604_v30  ;;  %v5648_v42 = vadd.f32 %v10562_v19, %v5605_v17  ;;  %v5565_v35 = vmul.f32 %v7160_v40, %v10451_v37  ;;  %v5566_v56 = vmul.f32 %v7160_v40, %v10454_v34  ;;  %v5502_v6 = vpop.xlane.xlu1 %5501 }
 0xe30   : > { %v5649_v22 = vadd.f32 %v10559_v51, %v5606_v24  ;;  %v5650_v14 = vadd.f32 %v10562_v19, %v5607_v1  ;;  %v5567_v21 = vmul.f32 %v7162_v15, %v10465_v32  ;;  %v5568_v13 = vmul.f32 %v7162_v15, %v10468_v57 }
 0xe31   : > { %5679 = vst [vmem:[%s8031_s8 + $0x50] sm:$0xff] %v5647_v54  ;;  %5680 = vst [vmem:[%s8031_s8 + $0x58] sm:$0xff] %v5648_v42  ;;  %v5608_v49 = vmul.f32 %v10551_v5, %v5565_v35  ;;  %v5609_v50 = vmul.f32 %v10554_v0, %v5566_v56  ;;  %7167 = vrsqrt.f32 %v5530_v45  ;;  %v5532_v37 = vadd.f32 1e-06, %v5516_v55 }
 0xe32   : > { %5681 = vst [vmem:[%s8031_s8 + $0x60] sm:$0xff] %v5649_v22  ;;  %5682 = vst [vmem:[%s8031_s8 + $0x68] sm:$0xff] %v5650_v14  ;;  %v5610_v34 = vmul.f32 %v10551_v5, %v5567_v21  ;;  %v5611_v52 = vmul.f32 %v10554_v0, %v5568_v13  ;;  %7169 = vrsqrt.f32 %v5531_v63  ;;  %v5517_v32 = vmul.f32 0.00390625, %v5499_v28 }
 0xe33   : > { %v7164_v57 = vpop.eup %7163  ;;  %v5651_v39 = vadd.f32 %v10559_v51, %v5608_v49  ;;  %v5652_v4 = vadd.f32 %v10562_v19, %v5609_v50  ;;  %7171 = vrsqrt.f32 %v5532_v37  ;;  %v5518_v59 = vmul.f32 0.00390625, %v5502_v6 }
 0xe34   : > { %v5653_v33 = vadd.f32 %v10559_v51, %v5610_v34  ;;  %v5654_v46 = vadd.f32 %v10562_v19, %v5611_v52  ;;  %v5569_v41 = vmul.f32 %v7164_v57, %v10471_v48  ;;  %v5570_v38 = vmul.f32 %v7164_v57, %v10474_v61 }
 0xe35   : > { %5683 = vst [vmem:[%s8031_s8 + $0x70] sm:$0xff] %v5651_v39  ;;  %5684 = vst [vmem:[%s8031_s8 + $0x78] sm:$0xff] %v5652_v4  ;;  %v5533_v36 = vadd.f32 1e-06, %v5517_v32  ;;  %v5534_v11 = vadd.f32 1e-06, %v5518_v59 }
 0xe36   : > { %5685 = vst [vmem:[%s8031_s8 + $0x80] sm:$0xff] %v5653_v33  ;;  %5686 = vst [vmem:[%s8031_s8 + $0x88] sm:$0xff] %v5654_v46  ;;  %v5612_v12 = vmul.f32 %v10551_v5, %v5569_v41  ;;  %v5613_v47 = vmul.f32 %v10554_v0, %v5570_v38 }
 0xe37   : > { %v7166_v60 = vpop.eup %7165  ;;  %7173 = vrsqrt.f32 %v5533_v36 }
 0xe38   : > { %v5655_v31 = vadd.f32 %v10559_v51, %v5612_v12  ;;  %v5656_v48 = vadd.f32 %v10562_v19, %v5613_v47  ;;  %v5571_v61 = vmul.f32 %v7166_v60, %v10485_v9  ;;  %v5572_v29 = vmul.f32 %v7166_v60, %v10488_v25 }
 0xe39   : > { %7175 = vrsqrt.f32 %v5534_v11 }
 0xe3a   : > { %5687 = vst [vmem:[%s8031_s8 + $0x90] sm:$0xff] %v5655_v31  ;;  %5688 = vst [vmem:[%s8031_s8 + $0x98] sm:$0xff] %v5656_v48  ;;  %v5614_v2 = vmul.f32 %v10551_v5, %v5571_v61  ;;  %v5615_v44 = vmul.f32 %v10554_v0, %v5572_v29 }
 0xe3b   : > { %v7168_v26 = vpop.eup %7167 }
 0xe3c   : > { %v7170_v58 = vpop.eup %7169  ;;  %v5657_v43 = vadd.f32 %v10559_v51, %v5614_v2  ;;  %v5658_v3 = vadd.f32 %v10562_v19, %v5615_v44  ;;  %v5573_v30 = vmul.f32 %v7168_v26, %v10491_v23  ;;  %v5574_v9 = vmul.f32 %v7168_v26, %v10494_v20 }
 0xe3d   : > { %v7172_v17 = vpop.eup %7171  ;;  %v5575_v25 = vmul.f32 %v7170_v58, %v10505_v16  ;;  %v5576_v45 = vmul.f32 %v7170_v58, %v10508_v18 }
 0xe3e   : > { %5689 = vst [vmem:[%s8031_s8 + $0xa0] sm:$0xff] %v5657_v43  ;;  %5690 = vst [vmem:[%s8031_s8 + $0xa8] sm:$0xff] %v5658_v3  ;;  %v5616_v40 = vmul.f32 %v10551_v5, %v5573_v30  ;;  %v5617_v24 = vmul.f32 %v10554_v0, %v5574_v9  ;;  %v5577_v1 = vmul.f32 %v7172_v17, %v10511_v7 }
 0xe3f   : > { %v5578_v63 = vmul.f32 %v7172_v17, %v10514_v10  ;;  %v5618_v23 = vmul.f32 %v10551_v5, %v5575_v25  ;;  %v5619_v20 = vmul.f32 %v10554_v0, %v5576_v45 }
 0xe40   : > { %v5659_v16 = vadd.f32 %v10559_v51, %v5616_v40  ;;  %v5660_v18 = vadd.f32 %v10562_v19, %v5617_v24  ;;  %v5620_v55 = vmul.f32 %v10551_v5, %v5577_v1 }
 0xe41   : > { %v5621_v15 = vmul.f32 %v10554_v0, %v5578_v63  ;;  %v7174_v54 = vpop.eup %7173  ;;  %v5661_v7 = vadd.f32 %v10559_v51, %v5618_v23  ;;  %v5662_v10 = vadd.f32 %v10562_v19, %v5619_v20 }
 0xe42   : > { %5691 = vst [vmem:[%s8031_s8 + $0xb0] sm:$0xff] %v5659_v16  ;;  %5692 = vst [vmem:[%s8031_s8 + $0xb8] sm:$0xff] %v5660_v18  ;;  %v5663_v42 = vadd.f32 %v10559_v51, %v5620_v55  ;;  %v5579_v56 = vmul.f32 %v7174_v54, %v10525_v53  ;;  %v5580_v28 = vmul.f32 %v7174_v54, %v10528_v8 }
 0xe43   : > { %v5664_v35 = vadd.f32 %v10562_v19, %v5621_v15  ;;  %v7176_v22 = vpop.eup %7175  ;;  %5693 = vst [vmem:[%s8031_s8 + $0xc0] sm:$0xff] %v5661_v7  ;;  %5694 = vst [vmem:[%s8031_s8 + $0xc8] sm:$0xff] %v5662_v10 }
 0xe44   : > { %5695 = vst [vmem:[%s8031_s8 + $0xd0] sm:$0xff] %v5663_v42  ;;  %v5622_v14 = vmul.f32 %v10551_v5, %v5579_v56  ;;  %v5623_v21 = vmul.f32 %v10554_v0, %v5580_v28  ;;  %v5581_v13 = vmul.f32 %v7176_v22, %v10531_v62  ;;  %v5582_v6 = vmul.f32 %v7176_v22, %v10534_v27 }
 0xe45   : > { %5696 = vst [vmem:[%s8031_s8 + $0xd8] sm:$0xff] %v5664_v35 }
 0xe46   : > { %v5665_v53 = vadd.f32 %v10559_v51, %v5622_v14  ;;  %v5666_v49 = vadd.f32 %v10562_v19, %v5623_v21  ;;  %v5624_v8 = vmul.f32 %v10551_v5, %v5581_v13  ;;  %v5625_v50 = vmul.f32 %v10554_v0, %v5582_v6 }
 0xe48   : > { %5697 = vst [vmem:[%s8031_s8 + $0xe0] sm:$0xff] %v5665_v53  ;;  %5698 = vst [vmem:[%s8031_s8 + $0xe8] sm:$0xff] %v5666_v49  ;;  %v5667_v37 = vadd.f32 %v10559_v51, %v5624_v8  ;;  %v5668_v34 = vadd.f32 %v10562_v19, %v5625_v50 }
 0xe4a   : > { %5699 = vst [vmem:[%s8031_s8 + $0xf0] sm:$0xff] %v5667_v37  ;;  %5700 = vst [vmem:[%s8031_s8 + $0xf8] sm:$0xff] %v5668_v34 }
 0xe4b PF: > { %s10999_s30 = sld [smem:[#allocation27_spill]]  ;;  %s11000_s12 = sld [smem:[#allocation31_spill]] }
 0xe4c   : > { %s11001_s10 = sld [smem:[#allocation75_spill]]  ;;  %s5716_s3 = sshll.u32 %s8031_s8, 4  ;;  %s10697_s3 = int_to_ptr.vmem [resolvable:$true] %s5716_s3 }
 0xe4d   : > { %s5702_s15 = scalar_lea.sflag [#allocation5], %s7990_s20  ;;  %s7387_s26 = scalar_lea.vmem %s10697_s3, 4096 }
 0xe4e   : > { %p7388_p11 = scmp.ne.s32.totalorder %s10697_s3, %s7387_s26  ;;  %s7543_s22 = smov [#allocation15]  }
 0xe4f   : > { %s7391_s5 = sshll.u32 %s7543_s22, 4  ;;  %s7392_s5 = int_to_ptr.vmem [resolvable:$false] %s7391_s5 }
 0xe50   : > { %s7393_s19 = scalar_lea.vmem %s7392_s5, 8192  ;;  %p7394_p2 = scmp.lt.s32.totalorder %s10697_s3, %s7392_s5 }
 0xe51   : > { %s6191_s11 = sshll.u32 %s10999_s30, 12  ;;  %p11003_p1 = scmp.ne.s32.totalorder %s11000_s12, 0 }
 0xe52   : > { %s11002_s1 = smov %s11001_s10  ;;  %s10694_s28 = scalar_lea.hbm %s11001_s10, %s6191_s11 }
 0xe53   : > { %p7389_p9 = pnand %p7388_p11, %p11003_p1  ;;  %p7395_p10 = scmp.lt.s32.totalorder %s7393_s19, %s7387_s26 }
 0xe55   : > { %p7390_p8 = pneg %p7389_p9  ;;  %p7396_p5 = por %p7395_p10, %p7394_p2 }
 0xe57   : > { %p7397_p7 = pnand %p7396_p5, %p7390_p8 }
 0xe59   : > { %7400 = shalt.err (!%p7397_p7)
}
 0xe5a   : > { %s7401_s8 = scalar_lea.hbm %s10694_s28, 4096  ;;  %s7405_s24 = scalar_lea.hbm %s11002_s1, 8192 }
 0xe5b   : > { %p7402_p13 = scmp.ne.s32.totalorder %s10694_s28, %s7401_s8  ;;  %p7406_p0 = scmp.lt.u32.totalorder %s10694_s28, %s11002_s1 }
 0xe5c   : > { %p7407_p12 = scmp.lt.u32.totalorder %s7405_s24, %s7401_s8  ;;  %p7409_p11 = scmp.lt.u32.totalorder %s7401_s8, %s10694_s28 }
 0xe5d   : > { %p7403_p4 = pnand %p7402_p13, %p11003_p1 }
 0xe5e   : > { %p7408_p6 = por %p7407_p12, %p7406_p0 }
 0xe5f   : > { %p7404_p3 = pneg %p7403_p4 }
 0xe60   : > { %p7410_p9 = por %p7409_p11, %p7408_p6 }
 0xe62   : > { %p7411_p8 = pnand %p7410_p9, %p7404_p3 }
 0xe64   : > { %7414 = shalt.err (!%p7411_p8)
}
 0xe65   : > { %s7544_s27 = smov 256   ;;  %s7545_s21 = smov 16  }
 0xe66   : > { %6500 = dma.vmem_to_hbm [thread:$0]  (%p11003_p1), %s10697_s3, 4096, %s10694_s28, %s5702_s15, %s7544_s27, %s7544_s27, %s7545_s21  }
 0xe67 PF: > { %s11004_s30 = sld [smem:[#allocation28_spill]]  ;;  %s11005_s11 = sld [smem:[#allocation24_spill]] }
 0xe68   : > { %s11006_s7 = sld [smem:[#allocation32_spill]] }
 0xe6d   : > { %p6529_p2 = scmp.ge.s32.totalorder %s11004_s30, 2  ;;  %s5731_s18 = sand.u32 1, %s11005_s11  }
 0xe6e   : > { %p11007_p10 = scmp.ne.s32.totalorder %s11006_s7, 0  ;;  %s5732_s10 = scalar_lea.sflag [#allocation5], %s5731_s18 }
 0xe70   : > { %p6525_p5 = pnand %p6529_p2, %p11007_p10 }
 0xe72   : > { %7480 = dma.done.wait (!%p6525_p5), %s5732_s10, 4096  }
 0xe73   : > { %7482 = vsyncadd (!%p6525_p5), %s5732_s10, 4294963200  ;;  %s33_s15 = sadd.s32 1, %s11004_s30   ;;  %s11008_s27 = sld [smem:[#allocation22_spill]] }
 0xe74   : > { %p30_p7 = scmp.ge.s32.totalorder %s33_s15, 6   ;;  %s11009_s28 = sld [smem:[#allocation23_spill]] }
 0xe75   : > { %s11010_s29 = sld [smem:[#allocation36_spill]]  ;;  %s11011_s20 = sld [smem:[#allocation25_spill]] }
 0xe76   : > { %s11012_s10 = sld [smem:[#allocation37_spill]]  ;;  %s11013_s3 = sld [smem:[#allocation33_spill]] }
 0xe77   : > { %s11014_s26 = sld [smem:[#allocation35_spill]]  ;;  %s11015_s30 = smov %s7501_s9 }
 0xe78   : > { %s11017_s11 = smov %s7517_s13  ;;  %s11018_s12 = smov %s7521_s14 }
 0xe79   :  { %32 = sbr.rel (!%p30_p7) target bundleno = 21 (0x15), region = 182 }
 0xe7b   : > { %s11016_s9 = smov %s11011_s20 }
 0xe7c   : > { %s11019_s13 = smov %s11013_s3 }
 0xe7d   : > { %s11020_s14 = smov %s11014_s26 }
 0xe80   :  { %5737 = vsyncpa [#allocation4], 1 }
 0xe81   :  { %5739 = vsyncpa [#allocation4 + $0x1], 1 }
 0xe82   :  { %5740 = vsyncpa [#allocation7], 1 }
 0xe83   :  { %5742 = vsyncpa [#allocation7 + $0x1], 1 }
 0xe84   :  { %5743 = vsyncpa [#allocation10], 1 }
 0xe85   :  { %5745 = vsyncpa [#allocation10 + $0x1], 1 }
 0xe86   :  { %5746 = vsyncpa [#allocation13], 1 }
 0xe87   :  { %5748 = vsyncpa [#allocation13 + $0x1], 1 }
 0xe88   :  { %5749 = vsyncpa [#allocation5], 1 }
 0xe89   :  { %5751 = vsyncpa [#allocation5 + $0x1], 1 }

</bundles_post_ra>
